<compile_context>
chip_gen: v7x
topology: tpu7x:2x2x1
jax: 0.10.0
libtpu: 0.0.40
codegen_flags: <defaults>
</compile_context>

<pallas_src>
import functools

import jax
import jax.numpy as jnp
from jax.experimental import pallas as pl
from jax.experimental.pallas import tpu as pltpu

EMB_DIM = 128
VOCAB_SIZE = 1000
WORD_VOCAB_SIZE = 10
NUM_FILTERS = 16
KERNELS = (2, 3, 4, 5)
KMAX = max(KERNELS)                                   # 5
WORD_DIM = sum(k * NUM_FILTERS for k in KERNELS)      # 224
WORD_DIM_PAD = 256                                    # lane-aligned feature width
HIDDEN = 128
VOCAB_PAD = 128                                       # lane-dense output width
NEG_INF = -1e30


def _round_up(a, b):
    return -(-a // b) * b


def _sigmoid(v):
    return 1.0 / (1.0 + jnp.exp(-v))


def charcnn_rnn_kernel(emb_ref,
                       wconv_ref, maskneg_ref, bconv_ref,
                       wth_ref, bth_ref,
                       wlstm_ref, blstm_ref,
                       wfc_ref, bfc_ref,
                       out_ref):
    xb = emb_ref[...]                                  # (tn, L, E) bf16
    tn, L, E = xb.shape
    NL = tn * L

    # ---- CharCNN: shift-and-accumulate conv (no xcat materialization) -------
    xb2 = xb.reshape(NL, E)                            # bf16, offset d = 0
    xf2 = xb2.astype(jnp.float32)                      # one upcast; rolls stay 32-bit
    acc = jnp.dot(xb2, wconv_ref[0], preferred_element_type=jnp.float32)
    for d in range(1, KMAX):
        # row r of the rolled view holds emb row r + d (wraps only into rows
        # whose conv position is invalid -> killed by the -1e30 mask below).
        xs = pltpu.roll(xf2, NL - d, axis=0).astype(jnp.bfloat16)
        acc = acc + jnp.dot(xs, wconv_ref[d], preferred_element_type=jnp.float32)
    conv = acc.reshape(tn, L, WORD_DIM_PAD)

    # bias + relu after the pool; validity mask folded in as an additive -1e30.
    # relu(max_t(conv + mask) + b) == max_valid_t(relu(conv + b)).
    # Pad columns: conv == 0, mask == -1e30, b == 0  ->  y stays exactly 0.
    y = jnp.maximum(jnp.max(conv + maskneg_ref[...], axis=1) + bconv_ref[...], 0.0)

    # ---- Highway network (Wt | Wh fused into one matmul) ---------------------
    yb = y.astype(jnp.bfloat16)
    hw = jnp.dot(yb, wth_ref[...], preferred_element_type=jnp.float32) + bth_ref[...]
    tg = _sigmoid(hw[:, :WORD_DIM_PAD])
    hg = jnp.maximum(hw[:, WORD_DIM_PAD:], 0.0)
    z = tg * hg + (1.0 - tg) * y                       # pad columns stay exactly 0

    # ---- bidirectional LSTM, single time step, h0 = c0 = 0 -------------------
    # f-gate dropped (f * c0 == 0); fused weight columns are
    # [i_f | i_r | g_f | g_r | o_f | o_r] so h = [h_fwd | h_rev] directly.
    zb = z.astype(jnp.bfloat16)
    H2 = 2 * HIDDEN
    g = jnp.dot(zb, wlstm_ref[...], preferred_element_type=jnp.float32) + blstm_ref[...]
    i_g = _sigmoid(g[:, 0:H2])
    g_g = jnp.tanh(g[:, H2:2 * H2])
    o_g = _sigmoid(g[:, 2 * H2:3 * H2])
    h = o_g * jnp.tanh(i_g * g_g)                      # (tn, 256)

    # ---- fc + dropout(eval) + log-softmax ------------------------------------
    # TODO(synk): nn.Dropout(0.2) treated as eval-mode identity (no RNG mask).
    logits = (jnp.dot(h.astype(jnp.bfloat16), wfc_ref[...],
                      preferred_element_type=jnp.float32) + bfc_ref[...])
    logits = logits - jnp.max(logits, axis=-1, keepdims=True)       # pads ~ -1e30
    out_ref[...] = logits - jnp.log(jnp.sum(jnp.exp(logits), axis=-1, keepdims=True))


def init_params(key):
    keys = jax.random.split(key, 24)

    def nrm(k, shape, scale=0.05):
        return (scale * jax.random.normal(k, shape)).astype(jnp.float32)

    params = {}
    emb = nrm(keys[0], (VOCAB_SIZE, EMB_DIM), 0.1)
    params['embedding'] = emb.at[0].set(0.0)           # padding_idx = 0
    ki = 1
    for k in KERNELS:
        nf = NUM_FILTERS * k
        # conv weight stored as (k, E, nf)  (== PyTorch (nf, 1, k, E) transposed)
        params[f'conv{k}_w'] = nrm(keys[ki], (k, EMB_DIM, nf)); ki += 1
        params[f'conv{k}_b'] = nrm(keys[ki], (1, nf)); ki += 1
    # highway (Linear weights stored [in, out])
    params['wh'] = nrm(keys[ki], (WORD_DIM, WORD_DIM)); ki += 1
    params['bh'] = nrm(keys[ki], (1, WORD_DIM)); ki += 1
    params['wt'] = nrm(keys[ki], (WORD_DIM, WORD_DIM)); ki += 1
    params['bt'] = nrm(keys[ki], (1, WORD_DIM)); ki += 1
    # LSTM input weights [word_dim, 4H], gate column order i|f|g|o; bias = b_ih+b_hh
    params['w_lstm_f'] = nrm(keys[ki], (WORD_DIM, 4 * HIDDEN)); ki += 1
    params['b_lstm_f'] = nrm(keys[ki], (1, 4 * HIDDEN)); ki += 1
    params['w_lstm_r'] = nrm(keys[ki], (WORD_DIM, 4 * HIDDEN)); ki += 1
    params['b_lstm_r'] = nrm(keys[ki], (1, 4 * HIDDEN)); ki += 1
    # final fc
    params['w_fc'] = nrm(keys[ki], (2 * HIDDEN, WORD_VOCAB_SIZE)); ki += 1
    params['b_fc'] = nrm(keys[ki], (1, WORD_VOCAB_SIZE)); ki += 1
    return params


def prepare_weights(params, L):
    """Fuse / pad / cast kernel weights ONCE at model init (hoisted out of the
    per-call jit).  Returns (bf16 embedding table, tuple of kernel operands)."""
    if L < KMAX:
        raise ValueError(f"max word length L={L} must be >= max kernel width {KMAX}")
    f32, bf16 = jnp.float32, jnp.bfloat16
    E, H = EMB_DIM, HIDDEN

    # Conv weights as (KMAX, E, 256): plane d holds offset-d filters of every
    # width (zeros where d >= width); columns [k2|k3|k4|k5|pad] match the
    # torch.cat feature order.  Validity mask is additive (0 valid / -1e30 not).
    wconv = jnp.zeros((KMAX, E, WORD_DIM_PAD), f32)
    bconv = jnp.zeros((1, WORD_DIM_PAD), f32)
    maskneg = jnp.full((1, L, WORD_DIM_PAD), NEG_INF, f32)
    col = 0
    for k in KERNELS:
        nf = NUM_FILTERS * k
        wk = params[f'conv{k}_w']                      # (k, E, nf)
        for d in range(k):
            wconv = wconv.at[d, :, col:col + nf].set(wk[d])
        bconv = bconv.at[:, col:col + nf].set(params[f'conv{k}_b'])
        maskneg = maskneg.at[:, :L - k + 1, col:col + nf].set(0.0)
        col += nf

    def pad2(w, rows, cols):
        return jnp.pad(w, ((0, rows - w.shape[0]), (0, cols - w.shape[1])))

    # Highway: fused [Wt | Wh] (256, 512), bias (1, 512).
    wth = jnp.concatenate([pad2(params['wt'], WORD_DIM_PAD, WORD_DIM_PAD),
                           pad2(params['wh'], WORD_DIM_PAD, WORD_DIM_PAD)], axis=1)
    bth = jnp.concatenate([pad2(params['bt'], 1, WORD_DIM_PAD),
                           pad2(params['bh'], 1, WORD_DIM_PAD)], axis=1)

    # LSTM: drop f-gate (c0 = 0), fuse both directions: cols [i_f|i_r|g_f|g_r|o_f|o_r].
    def gates_igo(w, b):
        return ((w[:, 0:H], w[:, 2 * H:3 * H], w[:, 3 * H:4 * H]),
                (b[:, 0:H], b[:, 2 * H:3 * H], b[:, 3 * H:4 * H]))
    (wif, wgf, wof), (bif, bgf, bof) = gates_igo(params['w_lstm_f'], params['b_lstm_f'])
    (wir, wgr, wor), (bir, bgr, bor) = gates_igo(params['w_lstm_r'], params['b_lstm_r'])
    wlstm = jnp.concatenate([wif, wir, wgf, wgr, wof, wor], axis=1)   # (224, 768)
    wlstm = jnp.pad(wlstm, ((0, WORD_DIM_PAD - WORD_DIM), (0, 0)))
    blstm = jnp.concatenate([bif, bir, bgf, bgr, bof, bor], axis=1)   # (1, 768)

    # Final fc: pad vocab logits carry -1e30 bias so log-softmax ignores them.
    wfc = pad2(params['w_fc'], 2 * HIDDEN, VOCAB_PAD)
    bfc = jnp.full((1, VOCAB_PAD), NEG_INF, f32).at[:, :WORD_VOCAB_SIZE].set(
        params['b_fc'])

    emb_table = params['embedding'].astype(bf16)       # bf16 HBM stream (halved)
    weights = (wconv.astype(bf16), maskneg, bconv,
               wth.astype(bf16), bth,
               wlstm.astype(bf16), blstm,
               wfc.astype(bf16), bfc)
    return emb_table, weights


@functools.partial(jax.jit, static_argnames=('tn',))
def charcnn_rnn_forward(x_ids, prepared, tn=256):
    """x_ids: int32 [batch, seq_len, max_len] char indices -> log-probs
    [batch*seq_len, 1, word_vocab] (matches the PyTorch output shape)."""
    emb_table, weights = prepared
    B, S, L = x_ids.shape
    N = B * S
    tn_eff = min(tn, _round_up(N, 8))                  # adaptive tile for small N
    n_pad = _round_up(N, tn_eff)

    # embedding gather is glue (plain XLA); pad rows are zero and sliced off.
    emb = jnp.take(emb_table, x_ids.reshape(N, L), axis=0)          # (N, L, E) bf16
    if n_pad != N:
        emb = jnp.pad(emb, ((0, n_pad - N), (0, 0), (0, 0)))

    def full_spec(a):
        nd = a.ndim
        return pl.BlockSpec(a.shape, lambda i, nd=nd: (0,) * nd)

    out = pl.pallas_call(
        charcnn_rnn_kernel,
        out_shape=jax.ShapeDtypeStruct((n_pad, VOCAB_PAD), jnp.float32),
        grid_spec=pltpu.PrefetchScalarGridSpec(
            num_scalar_prefetch=0,
            grid=(n_pad // tn_eff,),
            in_specs=[pl.BlockSpec((tn_eff, L, EMB_DIM), lambda i: (i, 0, 0))]
                     + [full_spec(w) for w in weights],
            out_specs=pl.BlockSpec((tn_eff, VOCAB_PAD), lambda i: (i, 0)),
        ),
        compiler_params=pltpu.CompilerParams(
            dimension_semantics=("parallel",),
            vmem_limit_bytes=48 * 1024 * 1024),
    )(emb, *weights)

    # PyTorch returns [batch*seq_len, 1, word_vocab] (temporal axis collapsed to 1)
    return out[:N, :WORD_VOCAB_SIZE].reshape(N, 1, WORD_VOCAB_SIZE)


if __name__ == "__main__":
    key = jax.random.PRNGKey(0)
    pkey, xkey = jax.random.split(key)
    params = init_params(pkey)

    B, S, L = 2, 8, 16                      # batch, words per sample, chars per word
    prepared = prepare_weights(params, L)   # fused/padded/bf16 weights, built once
    x = jax.random.randint(xkey, (B, S, L), 0, VOCAB_SIZE, dtype=jnp.int32)

    out = charcnn_rnn_forward(x, prepared)
    jax.block_until_ready(out)

    assert out.shape == (B * S, 1, WORD_VOCAB_SIZE), out.shape
    assert bool(jnp.all(jnp.isfinite(out)))
    # log-softmax rows should sum to ~1 in probability space
    assert bool(jnp.allclose(jnp.sum(jnp.exp(out), axis=-1), 1.0, atol=1e-3))
    print("KERNEL_OK")
</pallas_src>

<mosaic_0001>
module attributes {stable_mosaic.version = 11 : i64} {
  func.func @charcnn_rnn_kernel(%arg0: i32, %arg1: memref<16x16x128xbf16, #tpu.memory_space<vmem>>, %arg2: memref<5x128x256xbf16, #tpu.memory_space<vmem>>, %arg3: memref<1x16x256xf32, #tpu.memory_space<vmem>>, %arg4: memref<1x256xf32, #tpu.memory_space<vmem>>, %arg5: memref<256x512xbf16, #tpu.memory_space<vmem>>, %arg6: memref<1x512xf32, #tpu.memory_space<vmem>>, %arg7: memref<256x768xbf16, #tpu.memory_space<vmem>>, %arg8: memref<1x768xf32, #tpu.memory_space<vmem>>, %arg9: memref<256x128xbf16, #tpu.memory_space<vmem>>, %arg10: memref<1x128xf32, #tpu.memory_space<vmem>>, %arg11: memref<16x128xf32, #tpu.memory_space<vmem>>) attributes {dimension_semantics = [#tpu.dimension_semantics<parallel>], iteration_bounds = array<i64: 1>, scalar_prefetch = 0 : i64, scratch_operands = 0 : i64, tpu.core_type = #tpu.core_type<tc>, window_params = [{transform_indices = @transform_0, window_bounds = array<i64: 16, 16, 128>}, {pipeline_mode = #tpu.pipeline_mode<synchronous>, transform_indices = @transform_1, window_bounds = array<i64: 5, 128, 256>}, {pipeline_mode = #tpu.pipeline_mode<synchronous>, transform_indices = @transform_2, window_bounds = array<i64: 1, 16, 256>}, {pipeline_mode = #tpu.pipeline_mode<synchronous>, transform_indices = @transform_3, window_bounds = array<i64: 1, 256>}, {pipeline_mode = #tpu.pipeline_mode<synchronous>, transform_indices = @transform_4, window_bounds = array<i64: 256, 512>}, {pipeline_mode = #tpu.pipeline_mode<synchronous>, transform_indices = @transform_5, window_bounds = array<i64: 1, 512>}, {pipeline_mode = #tpu.pipeline_mode<synchronous>, transform_indices = @transform_6, window_bounds = array<i64: 256, 768>}, {pipeline_mode = #tpu.pipeline_mode<synchronous>, transform_indices = @transform_7, window_bounds = array<i64: 1, 768>}, {pipeline_mode = #tpu.pipeline_mode<synchronous>, transform_indices = @transform_8, window_bounds = array<i64: 256, 128>}, {pipeline_mode = #tpu.pipeline_mode<synchronous>, transform_indices = @transform_9, window_bounds = array<i64: 1, 128>}, {transform_indices = @transform_10, window_bounds = array<i64: 16, 128>}]} {
    %c0 = arith.constant 0 : index
    %c0_0 = arith.constant 0 : index
    %c0_1 = arith.constant 0 : index
    %0 = vector.load %arg1[%c0, %c0_0, %c0_1] : memref<16x16x128xbf16, #tpu.memory_space<vmem>>, vector<16x16x128xbf16>
    %1 = vector.shape_cast %0 : vector<16x16x128xbf16> to vector<256x128xbf16>
    %2 = arith.extf %1 : vector<256x128xbf16> to vector<256x128xf32>
    %c0_2 = arith.constant 0 : index
    %c0_3 = arith.constant 0 : index
    %c0_4 = arith.constant 0 : index
    %3 = vector.load %arg2[%c0_2, %c0_3, %c0_4] : memref<5x128x256xbf16, #tpu.memory_space<vmem>>, vector<1x128x256xbf16>
    %4 = vector.shape_cast %3 : vector<1x128x256xbf16> to vector<128x256xbf16>
    %cst = arith.constant dense<0.000000e+00> : vector<256x256xf32>
    %5 = tpu.matmul %1, %4, %cst {dimension_numbers = #tpu.dot_dimension_numbers<[1], [0], [0], [1], [0, 0, 1, 1], [], []>} : vector<256x128xbf16>, vector<128x256xbf16>, vector<256x256xf32> -> vector<256x256xf32>
    %c255_i32 = arith.constant 255 : i32
    %6 = tpu.dynamic_rotate %2 by %c255_i32 dim 0 : vector<256x128xf32>, i32 -> vector<256x128xf32>
    %7 = arith.truncf %6 : vector<256x128xf32> to vector<256x128xbf16>
    %c1 = arith.constant 1 : index
    %c0_5 = arith.constant 0 : index
    %c0_6 = arith.constant 0 : index
    %8 = vector.load %arg2[%c1, %c0_5, %c0_6] : memref<5x128x256xbf16, #tpu.memory_space<vmem>>, vector<1x128x256xbf16>
    %9 = vector.shape_cast %8 : vector<1x128x256xbf16> to vector<128x256xbf16>
    %cst_7 = arith.constant dense<0.000000e+00> : vector<256x256xf32>
    %10 = tpu.matmul %7, %9, %cst_7 {dimension_numbers = #tpu.dot_dimension_numbers<[1], [0], [0], [1], [0, 0, 1, 1], [], []>} : vector<256x128xbf16>, vector<128x256xbf16>, vector<256x256xf32> -> vector<256x256xf32>
    %11 = arith.addf %5, %10 : vector<256x256xf32>
    %c254_i32 = arith.constant 254 : i32
    %12 = tpu.dynamic_rotate %2 by %c254_i32 dim 0 : vector<256x128xf32>, i32 -> vector<256x128xf32>
    %13 = arith.truncf %12 : vector<256x128xf32> to vector<256x128xbf16>
    %c2 = arith.constant 2 : index
    %c0_8 = arith.constant 0 : index
    %c0_9 = arith.constant 0 : index
    %14 = vector.load %arg2[%c2, %c0_8, %c0_9] : memref<5x128x256xbf16, #tpu.memory_space<vmem>>, vector<1x128x256xbf16>
    %15 = vector.shape_cast %14 : vector<1x128x256xbf16> to vector<128x256xbf16>
    %cst_10 = arith.constant dense<0.000000e+00> : vector<256x256xf32>
    %16 = tpu.matmul %13, %15, %cst_10 {dimension_numbers = #tpu.dot_dimension_numbers<[1], [0], [0], [1], [0, 0, 1, 1], [], []>} : vector<256x128xbf16>, vector<128x256xbf16>, vector<256x256xf32> -> vector<256x256xf32>
    %17 = arith.addf %11, %16 : vector<256x256xf32>
    %c253_i32 = arith.constant 253 : i32
    %18 = tpu.dynamic_rotate %2 by %c253_i32 dim 0 : vector<256x128xf32>, i32 -> vector<256x128xf32>
    %19 = arith.truncf %18 : vector<256x128xf32> to vector<256x128xbf16>
    %c3 = arith.constant 3 : index
    %c0_11 = arith.constant 0 : index
    %c0_12 = arith.constant 0 : index
    %20 = vector.load %arg2[%c3, %c0_11, %c0_12] : memref<5x128x256xbf16, #tpu.memory_space<vmem>>, vector<1x128x256xbf16>
    %21 = vector.shape_cast %20 : vector<1x128x256xbf16> to vector<128x256xbf16>
    %cst_13 = arith.constant dense<0.000000e+00> : vector<256x256xf32>
    %22 = tpu.matmul %19, %21, %cst_13 {dimension_numbers = #tpu.dot_dimension_numbers<[1], [0], [0], [1], [0, 0, 1, 1], [], []>} : vector<256x128xbf16>, vector<128x256xbf16>, vector<256x256xf32> -> vector<256x256xf32>
    %23 = arith.addf %17, %22 : vector<256x256xf32>
    %c252_i32 = arith.constant 252 : i32
    %24 = tpu.dynamic_rotate %2 by %c252_i32 dim 0 : vector<256x128xf32>, i32 -> vector<256x128xf32>
    %25 = arith.truncf %24 : vector<256x128xf32> to vector<256x128xbf16>
    %c4 = arith.constant 4 : index
    %c0_14 = arith.constant 0 : index
    %c0_15 = arith.constant 0 : index
    %26 = vector.load %arg2[%c4, %c0_14, %c0_15] : memref<5x128x256xbf16, #tpu.memory_space<vmem>>, vector<1x128x256xbf16>
    %27 = vector.shape_cast %26 : vector<1x128x256xbf16> to vector<128x256xbf16>
    %cst_16 = arith.constant dense<0.000000e+00> : vector<256x256xf32>
    %28 = tpu.matmul %25, %27, %cst_16 {dimension_numbers = #tpu.dot_dimension_numbers<[1], [0], [0], [1], [0, 0, 1, 1], [], []>} : vector<256x128xbf16>, vector<128x256xbf16>, vector<256x256xf32> -> vector<256x256xf32>
    %29 = arith.addf %23, %28 : vector<256x256xf32>
    %30 = vector.shape_cast %29 : vector<256x256xf32> to vector<16x16x256xf32>
    %c0_17 = arith.constant 0 : index
    %c0_18 = arith.constant 0 : index
    %c0_19 = arith.constant 0 : index
    %31 = vector.load %arg3[%c0_17, %c0_18, %c0_19] : memref<1x16x256xf32, #tpu.memory_space<vmem>>, vector<1x16x256xf32>
    %32 = vector.broadcast %31 : vector<1x16x256xf32> to vector<16x16x256xf32>
    %33 = arith.addf %30, %32 : vector<16x16x256xf32>
    %cst_20 = arith.constant dense<0xFF800000> : vector<16x256xf32>
    %34 = vector.multi_reduction <maximumf>, %33, %cst_20 [1] : vector<16x16x256xf32> to vector<16x256xf32>
    %c0_21 = arith.constant 0 : index
    %c0_22 = arith.constant 0 : index
    %35 = vector.load %arg4[%c0_21, %c0_22] : memref<1x256xf32, #tpu.memory_space<vmem>>, vector<1x256xf32>
    %36 = vector.broadcast %35 : vector<1x256xf32> to vector<16x256xf32>
    %37 = arith.addf %34, %36 : vector<16x256xf32>
    %cst_23 = arith.constant 0.000000e+00 : f32
    %38 = vector.broadcast %cst_23 : f32 to vector<16x256xf32>
    %39 = arith.maximumf %37, %38 : vector<16x256xf32>
    %40 = arith.truncf %39 : vector<16x256xf32> to vector<16x256xbf16>
    %c0_24 = arith.constant 0 : index
    %c0_25 = arith.constant 0 : index
    %41 = vector.load %arg5[%c0_24, %c0_25] : memref<256x512xbf16, #tpu.memory_space<vmem>>, vector<256x512xbf16>
    %cst_26 = arith.constant dense<0.000000e+00> : vector<16x512xf32>
    %42 = tpu.matmul %40, %41, %cst_26 {dimension_numbers = #tpu.dot_dimension_numbers<[1], [0], [0], [1], [0, 0, 1, 1], [], []>} : vector<16x256xbf16>, vector<256x512xbf16>, vector<16x512xf32> -> vector<16x512xf32>
    %c0_27 = arith.constant 0 : index
    %c0_28 = arith.constant 0 : index
    %43 = vector.load %arg6[%c0_27, %c0_28] : memref<1x512xf32, #tpu.memory_space<vmem>>, vector<1x512xf32>
    %44 = vector.broadcast %43 : vector<1x512xf32> to vector<16x512xf32>
    %45 = arith.addf %42, %44 : vector<16x512xf32>
    %46 = vector.extract_strided_slice %45 {offsets = [0, 0], sizes = [16, 256], strides = [1, 1]} : vector<16x512xf32> to vector<16x256xf32>
    %cst_29 = arith.constant 0.000000e+00 : f32
    %47 = vector.broadcast %cst_29 : f32 to vector<16x256xf32>
    %48 = arith.subf %47, %46 : vector<16x256xf32>
    %49 = math.exp %48 : vector<16x256xf32>
    %cst_30 = arith.constant 1.000000e+00 : f32
    %50 = vector.broadcast %cst_30 : f32 to vector<16x256xf32>
    %51 = arith.addf %50, %49 : vector<16x256xf32>
    %cst_31 = arith.constant 1.000000e+00 : f32
    %52 = vector.broadcast %cst_31 : f32 to vector<16x256xf32>
    %53 = arith.divf %52, %51 : vector<16x256xf32>
    %54 = vector.extract_strided_slice %45 {offsets = [0, 256], sizes = [16, 256], strides = [1, 1]} : vector<16x512xf32> to vector<16x256xf32>
    %cst_32 = arith.constant 0.000000e+00 : f32
    %55 = vector.broadcast %cst_32 : f32 to vector<16x256xf32>
    %56 = arith.maximumf %54, %55 : vector<16x256xf32>
    %57 = arith.mulf %53, %56 : vector<16x256xf32>
    %cst_33 = arith.constant 1.000000e+00 : f32
    %58 = vector.broadcast %cst_33 : f32 to vector<16x256xf32>
    %59 = arith.subf %58, %53 : vector<16x256xf32>
    %60 = arith.mulf %59, %39 : vector<16x256xf32>
    %61 = arith.addf %57, %60 : vector<16x256xf32>
    %62 = arith.truncf %61 : vector<16x256xf32> to vector<16x256xbf16>
    %c0_34 = arith.constant 0 : index
    %c0_35 = arith.constant 0 : index
    %63 = vector.load %arg7[%c0_34, %c0_35] : memref<256x768xbf16, #tpu.memory_space<vmem>>, vector<256x768xbf16>
    %cst_36 = arith.constant dense<0.000000e+00> : vector<16x768xf32>
    %64 = tpu.matmul %62, %63, %cst_36 {dimension_numbers = #tpu.dot_dimension_numbers<[1], [0], [0], [1], [0, 0, 1, 1], [], []>} : vector<16x256xbf16>, vector<256x768xbf16>, vector<16x768xf32> -> vector<16x768xf32>
    %c0_37 = arith.constant 0 : index
    %c0_38 = arith.constant 0 : index
    %65 = vector.load %arg8[%c0_37, %c0_38] : memref<1x768xf32, #tpu.memory_space<vmem>>, vector<1x768xf32>
    %66 = vector.broadcast %65 : vector<1x768xf32> to vector<16x768xf32>
    %67 = arith.addf %64, %66 : vector<16x768xf32>
    %68 = vector.extract_strided_slice %67 {offsets = [0, 0], sizes = [16, 256], strides = [1, 1]} : vector<16x768xf32> to vector<16x256xf32>
    %cst_39 = arith.constant 0.000000e+00 : f32
    %69 = vector.broadcast %cst_39 : f32 to vector<16x256xf32>
    %70 = arith.subf %69, %68 : vector<16x256xf32>
    %71 = math.exp %70 : vector<16x256xf32>
    %cst_40 = arith.constant 1.000000e+00 : f32
    %72 = vector.broadcast %cst_40 : f32 to vector<16x256xf32>
    %73 = arith.addf %72, %71 : vector<16x256xf32>
    %cst_41 = arith.constant 1.000000e+00 : f32
    %74 = vector.broadcast %cst_41 : f32 to vector<16x256xf32>
    %75 = arith.divf %74, %73 : vector<16x256xf32>
    %76 = vector.extract_strided_slice %67 {offsets = [0, 256], sizes = [16, 256], strides = [1, 1]} : vector<16x768xf32> to vector<16x256xf32>
    %77 = math.tanh %76 : vector<16x256xf32>
    %78 = vector.extract_strided_slice %67 {offsets = [0, 512], sizes = [16, 256], strides = [1, 1]} : vector<16x768xf32> to vector<16x256xf32>
    %cst_42 = arith.constant 0.000000e+00 : f32
    %79 = vector.broadcast %cst_42 : f32 to vector<16x256xf32>
    %80 = arith.subf %79, %78 : vector<16x256xf32>
    %81 = math.exp %80 : vector<16x256xf32>
    %cst_43 = arith.constant 1.000000e+00 : f32
    %82 = vector.broadcast %cst_43 : f32 to vector<16x256xf32>
    %83 = arith.addf %82, %81 : vector<16x256xf32>
    %cst_44 = arith.constant 1.000000e+00 : f32
    %84 = vector.broadcast %cst_44 : f32 to vector<16x256xf32>
    %85 = arith.divf %84, %83 : vector<16x256xf32>
    %86 = arith.mulf %75, %77 : vector<16x256xf32>
    %87 = math.tanh %86 : vector<16x256xf32>
    %88 = arith.mulf %85, %87 : vector<16x256xf32>
    %89 = arith.truncf %88 : vector<16x256xf32> to vector<16x256xbf16>
    %c0_45 = arith.constant 0 : index
    %c0_46 = arith.constant 0 : index
    %90 = vector.load %arg9[%c0_45, %c0_46] : memref<256x128xbf16, #tpu.memory_space<vmem>>, vector<256x128xbf16>
    %cst_47 = arith.constant dense<0.000000e+00> : vector<16x128xf32>
    %91 = tpu.matmul %89, %90, %cst_47 {dimension_numbers = #tpu.dot_dimension_numbers<[1], [0], [0], [1], [0, 0, 1, 1], [], []>} : vector<16x256xbf16>, vector<256x128xbf16>, vector<16x128xf32> -> vector<16x128xf32>
    %c0_48 = arith.constant 0 : index
    %c0_49 = arith.constant 0 : index
    %92 = vector.load %arg10[%c0_48, %c0_49] : memref<1x128xf32, #tpu.memory_space<vmem>>, vector<1x128xf32>
    %93 = vector.broadcast %92 : vector<1x128xf32> to vector<16x128xf32>
    %94 = arith.addf %91, %93 : vector<16x128xf32>
    %cst_50 = arith.constant dense<0xFF800000> : vector<16xf32>
    %95 = vector.multi_reduction <maximumf>, %94, %cst_50 [1] : vector<16x128xf32> to vector<16xf32>
    %96 = vector.shape_cast %95 : vector<16xf32> to vector<16x1xf32>
    %97 = vector.broadcast %96 : vector<16x1xf32> to vector<16x128xf32>
    %98 = arith.subf %94, %97 : vector<16x128xf32>
    %99 = math.exp %98 : vector<16x128xf32>
    %cst_51 = arith.constant dense<0.000000e+00> : vector<16xf32>
    %100 = vector.multi_reduction <add>, %99, %cst_51 [1] : vector<16x128xf32> to vector<16xf32>
    %101 = vector.shape_cast %100 : vector<16xf32> to vector<16x1xf32>
    %102 = math.log %101 : vector<16x1xf32>
    %103 = vector.broadcast %102 : vector<16x1xf32> to vector<16x128xf32>
    %104 = arith.subf %98, %103 : vector<16x128xf32>
    %c0_52 = arith.constant 0 : index
    %c0_53 = arith.constant 0 : index
    %105 = vector.load %arg11[%c0_52, %c0_53] : memref<16x128xf32, #tpu.memory_space<vmem>>, vector<16x128xf32>
    tpu.vector_store %arg11[%c0_52, %c0_53], %104 {strides = array<i32>} : memref<16x128xf32, #tpu.memory_space<vmem>>, vector<16x128xf32>,
    return
  }
  func.func @transform_0(%arg0: i32) -> (i32, i32, i32) {
    %c0_i32 = arith.constant 0 : i32
    %c0_i32_0 = arith.constant 0 : i32
    %c0_i32_1 = arith.constant 0 : i32
    return %arg0, %c0_i32, %c0_i32_0 : i32, i32, i32
  }
  func.func @transform_1(%arg0: i32) -> (i32, i32, i32) {
    %c0_i32 = arith.constant 0 : i32
    %c0_i32_0 = arith.constant 0 : i32
    %c0_i32_1 = arith.constant 0 : i32
    %c0_i32_2 = arith.constant 0 : i32
    return %c0_i32, %c0_i32_0, %c0_i32_1 : i32, i32, i32
  }
  func.func @transform_2(%arg0: i32) -> (i32, i32, i32) {
    %c0_i32 = arith.constant 0 : i32
    %c0_i32_0 = arith.constant 0 : i32
    %c0_i32_1 = arith.constant 0 : i32
    %c0_i32_2 = arith.constant 0 : i32
    return %c0_i32, %c0_i32_0, %c0_i32_1 : i32, i32, i32
  }
  func.func @transform_3(%arg0: i32) -> (i32, i32) {
    %c0_i32 = arith.constant 0 : i32
    %c0_i32_0 = arith.constant 0 : i32
    %c0_i32_1 = arith.constant 0 : i32
    return %c0_i32, %c0_i32_0 : i32, i32
  }
  func.func @transform_4(%arg0: i32) -> (i32, i32) {
    %c0_i32 = arith.constant 0 : i32
    %c0_i32_0 = arith.constant 0 : i32
    %c0_i32_1 = arith.constant 0 : i32
    return %c0_i32, %c0_i32_0 : i32, i32
  }
  func.func @transform_5(%arg0: i32) -> (i32, i32) {
    %c0_i32 = arith.constant 0 : i32
    %c0_i32_0 = arith.constant 0 : i32
    %c0_i32_1 = arith.constant 0 : i32
    return %c0_i32, %c0_i32_0 : i32, i32
  }
  func.func @transform_6(%arg0: i32) -> (i32, i32) {
    %c0_i32 = arith.constant 0 : i32
    %c0_i32_0 = arith.constant 0 : i32
    %c0_i32_1 = arith.constant 0 : i32
    return %c0_i32, %c0_i32_0 : i32, i32
  }
  func.func @transform_7(%arg0: i32) -> (i32, i32) {
    %c0_i32 = arith.constant 0 : i32
    %c0_i32_0 = arith.constant 0 : i32
    %c0_i32_1 = arith.constant 0 : i32
    return %c0_i32, %c0_i32_0 : i32, i32
  }
  func.func @transform_8(%arg0: i32) -> (i32, i32) {
    %c0_i32 = arith.constant 0 : i32
    %c0_i32_0 = arith.constant 0 : i32
    %c0_i32_1 = arith.constant 0 : i32
    return %c0_i32, %c0_i32_0 : i32, i32
  }
  func.func @transform_9(%arg0: i32) -> (i32, i32) {
    %c0_i32 = arith.constant 0 : i32
    %c0_i32_0 = arith.constant 0 : i32
    %c0_i32_1 = arith.constant 0 : i32
    return %c0_i32, %c0_i32_0 : i32, i32
  }
  func.func @transform_10(%arg0: i32) -> (i32, i32) {
    %c0_i32 = arith.constant 0 : i32
    %c0_i32_0 = arith.constant 0 : i32
    return %arg0, %c0_i32 : i32, i32
  }
}

</mosaic_0001>

<bundles_post_ra>
// kernel: charcnn_rnn_forward.1
= control target key start
LH: loop header
LB: loop body
LE: loop exit
PB: predicated region body
PF: predicated region fallthrough
CT: control target
= control target key end

     0   :  { %15 = vsyncpa [#allocation3], 0  ;;  %s7478_s0 = inlined_call_operand.vmem [shape: bf16[16,16,128], index: 0, kind: input, shape index: {}]   ;;  %s7479_s1 = inlined_call_operand.vmem [shape: bf16[5,128,256], index: 1, kind: input, shape index: {}]   ;;  %s7480_s2 = inlined_call_operand.vmem [shape: f32[1,16,256], index: 2, kind: input, shape index: {}]   ;;  %s7481_s3 = inlined_call_operand.vmem [shape: f32[1,256], index: 3, kind: input, shape index: {}]   ;;  %s7482_s4 = inlined_call_operand.hbm [shape: bf16[256,512], index: 4, kind: input, shape index: {}]   ;;  %s7483_s5 = inlined_call_operand.vmem [shape: f32[1,512], index: 5, kind: input, shape index: {}]   ;;  %s7484_s6 = inlined_call_operand.vmem [shape: bf16[256,768], index: 6, kind: input, shape index: {}]   ;;  %s7485_s7 = inlined_call_operand.vmem [shape: f32[1,768], index: 7, kind: input, shape index: {}]   ;;  %s7486_s8 = inlined_call_operand.hbm [shape: bf16[256,128], index: 8, kind: input, shape index: {}]   ;;  %s7487_s9 = inlined_call_operand.vmem [shape: f32[1,128], index: 9, kind: input, shape index: {}]   ;;  %s7488_s10 = inlined_call_operand.vmem [shape: f32[16,128], index: 10, kind: output, shape index: {}]  }
   0x1   :  { %16 = vsyncpa [#allocation5], 0  ;;  %s5513_s13 = smov [#allocation2]   ;;  %s5465_s17 = scalar_lea.hbm %s7482_s4, 8192 }
   0x2   :  { %s30_s14 = sshll.u32 %s5513_s13, 4  ;;  %p5466_p0 = scmp.ne.s32.totalorder %s7482_s4, %s5465_s17  ;;  %s31_s14 = int_to_ptr.vmem [resolvable:$true] %s30_s14 }
   0x3   :  { %p5469_p1 = scmp.lt.u32.totalorder %s5465_s17, %s7482_s4 }
   0x5   :  { %p5471_p2 = pnand %p5469_p1, %p5466_p0 }
   0x7   :  { %5474 = shalt.err (!%p5471_p2)
}
   0x8   :  { %s5475_s22 = scalar_lea.vmem %s31_s14, 8192  ;;  %p5480_p4 = scmp.lt.s32.totalorder %s31_s14, %s31_s14 }
   0x9   :  { %p5476_p3 = scmp.ne.s32.totalorder %s31_s14, %s5475_s22  ;;  %p5481_p5 = scmp.lt.s32.totalorder %s5475_s22, %s5475_s22 }
   0xb   :  { %p5482_p6 = por %p5481_p5, %p5480_p4 }
   0xd   :  { %p5483_p7 = pnand %p5482_p6, %p5476_p3 }
   0xf   :  { %5486 = shalt.err (!%p5483_p7)
}
  0x10   :  { %s5514_s23 = smov 256   ;;  %s5515_s24 = smov 16  }
  0x11   :  { %36 = dma.hbm_to_vmem [thread:$0]  %s7482_s4, 8192, %s31_s14, [#allocation3], %s5514_s23, %s5514_s23, %s5515_s24  }
  0x12   :  { %s5516_s27 = smov [#allocation4]   ;;  %s5487_s11 = scalar_lea.hbm %s7486_s8, 2048 }
  0x13   :  { %s48_s28 = sshll.u32 %s5516_s27, 4  ;;  %p5488_p8 = scmp.ne.s32.totalorder %s7486_s8, %s5487_s11  ;;  %s49_s28 = int_to_ptr.vmem [resolvable:$true] %s48_s28 }
  0x14   :  { %p5491_p9 = scmp.lt.u32.totalorder %s5487_s11, %s7486_s8 }
  0x16   :  { %p5493_p10 = pnand %p5491_p9, %p5488_p8 }
  0x18   :  { %5496 = shalt.err (!%p5493_p10)
}
  0x19   :  { %s5497_s17 = scalar_lea.vmem %s49_s28, 2048  ;;  %p5502_p12 = scmp.lt.s32.totalorder %s49_s28, %s49_s28 }
  0x1a   :  { %p5498_p11 = scmp.ne.s32.totalorder %s49_s28, %s5497_s17  ;;  %p5503_p13 = scmp.lt.s32.totalorder %s5497_s17, %s5497_s17 }
  0x1c   :  { %p5504_p0 = por %p5503_p13, %p5502_p12 }
  0x1e   :  { %p5505_p1 = pnand %p5504_p0, %p5498_p11 }
  0x20   :  { %5508 = shalt.err (!%p5505_p1)
}
  0x21   :  { %s5517_s4 = smov 64   ;;  %s5518_s14 = smov 4  }
  0x22   :  { %54 = dma.hbm_to_vmem [thread:$0]  %s7486_s8, 2048, %s49_s28, [#allocation5], %s5517_s4, %s5517_s4, %s5518_s14  }
  0x23   :  { %5509 = dma.done.wait [#allocation3], 8192  }
  0x24   :  { %5510 = vsyncadd [#allocation3], 4294959104 }
  0x25   :  { %5511 = dma.done.wait [#allocation5], 2048  }
  0x26   :  { %5512 = vsyncadd [#allocation5], 4294965248  ;;  %v5519_v0 = vmov 0   ;;  %v4981_v1 = vld [vmem:[%s7479_s1 + $0x4] ss:$8 sps:$4 sm:$0xff]   ;;  %v5685_v26 = vld [vmem:[%s7478_s0 + $0x10] sm:$0xff]   ;;  %v176_v49 = vlaneseq }
  0x27   :  { %725 = vmatprep.mubr.bf16.mxu0 %v5519_v0  ;;  %356 = vmatprep.mubr.bf16.mxu1 %v5519_v0  ;;  %v4983_v2 = vld [vmem:[%s7479_s1] ss:$8 sps:$4 sm:$0xff]   ;;  %v4984_v3 = vld [vmem:[%s7479_s1 + $0x14] ss:$8 sps:$4 sm:$0xff]   ;;  %v4986_v4 = vld [vmem:[%s7479_s1 + $0x10] ss:$8 sps:$4 sm:$0xff]   ;;  %v5830_v59 = vunpack.c.l.bf16 %v5685_v26 }
  0x28   :  { %693 = vmatprep.subr.bf16.mxu0 %v4981_v1  ;;  %v4987_v5 = vld [vmem:[%s7479_s1 + $0x24] ss:$8 sps:$4 sm:$0xff]   ;;  %v4989_v6 = vld [vmem:[%s7479_s1 + $0x20] ss:$8 sps:$4 sm:$0xff]   ;;  %v4990_v7 = vld [vmem:[%s7479_s1 + $0x34] ss:$8 sps:$4 sm:$0xff]  }
  0x29   :  { %694 = vmatpush1.bf16.msra.mxu0 %v4983_v2  ;;  %v4992_v8 = vld [vmem:[%s7479_s1 + $0x30] ss:$8 sps:$4 sm:$0xff]   ;;  %v4993_v9 = vld [vmem:[%s7479_s1 + $0x44] ss:$8 sps:$4 sm:$0xff]   ;;  %v4995_v10 = vld [vmem:[%s7479_s1 + $0x40] ss:$8 sps:$4 sm:$0xff]  }
  0x2a   :  { %695 = vmatprep.subr.bf16.mxu0 %v4984_v3  ;;  %v4996_v11 = vld [vmem:[%s7479_s1 + $0x54] ss:$8 sps:$4 sm:$0xff]   ;;  %v4998_v12 = vld [vmem:[%s7479_s1 + $0x50] ss:$8 sps:$4 sm:$0xff]   ;;  %v4999_v13 = vld [vmem:[%s7479_s1 + $0x64] ss:$8 sps:$4 sm:$0xff]  }
  0x2b   :  { %v5001_v14 = vld [vmem:[%s7479_s1 + $0x60] ss:$8 sps:$4 sm:$0xff]   ;;  %v5002_v15 = vld [vmem:[%s7479_s1 + $0x74] ss:$8 sps:$4 sm:$0xff]   ;;  %v5004_v16 = vld [vmem:[%s7479_s1 + $0x70] ss:$8 sps:$4 sm:$0xff]  }
  0x2c   :  { %v5652_v17 = vld [vmem:[%s7478_s0] sm:$0xff]   ;;  %v5013_v20 = vld [vmem:[%s7479_s1 + $0x114] ss:$8 sps:$4 sm:$0xff]   ;;  %v5666_v21 = vld [vmem:[%s7478_s0 + $0x8] sm:$0xff]   ;;  %v5819_v54 = vshrl.u32 %v176_v49, 7  ;;  %v890_v2 = vrot.slane %v5830_v59, 2 }
  0x2d   :  { %696 = vmatpush1.bf16.msra.mxu0 %v4986_v4  ;;  %v5008_v18 = vld [vmem:[%s7479_s1 + $0x104] ss:$8 sps:$4 sm:$0xff]   ;;  %v5006_v19 = vld [vmem:[%s7479_s1 + $0x100] ss:$8 sps:$4 sm:$0xff]   ;;  %v5011_v22 = vld [vmem:[%s7479_s1 + $0x110] ss:$8 sps:$4 sm:$0xff]   ;;  %v5805_v50 = vunpack.c.l.bf16 %v5652_v17  ;;  %v5808_v51 = vunpack.c.h.bf16 %v5652_v17  ;;  %v5811_v52 = vunpack.c.l.bf16 %v5666_v21  ;;  %v5827_v58 = vunpack.c.h.bf16 %v5666_v21 }
  0x2e   :  { %697 = vmatprep.subr.bf16.mxu0 %v4987_v5  ;;  %v5018_v23 = vld [vmem:[%s7479_s1 + $0x124] ss:$8 sps:$4 sm:$0xff]   ;;  %v5016_v24 = vld [vmem:[%s7479_s1 + $0x120] ss:$8 sps:$4 sm:$0xff]   ;;  %v5023_v25 = vld [vmem:[%s7479_s1 + $0x134] ss:$8 sps:$4 sm:$0xff]   ;;  %v5848_v4 = vunpack.c.h.bf16 %v5685_v26 }
  0x2f   :  { %v5021_v27 = vld [vmem:[%s7479_s1 + $0x130] ss:$8 sps:$4 sm:$0xff]   ;;  %v5028_v28 = vld [vmem:[%s7479_s1 + $0x144] ss:$8 sps:$4 sm:$0xff]   ;;  %v5026_v29 = vld [vmem:[%s7479_s1 + $0x140] ss:$8 sps:$4 sm:$0xff]  }
  0x30   :  { %v5033_v30 = vld [vmem:[%s7479_s1 + $0x154] ss:$8 sps:$4 sm:$0xff]   ;;  %v5031_v32 = vld [vmem:[%s7479_s1 + $0x150] ss:$8 sps:$4 sm:$0xff]   ;;  %v5038_v33 = vld [vmem:[%s7479_s1 + $0x164] ss:$8 sps:$4 sm:$0xff]  }
  0x31   :  { %698 = vmatpush1.bf16.msra.mxu0 %v4989_v6  ;;  %v5704_v31 = vld [vmem:[%s7478_s0 + $0x18] sm:$0xff]   ;;  %v5036_v34 = vld [vmem:[%s7479_s1 + $0x160] ss:$8 sps:$4 sm:$0xff]   ;;  %v5047_v38 = vld [vmem:[%s7479_s1 + $0x184] ss:$8 sps:$4 sm:$0xff]   ;;  %7499 = vst [vmem:[#allocation8_spill] sm:$0xff] %v5819_v54 }
  0x32   :  { %699 = vmatprep.subr.bf16.mxu0 %v4990_v7  ;;  %v5043_v35 = vld [vmem:[%s7479_s1 + $0x174] ss:$8 sps:$4 sm:$0xff]   ;;  %v5723_v36 = vld [vmem:[%s7478_s0 + $0x20] sm:$0xff]   ;;  %v5041_v37 = vld [vmem:[%s7479_s1 + $0x170] ss:$8 sps:$4 sm:$0xff]   ;;  %v886_v55 = vrot.slane %v5805_v50, 2  ;;  %v5851_v5 = vunpack.c.l.bf16 %v5704_v31 }
  0x33   :  { %v5737_v39 = vld [vmem:[%s7478_s0 + $0x28] sm:$0xff]   ;;  %v5743_v40 = vld [vmem:[%s7478_s0 + $0x30] sm:$0xff]   ;;  %v5751_v41 = vld [vmem:[%s7478_s0 + $0x38] sm:$0xff]   ;;  %v887_v56 = vrot.slane %v5808_v51, 2  ;;  %v888_v57 = vrot.slane %v5811_v52, 2  ;;  %vm918_vm0 = vcmp.lt.s32.totalorder %v5819_v54, 6 }
  0x34   :  { %v5757_v42 = vld [vmem:[%s7478_s0 + $0x40] sm:$0xff]   ;;  %v5765_v43 = vld [vmem:[%s7478_s0 + $0x48] sm:$0xff]   ;;  %v5773_v44 = vld [vmem:[%s7478_s0 + $0x50] sm:$0xff]   ;;  %v889_v1 = vrot.slane %v5827_v58, 2  ;;  %vm1353_vm1 = vcmp.lt.s32.totalorder %v5819_v54, 5  ;;  %vm178_vm2 = vcmp.lt.s32.totalorder %v5819_v54, 7 }
  0x35   :  { %700 = vmatpush1.bf16.msra.mxu0 %v4992_v8  ;;  %v5780_v45 = vld [vmem:[%s7478_s0 + $0x58] sm:$0xff]   ;;  %v5787_v46 = vld [vmem:[%s7478_s0 + $0x60] sm:$0xff]   ;;  %v5794_v47 = vld [vmem:[%s7478_s0 + $0x68] sm:$0xff]   ;;  %v948_v60 = vsel %vm918_vm0, %v887_v56, %v888_v57  ;;  %v949_v61 = vsel %vm918_vm0, %v886_v55, %v887_v56  ;;  %vm1788_vm3 = vcmp.lt.s32.totalorder %v5819_v54, 4  ;;  %vm2742_vm4 = vcmask 1041409  }
  0x36   :  { %701 = vmatprep.subr.bf16.mxu0 %v4993_v9  ;;  %v5801_v48 = vld [vmem:[%s7478_s0 + $0x70] sm:$0xff]   ;;  %v5817_v53 = vld [vmem:[%s7478_s0 + $0x78] sm:$0xff]   ;;  %v951_v62 = vpack.c.bf16 %v948_v60, %v949_v61  ;;  %v5045_v63 = vld [vmem:[%s7479_s1 + $0x180] ss:$8 sps:$4 sm:$0xff]   ;;  %v946_v6 = vsel %vm918_vm0, %v889_v1, %v890_v2  ;;  %v947_v7 = vsel %vm918_vm0, %v888_v57, %v889_v1  ;;  %v5945_v1 = vunpack.c.l.bf16 %v5751_v41 }
  0x37   :  { %v5050_v3 = vld [vmem:[%s7479_s1 + $0x194] ss:$8 sps:$4 sm:$0xff]   ;;  %v5048_v8 = vld [vmem:[%s7479_s1 + $0x190] ss:$8 sps:$4 sm:$0xff]   ;;  %v5053_v9 = vld [vmem:[%s7479_s1 + $0x1a4] ss:$8 sps:$4 sm:$0xff]  }
  0x38   :  { %v5066_v57 = vld [vmem:[%s7479_s1 + $0x1f0] ss:$8 sps:$4 sm:$0xff]   ;;  %vm2745_vm5 = vcmask 1042434   ;;  %vm2748_vm6 = vcmask 1043459   ;;  %vm2751_vm7 = vcmask 1044484   ;;  %vm2754_vm8 = vcmask 1045509  }
  0x39   :  { %702 = vmatpush1.bf16.msra.mxu0 %v4995_v10  ;;  %v952_v10 = vpack.c.bf16 %v946_v6, %v947_v7  ;;  %vm2757_vm9 = vcmask 1046534   ;;  %vm2760_vm10 = vcmask 1047559  }
  0x3a   :  { %703 = vmatprep.subr.bf16.mxu0 %v4996_v11  ;;  %v891_v11 = vrot.slane %v5848_v4, 2 }
  0x3d   :  { %704 = vmatpush1.bf16.msra.mxu0 %v4998_v12  ;;  %v892_v12 = vrot.slane %v5851_v5, 2 }
  0x3e   :  { %705 = vmatprep.subr.bf16.mxu0 %v4999_v13  ;;  %v5051_v13 = vld [vmem:[%s7479_s1 + $0x1a0] ss:$8 sps:$4 sm:$0xff]  }
  0x41   :  { %706 = vmatpush1.bf16.msra.mxu0 %v5001_v14  ;;  %v5056_v14 = vld [vmem:[%s7479_s1 + $0x1b4] ss:$8 sps:$4 sm:$0xff]  }
  0x42   :  { %707 = vmatprep.subr.bf16.mxu0 %v5002_v15  ;;  %v5873_v15 = vunpack.c.h.bf16 %v5704_v31 }
  0x45   :  { %708 = vmatpush1.bf16.msra.mxu0 %v5004_v16  ;;  %v5876_v16 = vunpack.c.l.bf16 %v5723_v36 }
  0x46   :  { %1064 = vmatprep.subr.bf16.mxu0 %v5008_v18  ;;  %v945_v18 = vsel %vm918_vm0, %v890_v2, %v891_v11 }
  0x48   :  { %726 = vmatmul.mubr.bf16.vlgmr.msra.gmra.mrb[0].mxu0 %v5652_v17  ;;  %v944_v17 = vsel %vm918_vm0, %v891_v11, %v892_v12 }
  0x49   :  { %1065 = vmatpush1.bf16.msra.mxu0 %v5006_v19  ;;  %735 = vmatprep.mubr.bf16.mxu0 %v5519_v0  ;;  %v5054_v19 = vld [vmem:[%s7479_s1 + $0x1b0] ss:$8 sps:$4 sm:$0xff]  }
  0x4a   :  { %1066 = vmatprep.subr.bf16.mxu0 %v5013_v20  ;;  %v5059_v20 = vld [vmem:[%s7479_s1 + $0x1c4] ss:$8 sps:$4 sm:$0xff]  }
  0x4d   :  { %1067 = vmatpush1.bf16.msra.mxu0 %v5011_v22  ;;  %v893_v22 = vrot.slane %v5873_v15, 2 }
  0x4e   :  { %1068 = vmatprep.subr.bf16.mxu0 %v5018_v23  ;;  %v894_v23 = vrot.slane %v5876_v16, 2 }
  0x50   :  { %736 = vmatmul.mubr.bf16.gmra.mrb[4].mxu0 %v5666_v21  ;;  %v953_v21 = vpack.c.bf16 %v944_v17, %v945_v18  ;;  %v5971_v17 = vunpack.c.l.bf16 %v5765_v43 }
  0x51   :  { %745 = vmatprep.mubr.bf16.mxu0 %v5519_v0  ;;  %1069 = vmatpush1.bf16.msra.mxu0 %v5016_v24  ;;  %v5057_v24 = vld [vmem:[%s7479_s1 + $0x1c0] ss:$8 sps:$4 sm:$0xff]  }
  0x52   :  { %1070 = vmatprep.subr.bf16.mxu0 %v5023_v25  ;;  %v5062_v25 = vld [vmem:[%s7479_s1 + $0x1d4] ss:$8 sps:$4 sm:$0xff]  }
  0x55   :  { %1071 = vmatpush1.bf16.msra.mxu0 %v5021_v27  ;;  %v5901_v27 = vunpack.c.l.bf16 %v5737_v39 }
  0x56   :  { %1072 = vmatprep.subr.bf16.mxu0 %v5028_v28  ;;  %v942_v28 = vsel %vm918_vm0, %v893_v22, %v894_v23 }
  0x58   :  { %746 = vmatmul.mubr.bf16.gmra.mrb[8].mxu0 %v5685_v26  ;;  %v5898_v26 = vunpack.c.h.bf16 %v5723_v36 }
  0x59   :  { %755 = vmatprep.mubr.bf16.mxu0 %v5519_v0  ;;  %1073 = vmatpush1.bf16.msra.mxu0 %v5026_v29  ;;  %v943_v29 = vsel %vm918_vm0, %v892_v12, %v893_v22  ;;  %v904_v22 = vrot.slane %v5971_v17, 2 }
  0x5a   :  { %1074 = vmatprep.subr.bf16.mxu0 %v5033_v30  ;;  %v5060_v30 = vld [vmem:[%s7479_s1 + $0x1d0] ss:$8 sps:$4 sm:$0xff]  }
  0x5d   :  { %1075 = vmatpush1.bf16.msra.mxu0 %v5031_v32  ;;  %v954_v32 = vpack.c.bf16 %v942_v28, %v943_v29 }
  0x5e   :  { %1076 = vmatprep.subr.bf16.mxu0 %v5038_v33  ;;  %v895_v33 = vrot.slane %v5898_v26, 2 }
  0x60   :  { %756 = vmatmul.mubr.bf16.gmra.mrb[12].mxu0 %v5704_v31  ;;  %v5065_v31 = vld [vmem:[%s7479_s1 + $0x1e4] ss:$8 sps:$4 sm:$0xff]   ;;  %v941_v56 = vsel %vm918_vm0, %v894_v23, %v895_v33  ;;  %v5984_v23 = vunpack.c.l.bf16 %v5773_v44 }
  0x61   :  { %765 = vmatprep.mubr.bf16.mxu0 %v5519_v0  ;;  %1077 = vmatpush1.bf16.msra.mxu0 %v5036_v34  ;;  %v896_v34 = vrot.slane %v5901_v27, 2 }
  0x62   :  { %1078 = vmatprep.subr.bf16.mxu0 %v5043_v35  ;;  %v5063_v35 = vld [vmem:[%s7479_s1 + $0x1e0] ss:$8 sps:$4 sm:$0xff]  }
  0x63   :  { %v940_v49 = vsel %vm918_vm0, %v895_v33, %v896_v34 }
  0x64   :  { %v955_v60 = vpack.c.bf16 %v940_v49, %v941_v56  ;;  %v6010_v49 = vunpack.c.l.bf16 %v5787_v46 }
  0x65   :  { %1079 = vmatpush1.bf16.msra.mxu0 %v5041_v37  ;;  %v5923_v37 = vunpack.c.h.bf16 %v5737_v39 }
  0x66   :  { %1499 = vmatprep.subr.bf16.mxu0 %v5047_v38  ;;  %v5926_v38 = vunpack.c.l.bf16 %v5743_v40 }
  0x67   :  { %v897_v61 = vrot.slane %v5923_v37, 2 }
  0x68   :  { %766 = vmatmul.mubr.bf16.gmra.mrb[16].mxu0 %v5723_v36  ;;  %v5068_v36 = vld [vmem:[%s7479_s1 + $0x1f4] ss:$8 sps:$4 sm:$0xff]  }
  0x69   :  { %775 = vmatprep.mubr.bf16.mxu0 %v5519_v0 }
  0x70   :  { %776 = vmatmul.mubr.bf16.gmra.mrb[20].mxu0 %v5737_v39  ;;  %v5071_v39 = vld [vmem:[%s7479_s1 + $0x204] ss:$8 sps:$4 sm:$0xff]  }
  0x71   :  { %785 = vmatprep.mubr.bf16.mxu0 %v5519_v0 }
  0x78   :  { %786 = vmatmul.mubr.bf16.gmra.mrb[24].mxu0 %v5743_v40 }
  0x79   :  { %795 = vmatprep.mubr.bf16.mxu0 %v5519_v0 }
  0x80   :  { %796 = vmatmul.mubr.bf16.gmra.mrb[28].mxu0 %v5751_v41 }
  0x81   :  { %805 = vmatprep.mubr.bf16.mxu0 %v5519_v0 }
  0x88   :  { %806 = vmatmul.mubr.bf16.gmra.mrb[32].mxu0 %v5757_v42 }
  0x89   :  { %815 = vmatprep.mubr.bf16.mxu0 %v5519_v0 }
  0x90   :  { %816 = vmatmul.mubr.bf16.gmra.mrb[36].mxu0 %v5765_v43 }
  0x91   :  { %825 = vmatprep.mubr.bf16.mxu0 %v5519_v0 }
  0x98   :  { %826 = vmatmul.mubr.bf16.gmra.mrb[40].mxu0 %v5773_v44 }
  0x99   :  { %835 = vmatprep.mubr.bf16.mxu0 %v5519_v0 }
  0xa0   :  { %836 = vmatmul.mubr.bf16.gmra.mrb[44].mxu0 %v5780_v45 }
  0xa1   :  { %845 = vmatprep.mubr.bf16.mxu0 %v5519_v0 }
  0xa8   :  { %846 = vmatmul.mubr.bf16.gmra.mrb[48].mxu0 %v5787_v46 }
  0xa9   :  { %855 = vmatprep.mubr.bf16.mxu0 %v5519_v0 }
  0xb0   :  { %856 = vmatmul.mubr.bf16.gmra.mrb[52].mxu0 %v5794_v47 }
  0xb1   :  { %865 = vmatprep.mubr.bf16.mxu0 %v5519_v0 }
  0xb8   :  { %866 = vmatmul.mubr.bf16.gmra.mrb[56].mxu0 %v5801_v48 }
  0xb9   :  { %875 = vmatprep.mubr.bf16.mxu0 %v5519_v0 }
  0xc0   :  { %876 = vmatmul.mubr.bf16.gmra.mrb[60].mxu0 %v5817_v53 }
  0xc1   :  { %1096 = vmatprep.mubr.bf16.mxu0 %v5519_v0 }
  0xc8   :  { %1097 = vmatmul.mubr.bf16.vlgmr.msra.gmra.mrb[0].mxu0 %v951_v62  ;;  %v898_v62 = vrot.slane %v5926_v38, 2 }
  0xc9   :  { %1500 = vmatpush1.bf16.msra.mxu0 %v5045_v63  ;;  %1106 = vmatprep.mubr.bf16.mxu0 %v5519_v0  ;;  %v5942_v63 = vunpack.c.h.bf16 %v5743_v40  ;;  %v5955_v40 = vunpack.c.h.bf16 %v5751_v41  ;;  %v5968_v41 = vunpack.c.h.bf16 %v5757_v42 }
  0xca   :  { %1501 = vmatprep.subr.bf16.mxu0 %v5050_v3  ;;  %v938_v2 = vsel %vm918_vm0, %v897_v61, %v898_v62  ;;  %v939_v3 = vsel %vm918_vm0, %v896_v34, %v897_v61  ;;  %v910_v61 = vrot.slane %v6010_v49, 2 }
  0xcb   :  { %v956_v6 = vpack.c.bf16 %v938_v2, %v939_v3  ;;  %v899_v7 = vrot.slane %v5942_v63, 2 }
  0xcd   :  { %1502 = vmatpush1.bf16.msra.mxu0 %v5048_v8  ;;  %v900_v8 = vrot.slane %v5945_v1, 2  ;;  %v937_v11 = vsel %vm918_vm0, %v898_v62, %v899_v7  ;;  %v6023_v62 = vunpack.c.l.bf16 %v5794_v47 }
  0xce   :  { %1503 = vmatprep.subr.bf16.mxu0 %v5053_v9  ;;  %v5958_v9 = vunpack.c.l.bf16 %v5757_v42  ;;  %v5981_v42 = vunpack.c.h.bf16 %v5765_v43  ;;  %v5994_v43 = vunpack.c.h.bf16 %v5773_v44  ;;  %v6007_v44 = vunpack.c.h.bf16 %v5780_v45 }
  0xd0   :  { %1107 = vmatmul.mubr.bf16.gmra.mrb[4].mxu0 %v952_v10  ;;  %v936_v10 = vsel %vm918_vm0, %v899_v7, %v900_v8  ;;  %v905_v29 = vrot.slane %v5981_v42, 2 }
  0xd1   :  { %1116 = vmatprep.mubr.bf16.mxu0 %v5519_v0  ;;  %1504 = vmatpush1.bf16.msra.mxu0 %v5051_v13  ;;  %v957_v12 = vpack.c.bf16 %v936_v10, %v937_v11  ;;  %v901_v13 = vrot.slane %v5955_v40, 2  ;;  %v5089_v10 = vld [vmem:[%s7479_s1 + $0x80] ss:$8 sps:$4 sm:$0xff]   ;;  %v6039_v11 = vunpack.c.h.bf16 %v5794_v47  ;;  %v5093_v47 = vld [vmem:[%s7479_s1 + $0x94] ss:$8 sps:$4 sm:$0xff]  }
  0xd2   :  { %1505 = vmatprep.subr.bf16.mxu0 %v5056_v14  ;;  %v902_v14 = vrot.slane %v5958_v9, 2  ;;  %v931_v33 = vsel %vm918_vm0, %v904_v22, %v905_v29 }
  0xd4   :  { %v934_v18 = vsel %vm918_vm0, %v901_v13, %v902_v14 }
  0xd5   :  { %1506 = vmatpush1.bf16.msra.mxu0 %v5054_v19  ;;  %v935_v19 = vsel %vm918_vm0, %v900_v8, %v901_v13  ;;  %v912_v8 = vrot.slane %v6023_v62, 2 }
  0xd6   :  { %1507 = vmatprep.subr.bf16.mxu0 %v5059_v20  ;;  %v958_v20 = vpack.c.bf16 %v934_v18, %v935_v19  ;;  %v913_v19 = vrot.slane %v6039_v11, 2 }
  0xd8   :  { %1117 = vmatmul.mubr.bf16.gmra.mrb[8].mxu0 %v953_v21  ;;  %v903_v21 = vrot.slane %v5968_v41, 2 }
  0xd9   :  { %1126 = vmatprep.mubr.bf16.mxu0 %v5519_v0  ;;  %1508 = vmatpush1.bf16.msra.mxu0 %v5057_v24 }
  0xda   :  { %1509 = vmatprep.subr.bf16.mxu0 %v5062_v25  ;;  %v932_v24 = vsel %vm918_vm0, %v903_v21, %v904_v22  ;;  %v933_v25 = vsel %vm918_vm0, %v902_v14, %v903_v21  ;;  %v5095_v21 = vld [vmem:[%s7479_s1 + $0x90] ss:$8 sps:$4 sm:$0xff]   ;;  %v6058_v22 = vunpack.c.h.bf16 %v5801_v48 }
  0xdb   :  { %v959_v28 = vpack.c.bf16 %v932_v24, %v933_v25  ;;  %v6061_v24 = vunpack.c.l.bf16 %v5817_v53 }
  0xdd   :  { %1510 = vmatpush1.bf16.msra.mxu0 %v5060_v30  ;;  %v906_v30 = vrot.slane %v5984_v23, 2 }
  0xde   :  { %1511 = vmatprep.subr.bf16.mxu0 %v5065_v31  ;;  %v5997_v31 = vunpack.c.l.bf16 %v5780_v45  ;;  %v6020_v45 = vunpack.c.h.bf16 %v5787_v46  ;;  %v5087_v46 = vld [vmem:[%s7479_s1 + $0x84] ss:$8 sps:$4 sm:$0xff]  }
  0xdf   :  { %324 = vmatprep.subr.bf16.mxu1 %v5087_v46  ;;  %v5113_v46 = vld [vmem:[%s7479_s1 + $0xe0] ss:$8 sps:$4 sm:$0xff]  }
  0xe0   :  { %1127 = vmatmul.mubr.bf16.gmra.mrb[12].mxu0 %v954_v32  ;;  %v930_v32 = vsel %vm918_vm0, %v905_v29, %v906_v30  ;;  %v911_v7 = vrot.slane %v6020_v45, 2  ;;  %325 = vmatpush1.bf16.msra.mxu1 %v5089_v10  ;;  %v5096_v29 = vld [vmem:[%s7479_s1 + $0xa4] ss:$8 sps:$4 sm:$0xff]  }
  0xe1   :  { %1136 = vmatprep.mubr.bf16.mxu0 %v5519_v0  ;;  %1512 = vmatpush1.bf16.msra.mxu0 %v5063_v35  ;;  %v960_v34 = vpack.c.bf16 %v930_v32, %v931_v33  ;;  %v907_v35 = vrot.slane %v5994_v43, 2  ;;  %v915_v32 = vrot.slane %v6058_v22, 2  ;;  %v916_v33 = vrot.slane %v6061_v24, 2 }
  0xe2   :  { %1513 = vmatprep.subr.bf16.mxu0 %v5068_v36  ;;  %v908_v36 = vrot.slane %v5997_v31, 2  ;;  %v924_v13 = vsel %vm918_vm0, %v911_v7, %v912_v8  ;;  %v925_v14 = vsel %vm918_vm0, %v910_v61, %v911_v7  ;;  %326 = vmatprep.subr.bf16.mxu1 %v5093_v47  ;;  %v145_v47 = vrot.slane %v5808_v51, 1 }
  0xe3   :  { %v963_v18 = vpack.c.bf16 %v924_v13, %v925_v14  ;;  %v1321_v13 = vrot.slane %v5805_v50, 3  ;;  %v1322_v14 = vrot.slane %v5808_v51, 3 }
  0xe4   :  { %v928_v56 = vsel %vm918_vm0, %v907_v35, %v908_v36  ;;  %327 = vmatpush1.bf16.msra.mxu1 %v5095_v21  ;;  %v146_v21 = vrot.slane %v5811_v52, 1 }
  0xe5   :  { %1514 = vmatpush1.bf16.msra.mxu0 %v5066_v57  ;;  %v929_v57 = vsel %vm918_vm0, %v906_v30, %v907_v35  ;;  %328 = vmatprep.subr.bf16.mxu1 %v5096_v29  ;;  %v5101_v35 = vld [vmem:[%s7479_s1 + $0xb0] ss:$8 sps:$4 sm:$0xff]  }
  0xe6   :  { %1934 = vmatprep.subr.bf16.mxu0 %v5071_v39  ;;  %v961_v39 = vpack.c.bf16 %v928_v56, %v929_v57  ;;  %v6086_v56 = vunpack.c.h.bf16 %v5817_v53  ;;  %v920_v57 = vsel %vm918_vm0, %v915_v32, %v916_v33  ;;  %v5108_v53 = vld [vmem:[%s7479_s1 + $0xd4] ss:$8 sps:$4 sm:$0xff]   ;;  %v208_v29 = vsel %vm178_vm2, %v145_v47, %v146_v21 }
  0xe8   :  { %1137 = vmatmul.mubr.bf16.gmra.mrb[16].mxu0 %v955_v60  ;;  %v909_v60 = vrot.slane %v6007_v44, 2 }
  0xe9   :  { %1146 = vmatprep.mubr.bf16.mxu0 %v5519_v0 }
  0xea   :  { %v926_v2 = vsel %vm918_vm0, %v909_v60, %v910_v61  ;;  %v927_v3 = vsel %vm918_vm0, %v908_v36, %v909_v60  ;;  %v5102_v36 = vld [vmem:[%s7479_s1 + $0xc4] ss:$8 sps:$4 sm:$0xff]   ;;  %v5104_v60 = vld [vmem:[%s7479_s1 + $0xc0] ss:$8 sps:$4 sm:$0xff]  }
  0xf0   :  { %1147 = vmatmul.mubr.bf16.gmra.mrb[20].mxu0 %v956_v6  ;;  %v962_v6 = vpack.c.bf16 %v926_v2, %v927_v3  ;;  %v917_v2 = vrot.slane %v6086_v56, 2  ;;  %v5110_v3 = vld [vmem:[%s7479_s1 + $0xd0] ss:$8 sps:$4 sm:$0xff]  }
  0xf1   :  { %1156 = vmatprep.mubr.bf16.mxu0 %v5519_v0 }
  0xf2   :  { %v950_v7 = vsel %vm918_vm0, %v917_v2, %v886_v55  ;;  %v5114_v55 = vld [vmem:[%s7479_s1 + $0xf4] ss:$8 sps:$4 sm:$0xff]  }
  0xf8   :  { %1157 = vmatmul.mubr.bf16.gmra.mrb[24].mxu0 %v957_v12  ;;  %v6042_v12 = vunpack.c.l.bf16 %v5801_v48  ;;  %v5098_v48 = vld [vmem:[%s7479_s1 + $0xa0] ss:$8 sps:$4 sm:$0xff]  }
  0xf9   :  { %1166 = vmatprep.mubr.bf16.mxu0 %v5519_v0  ;;  %329 = vmatpush1.bf16.msra.mxu1 %v5098_v48 }
 0x100   :  { %1167 = vmatmul.mubr.bf16.gmra.mrb[28].mxu0 %v958_v20  ;;  %v914_v20 = vrot.slane %v6042_v12, 2 }
 0x101   :  { %1176 = vmatprep.mubr.bf16.mxu0 %v5519_v0 }
 0x102   :  { %v922_v25 = vsel %vm918_vm0, %v913_v19, %v914_v20 }
 0x108   :  { %1177 = vmatmul.mubr.bf16.gmra.mrb[32].mxu0 %v959_v28  ;;  %v923_v28 = vsel %vm918_vm0, %v912_v8, %v913_v19  ;;  %v5111_v8 = vld [vmem:[%s7479_s1 + $0xe4] ss:$8 sps:$4 sm:$0xff]   ;;  %v5116_v19 = vld [vmem:[%s7479_s1 + $0xf0] ss:$8 sps:$4 sm:$0xff]  }
 0x109   :  { %1186 = vmatprep.mubr.bf16.mxu0 %v5519_v0  ;;  %v964_v30 = vpack.c.bf16 %v922_v25, %v923_v28  ;;  %v1384_v28 = vsel %vm1353_vm1, %v1321_v13, %v1322_v14 }
 0x110   :  { %1187 = vmatmul.mubr.bf16.gmra.mrb[36].mxu0 %v960_v34  ;;  %v5099_v34 = vld [vmem:[%s7479_s1 + $0xb4] ss:$8 sps:$4 sm:$0xff]  }
 0x111   :  { %1196 = vmatprep.mubr.bf16.mxu0 %v5519_v0  ;;  %330 = vmatprep.subr.bf16.mxu1 %v5099_v34  ;;  %v1324_v34 = vrot.slane %v5827_v58, 3 }
 0x112   :  { %331 = vmatpush1.bf16.msra.mxu1 %v5101_v35  ;;  %v1325_v35 = vrot.slane %v5830_v59, 3 }
 0x113   :  { %332 = vmatprep.subr.bf16.mxu1 %v5102_v36  ;;  %v5074_v36 = vld [vmem:[%s7479_s1 + $0x214] ss:$8 sps:$4 sm:$0xff]  }
 0x116   :  { %333 = vmatpush1.bf16.msra.mxu1 %v5104_v60  ;;  %v1381_v60 = vsel %vm1353_vm1, %v1324_v34, %v1325_v35 }
 0x117   :  { %334 = vmatprep.subr.bf16.mxu1 %v5108_v53  ;;  %v5077_v53 = vld [vmem:[%s7479_s1 + $0x224] ss:$8 sps:$4 sm:$0xff]  }
 0x118   :  { %1197 = vmatmul.mubr.bf16.gmra.mrb[40].mxu0 %v961_v39  ;;  %v921_v39 = vsel %vm918_vm0, %v914_v20, %v915_v32  ;;  %v144_v20 = vrot.slane %v5805_v50, 1 }
 0x119   :  { %1206 = vmatprep.mubr.bf16.mxu0 %v5519_v0  ;;  %v965_v61 = vpack.c.bf16 %v920_v57, %v921_v39  ;;  %v147_v57 = vrot.slane %v5827_v58, 1  ;;  %v148_v39 = vrot.slane %v5830_v59, 1 }
 0x11a   :  { %335 = vmatpush1.bf16.msra.mxu1 %v5110_v3  ;;  %v209_v48 = vsel %vm178_vm2, %v144_v20, %v145_v47 }
 0x11b   :  { %336 = vmatprep.subr.bf16.mxu1 %v5111_v8  ;;  %v206_v3 = vsel %vm178_vm2, %v147_v57, %v148_v39 }
 0x11e   :  { %337 = vmatpush1.bf16.msra.mxu1 %v5113_v46  ;;  %v1326_v46 = vrot.slane %v5848_v4, 3 }
 0x11f   :  { %338 = vmatprep.subr.bf16.mxu1 %v5114_v55  ;;  %v149_v55 = vrot.slane %v5848_v4, 1 }
 0x120   :  { %1207 = vmatmul.mubr.bf16.gmra.mrb[44].mxu0 %v962_v6  ;;  %v919_v6 = vsel %vm918_vm0, %v916_v33, %v917_v2  ;;  %v5069_v33 = vld [vmem:[%s7479_s1 + $0x200] ss:$8 sps:$4 sm:$0xff]   ;;  %v5072_v2 = vld [vmem:[%s7479_s1 + $0x210] ss:$8 sps:$4 sm:$0xff]  }
 0x121   :  { %1216 = vmatprep.mubr.bf16.mxu0 %v5519_v0  ;;  %v966_v10 = vpack.c.bf16 %v950_v7, %v919_v6  ;;  %v207_v6 = vsel %vm178_vm2, %v146_v21, %v147_v57  ;;  %v1380_v21 = vsel %vm1353_vm1, %v1325_v35, %v1326_v46  ;;  %v5081_v35 = vld [vmem:[%s7479_s1 + $0x240] ss:$8 sps:$4 sm:$0xff]   ;;  %v151_v57 = vrot.slane %v5873_v15, 1 }
 0x122   :  { %339 = vmatpush1.bf16.msra.mxu1 %v5116_v19  ;;  %v212_v7 = vpack.c.bf16 %v206_v3, %v207_v6  ;;  %v150_v19 = vrot.slane %v5851_v5, 1 }
 0x124   :  { %v203_v6 = vsel %vm178_vm2, %v150_v19, %v151_v57 }
 0x128   :  { %1217 = vmatmul.mubr.bf16.gmra.mrb[48].mxu0 %v963_v18  ;;  %v1323_v18 = vrot.slane %v5811_v52, 3 }
 0x129   :  { %1226 = vmatprep.mubr.bf16.mxu0 %v5519_v0 }
 0x12a   :  { %v1383_v25 = vsel %vm1353_vm1, %v1322_v14, %v1323_v18  ;;  %v5075_v14 = vld [vmem:[%s7479_s1 + $0x220] ss:$8 sps:$4 sm:$0xff]  }
 0x12b   :  { %v1386_v32 = vpack.c.bf16 %v1383_v25, %v1384_v28  ;;  %v5078_v25 = vld [vmem:[%s7479_s1 + $0x230] ss:$8 sps:$4 sm:$0xff]   ;;  %v5083_v28 = vld [vmem:[%s7479_s1 + $0x244] ss:$8 sps:$4 sm:$0xff]  }
 0x130   :  { %1227 = vmatmul.mubr.bf16.gmra.mrb[52].mxu0 %v964_v30  ;;  %v211_v30 = vpack.c.bf16 %v208_v29, %v209_v48  ;;  %v204_v29 = vsel %vm178_vm2, %v149_v55, %v150_v19  ;;  %v205_v48 = vsel %vm178_vm2, %v148_v39, %v149_v55  ;;  %v152_v39 = vrot.slane %v5876_v16, 1 }
 0x131   :  { %1236 = vmatprep.mubr.bf16.mxu0 %v5519_v0  ;;  %v153_v55 = vrot.slane %v5898_v26, 1  ;;  %v154_v19 = vrot.slane %v5901_v27, 1 }
 0x132   :  { %357 = vmatmul.mubr.bf16.vlgmr.msra.gmra.mrb[0].mxu1 %v211_v30  ;;  %v213_v30 = vpack.c.bf16 %v204_v29, %v205_v48  ;;  %v202_v3 = vsel %vm178_vm2, %v151_v57, %v152_v39 }
 0x133   :  { %366 = vmatprep.mubr.bf16.mxu1 %v5519_v0  ;;  %v201_v29 = vsel %vm178_vm2, %v152_v39, %v153_v55 }
 0x138   :  { %1237 = vmatmul.mubr.bf16.gmra.mrb[56].mxu0 %v965_v61  ;;  %v1382_v61 = vsel %vm1353_vm1, %v1323_v18, %v1324_v34  ;;  %v5080_v18 = vld [vmem:[%s7479_s1 + $0x234] ss:$8 sps:$4 sm:$0xff]   ;;  %v1329_v34 = vrot.slane %v5876_v16, 3 }
 0x139   :  { %1246 = vmatprep.mubr.bf16.mxu0 %v5519_v0  ;;  %v1387_v8 = vpack.c.bf16 %v1381_v60, %v1382_v61 }
 0x13a   :  { %367 = vmatmul.mubr.bf16.gmra.mrb[4].mxu1 %v212_v7  ;;  %v214_v7 = vpack.c.bf16 %v202_v3, %v203_v6  ;;  %v1335_v3 = vrot.slane %v5945_v1, 3  ;;  %v157_v6 = vrot.slane %v5942_v63, 1 }
 0x13b   :  { %376 = vmatprep.mubr.bf16.mxu1 %v5519_v0 }
 0x140   :  { %1247 = vmatmul.mubr.bf16.gmra.mrb[60].mxu0 %v966_v10  ;;  %v1327_v10 = vrot.slane %v5851_v5, 3 }
 0x141   :  { %1531 = vmatprep.mubr.bf16.mxu0 %v5519_v0 }
 0x142   :  { %v1379_v47 = vsel %vm1353_vm1, %v1326_v46, %v1327_v10  ;;  %377 = vmatmul.mubr.bf16.gmra.mrb[8].mxu1 %v213_v30  ;;  %v1330_v46 = vrot.slane %v5898_v26, 3 }
 0x143   :  { %386 = vmatprep.mubr.bf16.mxu1 %v5519_v0 }
 0x148   :  { %1532 = vmatmul.mubr.bf16.vlgmr.msra.gmra.mrb[0].mxu0 %v1386_v32  ;;  %v1388_v32 = vpack.c.bf16 %v1379_v47, %v1380_v21  ;;  %v1376_v21 = vsel %vm1353_vm1, %v1329_v34, %v1330_v46 }
 0x149   :  { %1935 = vmatpush1.bf16.msra.mxu0 %v5069_v33  ;;  %1541 = vmatprep.mubr.bf16.mxu0 %v5519_v0  ;;  %v1328_v33 = vrot.slane %v5873_v15, 3 }
 0x14a   :  { %1936 = vmatprep.subr.bf16.mxu0 %v5074_v36  ;;  %v5086_v36 = vld [vmem:[%s7479_s1 + $0x254] ss:$8 sps:$4 sm:$0xff]   ;;  %387 = vmatmul.mubr.bf16.gmra.mrb[12].mxu1 %v214_v7  ;;  %v158_v7 = vrot.slane %v5945_v1, 1 }
 0x14b   :  { %v1377_v60 = vsel %vm1353_vm1, %v1328_v33, %v1329_v34  ;;  %v1378_v61 = vsel %vm1353_vm1, %v1327_v10, %v1328_v33  ;;  %v1331_v10 = vrot.slane %v5901_v27, 3  ;;  %396 = vmatprep.mubr.bf16.mxu1 %v5519_v0  ;;  %v1333_v33 = vrot.slane %v5926_v38, 3 }
 0x14c   :  { %v155_v34 = vrot.slane %v5923_v37, 1 }
 0x14d   :  { %1937 = vmatpush1.bf16.msra.mxu0 %v5072_v2  ;;  %v5084_v2 = vld [vmem:[%s7479_s1 + $0x250] ss:$8 sps:$4 sm:$0xff]   ;;  %v1375_v47 = vsel %vm1353_vm1, %v1330_v46, %v1331_v10 }
 0x14e   :  { %1938 = vmatprep.subr.bf16.mxu0 %v5077_v53  ;;  %v5092_v53 = vld [vmem:[%s7479_s1 + $0x264] ss:$8 sps:$4 sm:$0xff]   ;;  %v1390_v30 = vpack.c.bf16 %v1375_v47, %v1376_v21  ;;  %v1337_v47 = vrot.slane %v5958_v9, 3  ;;  %v159_v21 = vrot.slane %v5955_v40, 1 }
 0x150   :  { %1542 = vmatmul.mubr.bf16.gmra.mrb[4].mxu0 %v1387_v8  ;;  %v1389_v8 = vpack.c.bf16 %v1377_v60, %v1378_v61  ;;  %v199_v60 = vsel %vm178_vm2, %v154_v19, %v155_v34 }
 0x151   :  { %1551 = vmatprep.mubr.bf16.mxu0 %v5519_v0  ;;  %1939 = vmatpush1.bf16.msra.mxu0 %v5075_v14  ;;  %v5090_v14 = vld [vmem:[%s7479_s1 + $0x260] ss:$8 sps:$4 sm:$0xff]  }
 0x152   :  { %1940 = vmatprep.subr.bf16.mxu0 %v5080_v18  ;;  %v5107_v18 = vld [vmem:[%s7479_s1 + $0x274] ss:$8 sps:$4 sm:$0xff]  }
 0x155   :  { %1941 = vmatpush1.bf16.msra.mxu0 %v5078_v25  ;;  %v5105_v25 = vld [vmem:[%s7479_s1 + $0x270] ss:$8 sps:$4 sm:$0xff]  }
 0x156   :  { %1942 = vmatprep.subr.bf16.mxu0 %v5083_v28  ;;  %v200_v28 = vsel %vm178_vm2, %v153_v55, %v154_v19  ;;  %v1336_v19 = vrot.slane %v5955_v40, 3 }
 0x157   :  { %v215_v48 = vpack.c.bf16 %v200_v28, %v201_v29 }
 0x158   :  { %1552 = vmatmul.mubr.bf16.gmra.mrb[8].mxu0 %v1388_v32  ;;  %v1332_v32 = vrot.slane %v5923_v37, 3  ;;  %v1369_v28 = vsel %vm1353_vm1, %v1336_v19, %v1337_v47  ;;  %v1370_v29 = vsel %vm1353_vm1, %v1335_v3, %v1336_v19 }
 0x159   :  { %1561 = vmatprep.mubr.bf16.mxu0 %v5519_v0  ;;  %1943 = vmatpush1.bf16.msra.mxu0 %v5081_v35  ;;  %v156_v35 = vrot.slane %v5926_v38, 1 }
 0x15a   :  { %1944 = vmatprep.subr.bf16.mxu0 %v5086_v36  ;;  %397 = vmatmul.mubr.bf16.gmra.mrb[16].mxu1 %v215_v48  ;;  %v1373_v36 = vsel %vm1353_vm1, %v1332_v32, %v1333_v33  ;;  %v1374_v57 = vsel %vm1353_vm1, %v1331_v10, %v1332_v32  ;;  %v196_v10 = vsel %vm178_vm2, %v157_v6, %v158_v7 }
 0x15b   :  { %406 = vmatprep.mubr.bf16.mxu1 %v5519_v0  ;;  %v198_v39 = vsel %vm178_vm2, %v155_v34, %v156_v35  ;;  %v1338_v34 = vrot.slane %v5968_v41, 3 }
 0x15c   :  { %v216_v61 = vpack.c.bf16 %v198_v39, %v199_v60 }
 0x15d   :  { %1945 = vmatpush1.bf16.msra.mxu0 %v5084_v2  ;;  %v1391_v2 = vpack.c.bf16 %v1373_v36, %v1374_v57  ;;  %v161_v36 = vrot.slane %v5968_v41, 1  ;;  %v162_v57 = vrot.slane %v5971_v17, 1  ;;  %v1368_v60 = vsel %vm1353_vm1, %v1337_v47, %v1338_v34 }
 0x15e   :  { %1946 = vmatprep.subr.bf16.mxu0 %v5092_v53  ;;  %v1334_v53 = vrot.slane %v5942_v63, 3 }
 0x160   :  { %1562 = vmatmul.mubr.bf16.gmra.mrb[12].mxu0 %v1389_v8  ;;  %v1371_v8 = vsel %vm1353_vm1, %v1334_v53, %v1335_v3  ;;  %v1372_v46 = vsel %vm1353_vm1, %v1333_v33, %v1334_v53  ;;  %v1393_v33 = vpack.c.bf16 %v1369_v28, %v1370_v29  ;;  %v165_v28 = vrot.slane %v5994_v43, 1 }
 0x161   :  { %1571 = vmatprep.mubr.bf16.mxu0 %v5519_v0  ;;  %1947 = vmatpush1.bf16.msra.mxu0 %v5090_v14  ;;  %v197_v14 = vsel %vm178_vm2, %v156_v35, %v157_v6  ;;  %v1392_v55 = vpack.c.bf16 %v1371_v8, %v1372_v46  ;;  %v1339_v35 = vrot.slane %v5971_v17, 3  ;;  %v1340_v6 = vrot.slane %v5981_v42, 3 }
 0x162   :  { %1948 = vmatprep.subr.bf16.mxu0 %v5107_v18  ;;  %407 = vmatmul.mubr.bf16.gmra.mrb[20].mxu1 %v216_v61  ;;  %v217_v18 = vpack.c.bf16 %v196_v10, %v197_v14  ;;  %v192_v61 = vsel %vm178_vm2, %v161_v36, %v162_v57  ;;  %v163_v8 = vrot.slane %v5981_v42, 1  ;;  %v164_v46 = vrot.slane %v5984_v23, 1 }
 0x163   :  { %416 = vmatprep.mubr.bf16.mxu1 %v5519_v0  ;;  %v1367_v39 = vsel %vm1353_vm1, %v1338_v34, %v1339_v35  ;;  %v1366_v14 = vsel %vm1353_vm1, %v1339_v35, %v1340_v6  ;;  %v166_v29 = vrot.slane %v5997_v31, 1 }
 0x164   :  { %v1394_v3 = vpack.c.bf16 %v1367_v39, %v1368_v60  ;;  %v167_v39 = vrot.slane %v6007_v44, 1  ;;  %v168_v60 = vrot.slane %v6010_v49, 1 }
 0x165   :  { %1949 = vmatpush1.bf16.msra.mxu0 %v5105_v25  ;;  %v160_v25 = vrot.slane %v5958_v9, 1 }
 0x167   :  { %v194_v48 = vsel %vm178_vm2, %v159_v21, %v160_v25 }
 0x168   :  { %1572 = vmatmul.mubr.bf16.gmra.mrb[16].mxu0 %v1390_v30  ;;  %v195_v30 = vsel %vm178_vm2, %v158_v7, %v159_v21  ;;  %v1341_v7 = vrot.slane %v5984_v23, 3  ;;  %v1342_v21 = vrot.slane %v5994_v43, 3 }
 0x169   :  { %1581 = vmatprep.mubr.bf16.mxu0 %v5519_v0  ;;  %v218_v32 = vpack.c.bf16 %v194_v48, %v195_v30 }
 0x16a   :  { %417 = vmatmul.mubr.bf16.gmra.mrb[24].mxu1 %v217_v18  ;;  %v1365_v10 = vsel %vm1353_vm1, %v1340_v6, %v1341_v7  ;;  %v190_v18 = vsel %vm178_vm2, %v163_v8, %v164_v46  ;;  %v1364_v30 = vsel %vm1353_vm1, %v1341_v7, %v1342_v21 }
 0x16b   :  { %426 = vmatprep.mubr.bf16.mxu1 %v5519_v0  ;;  %v1395_v47 = vpack.c.bf16 %v1365_v10, %v1366_v14  ;;  %v169_v10 = vrot.slane %v6020_v45, 1  ;;  %v170_v14 = vrot.slane %v6023_v62, 1 }
 0x170   :  { %1582 = vmatmul.mubr.bf16.gmra.mrb[20].mxu0 %v1391_v2  ;;  %v193_v2 = vsel %vm178_vm2, %v160_v25, %v161_v36  ;;  %v1343_v25 = vrot.slane %v5997_v31, 3  ;;  %v1344_v36 = vrot.slane %v6007_v44, 3 }
 0x171   :  { %1591 = vmatprep.mubr.bf16.mxu0 %v5519_v0  ;;  %v219_v53 = vpack.c.bf16 %v192_v61, %v193_v2 }
 0x172   :  { %427 = vmatmul.mubr.bf16.gmra.mrb[28].mxu1 %v218_v32  ;;  %v1363_v48 = vsel %vm1353_vm1, %v1342_v21, %v1343_v25  ;;  %v188_v32 = vsel %vm178_vm2, %v165_v28, %v166_v29  ;;  %v1362_v2 = vsel %vm1353_vm1, %v1343_v25, %v1344_v36 }
 0x173   :  { %436 = vmatprep.mubr.bf16.mxu1 %v5519_v0  ;;  %v1396_v35 = vpack.c.bf16 %v1363_v48, %v1364_v30  ;;  %v171_v48 = vrot.slane %v6039_v11, 1  ;;  %v172_v30 = vrot.slane %v6042_v12, 1 }
 0x178   :  { %1592 = vmatmul.mubr.bf16.gmra.mrb[24].mxu0 %v1392_v55  ;;  %v191_v55 = vsel %vm178_vm2, %v162_v57, %v163_v8  ;;  %v1345_v57 = vrot.slane %v6010_v49, 3  ;;  %v1346_v8 = vrot.slane %v6020_v45, 3 }
 0x179   :  { %1601 = vmatprep.mubr.bf16.mxu0 %v5519_v0  ;;  %v220_v19 = vpack.c.bf16 %v190_v18, %v191_v55 }
 0x17a   :  { %437 = vmatmul.mubr.bf16.gmra.mrb[32].mxu1 %v219_v53  ;;  %v1361_v61 = vsel %vm1353_vm1, %v1344_v36, %v1345_v57  ;;  %v186_v53 = vsel %vm178_vm2, %v167_v39, %v168_v60  ;;  %v1360_v55 = vsel %vm1353_vm1, %v1345_v57, %v1346_v8 }
 0x17b   :  { %446 = vmatprep.mubr.bf16.mxu1 %v5519_v0  ;;  %v1397_v7 = vpack.c.bf16 %v1361_v61, %v1362_v2  ;;  %v173_v61 = vrot.slane %v6058_v22, 1  ;;  %v174_v2 = vrot.slane %v6061_v24, 1 }
 0x180   :  { %1602 = vmatmul.mubr.bf16.gmra.mrb[28].mxu0 %v1393_v33  ;;  %v189_v33 = vsel %vm178_vm2, %v164_v46, %v165_v28  ;;  %v1347_v46 = vrot.slane %v6023_v62, 3  ;;  %v1348_v28 = vrot.slane %v6039_v11, 3 }
 0x181   :  { %1611 = vmatprep.mubr.bf16.mxu0 %v5519_v0  ;;  %v221_v34 = vpack.c.bf16 %v188_v32, %v189_v33 }
 0x182   :  { %447 = vmatmul.mubr.bf16.gmra.mrb[36].mxu1 %v220_v19  ;;  %v1359_v18 = vsel %vm1353_vm1, %v1346_v8, %v1347_v46  ;;  %v184_v19 = vsel %vm178_vm2, %v169_v10, %v170_v14  ;;  %v1358_v33 = vsel %vm1353_vm1, %v1347_v46, %v1348_v28 }
 0x183   :  { %456 = vmatprep.mubr.bf16.mxu1 %v5519_v0  ;;  %v1398_v25 = vpack.c.bf16 %v1359_v18, %v1360_v55 }
 0x188   :  { %1612 = vmatmul.mubr.bf16.gmra.mrb[32].mxu0 %v1394_v3  ;;  %v187_v3 = vsel %vm178_vm2, %v166_v29, %v167_v39  ;;  %v1349_v29 = vrot.slane %v6042_v12, 3  ;;  %v1350_v39 = vrot.slane %v6058_v22, 3 }
 0x189   :  { %1621 = vmatprep.mubr.bf16.mxu0 %v5519_v0  ;;  %v222_v6 = vpack.c.bf16 %v186_v53, %v187_v3 }
 0x18a   :  { %457 = vmatmul.mubr.bf16.gmra.mrb[40].mxu1 %v221_v34  ;;  %v1357_v32 = vsel %vm1353_vm1, %v1348_v28, %v1349_v29  ;;  %v182_v34 = vsel %vm178_vm2, %v171_v48, %v172_v30  ;;  %v1356_v3 = vsel %vm1353_vm1, %v1349_v29, %v1350_v39  ;;  %v1756_v28 = vrot.slane %v5805_v50, 4 }
 0x18b   :  { %466 = vmatprep.mubr.bf16.mxu1 %v5519_v0  ;;  %v1399_v57 = vpack.c.bf16 %v1357_v32, %v1358_v33  ;;  %v1757_v29 = vrot.slane %v5808_v51, 4  ;;  %v1759_v32 = vrot.slane %v5827_v58, 4  ;;  %v1760_v51 = vrot.slane %v5830_v59, 4 }
 0x190   :  { %1622 = vmatmul.mubr.bf16.gmra.mrb[36].mxu0 %v1395_v47  ;;  %v185_v47 = vsel %vm178_vm2, %v168_v60, %v169_v10  ;;  %v1351_v60 = vrot.slane %v6061_v24, 3  ;;  %v1352_v10 = vrot.slane %v6086_v56, 3 }
 0x191   :  { %1631 = vmatprep.mubr.bf16.mxu0 %v5519_v0  ;;  %v223_v21 = vpack.c.bf16 %v184_v19, %v185_v47 }
 0x192   :  { %467 = vmatmul.mubr.bf16.gmra.mrb[44].mxu1 %v222_v6  ;;  %v1355_v53 = vsel %vm1353_vm1, %v1350_v39, %v1351_v60  ;;  %v180_v6 = vsel %vm178_vm2, %v173_v61, %v174_v2  ;;  %v1354_v18 = vsel %vm1353_vm1, %v1351_v60, %v1352_v10  ;;  %v1385_v55 = vsel %vm1353_vm1, %v1352_v10, %v1321_v13 }
 0x193   :  { %476 = vmatprep.mubr.bf16.mxu1 %v5519_v0  ;;  %v1400_v46 = vpack.c.bf16 %v1355_v53, %v1356_v3  ;;  %v1763_v39 = vrot.slane %v5873_v15, 4  ;;  %v1764_v60 = vrot.slane %v5876_v16, 4  ;;  %v1766_v53 = vrot.slane %v5901_v27, 4 }
 0x194   :  { %v1770_v10 = vrot.slane %v5945_v1, 4 }
 0x198   :  { %1632 = vmatmul.mubr.bf16.gmra.mrb[40].mxu0 %v1396_v35  ;;  %v183_v35 = vsel %vm178_vm2, %v170_v14, %v171_v48  ;;  %v175_v14 = vrot.slane %v6086_v56, 1  ;;  %v1758_v48 = vrot.slane %v5811_v52, 4  ;;  %v1816_v52 = vsel %vm1788_vm3, %v1759_v32, %v1760_v51 }
 0x199   :  { %1641 = vmatprep.mubr.bf16.mxu0 %v5519_v0  ;;  %v224_v36 = vpack.c.bf16 %v182_v34, %v183_v35  ;;  %v1761_v35 = vrot.slane %v5848_v4, 4  ;;  %v1812_v4 = vsel %vm1788_vm3, %v1763_v39, %v1764_v60 }
 0x19a   :  { %477 = vmatmul.mubr.bf16.gmra.mrb[48].mxu1 %v223_v21  ;;  %v179_v19 = vsel %vm178_vm2, %v174_v2, %v175_v14  ;;  %v210_v47 = vsel %vm178_vm2, %v175_v14, %v144_v20  ;;  %v1818_v13 = vsel %vm1788_vm3, %v1757_v29, %v1758_v48  ;;  %v1819_v20 = vsel %vm1788_vm3, %v1756_v28, %v1757_v29 }
 0x19b   :  { %486 = vmatprep.mubr.bf16.mxu1 %v5519_v0  ;;  %v226_v21 = vpack.c.bf16 %v210_v47, %v179_v19  ;;  %v1817_v33 = vsel %vm1788_vm3, %v1758_v48, %v1759_v32  ;;  %v1815_v59 = vsel %vm1788_vm3, %v1760_v51, %v1761_v35  ;;  %v1765_v2 = vrot.slane %v5898_v26, 4 }
 0x19c   :  { %v1822_v34 = vpack.c.bf16 %v1816_v52, %v1817_v33  ;;  %v1773_v47 = vrot.slane %v5968_v41, 4  ;;  %v1775_v29 = vrot.slane %v5981_v42, 4  ;;  %v1776_v48 = vrot.slane %v5984_v23, 4 }
 0x19d   :  { %v1810_v15 = vsel %vm1788_vm3, %v1765_v2, %v1766_v53  ;;  %v1811_v16 = vsel %vm1788_vm3, %v1764_v60, %v1765_v2  ;;  %v1779_v51 = vrot.slane %v6007_v44, 4  ;;  %v1780_v52 = vrot.slane %v6010_v49, 4 }
 0x19e   :  { %v1825_v3 = vpack.c.bf16 %v1810_v15, %v1811_v16  ;;  %v1800_v41 = vsel %vm1788_vm3, %v1775_v29, %v1776_v48  ;;  %v1781_v49 = vrot.slane %v6020_v45, 4 }
 0x1a0   :  { %1642 = vmatmul.mubr.bf16.gmra.mrb[44].mxu0 %v1397_v7  ;;  %v181_v7 = vsel %vm178_vm2, %v172_v30, %v173_v61  ;;  %v1821_v30 = vpack.c.bf16 %v1818_v13, %v1819_v20  ;;  %v1777_v20 = vrot.slane %v5994_v43, 4  ;;  %v1796_v43 = vsel %vm1788_vm3, %v1779_v51, %v1780_v52 }
 0x1a1   :  { %1651 = vmatprep.mubr.bf16.mxu0 %v5519_v0  ;;  %v225_v8 = vpack.c.bf16 %v180_v6, %v181_v7  ;;  %v1767_v6 = vrot.slane %v5923_v37, 4  ;;  %v1768_v7 = vrot.slane %v5926_v38, 4 }
 0x1a2   :  { %487 = vmatmul.mubr.bf16.gmra.mrb[52].mxu1 %v224_v36  ;;  %v1762_v36 = vrot.slane %v5851_v5, 4  ;;  %v1799_v23 = vsel %vm1788_vm3, %v1776_v48, %v1777_v20 }
 0x1a3   :  { %496 = vmatprep.mubr.bf16.mxu1 %v5519_v0  ;;  %v1808_v26 = vsel %vm1788_vm3, %v1767_v6, %v1768_v7  ;;  %v1809_v27 = vsel %vm1788_vm3, %v1766_v53, %v1767_v6 }
 0x1a4   :  { %v1814_v58 = vsel %vm1788_vm3, %v1761_v35, %v1762_v36  ;;  %v1813_v5 = vsel %vm1788_vm3, %v1762_v36, %v1763_v39  ;;  %v1795_v39 = vsel %vm1788_vm3, %v1780_v52, %v1781_v49  ;;  %v5123_v52 = vld [vmem:[#allocation2 + $0x40] ss:$16 sps:$4 sm:$0xff]  }
 0x1a5   :  { %v1824_v61 = vpack.c.bf16 %v1812_v4, %v1813_v5 }
 0x1a8   :  { %1652 = vmatmul.mubr.bf16.gmra.mrb[48].mxu0 %v1398_v25  ;;  %v1401_v25 = vpack.c.bf16 %v1385_v55, %v1354_v18  ;;  %v1771_v18 = vrot.slane %v5955_v40, 4  ;;  %v1772_v55 = vrot.slane %v5958_v9, 4 }
 0x1a9   :  { %1661 = vmatprep.mubr.bf16.mxu0 %v5519_v0 }
 0x1aa   :  { %497 = vmatmul.mubr.bf16.gmra.mrb[56].mxu1 %v225_v8  ;;  %v1826_v8 = vpack.c.bf16 %v1808_v26, %v1809_v27  ;;  %v1805_v1 = vsel %vm1788_vm3, %v1770_v10, %v1771_v18  ;;  %v1803_v9 = vsel %vm1788_vm3, %v1772_v55, %v1773_v47 }
 0x1ab   :  { %506 = vmatprep.mubr.bf16.mxu1 %v5519_v0 }
 0x1b0   :  { %1662 = vmatmul.mubr.bf16.gmra.mrb[52].mxu0 %v1399_v57  ;;  %v1823_v57 = vpack.c.bf16 %v1814_v58, %v1815_v59  ;;  %v1782_v58 = vrot.slane %v6023_v62, 4  ;;  %v1783_v62 = vrot.slane %v6039_v11, 4 }
 0x1b1   :  { %1671 = vmatprep.mubr.bf16.mxu0 %v5519_v0 }
 0x1b2   :  { %507 = vmatmul.mubr.bf16.gmra.mrb[60].mxu1 %v226_v21  ;;  %v1774_v21 = vrot.slane %v5971_v17, 4  ;;  %v1793_v15 = vsel %vm1788_vm3, %v1782_v58, %v1783_v62 }
 0x1b4   :  { %v1802_v40 = vsel %vm1788_vm3, %v1773_v47, %v1774_v21  ;;  %v1801_v17 = vsel %vm1788_vm3, %v1774_v21, %v1775_v29  ;;  %v5119_v29 = vld [vmem:[#allocation2 + $0x4] ss:$16 sps:$4 sm:$0xff]  }
 0x1b5   :  { %v1830_v13 = vpack.c.bf16 %v1800_v41, %v1801_v17  ;;  %3128 = vmatprep.subr.bf16.mxu1 %v5119_v29  ;;  %v5135_v29 = vld [vmem:[#allocation2 + $0xc0] ss:$16 sps:$4 sm:$0xff]  }
 0x1b8   :  { %1672 = vmatmul.mubr.bf16.gmra.mrb[56].mxu0 %v1400_v46  ;;  %v1769_v46 = vrot.slane %v5942_v63, 4  ;;  %v1804_v63 = vsel %vm1788_vm3, %v1771_v18, %v1772_v55 }
 0x1b9   :  { %1681 = vmatprep.mubr.bf16.mxu0 %v5519_v0  ;;  %v1828_v19 = vpack.c.bf16 %v1804_v63, %v1805_v1 }
 0x1ba   :  { %v1806_v37 = vsel %vm1788_vm3, %v1769_v46, %v1770_v10  ;;  %v1807_v38 = vsel %vm1788_vm3, %v1768_v7, %v1769_v46  ;;  %v1786_v7 = vrot.slane %v6061_v24, 4  ;;  %v1787_v24 = vrot.slane %v6086_v56, 4 }
 0x1bb   :  { %v1827_v14 = vpack.c.bf16 %v1806_v37, %v1807_v38 }
 0x1bc   :  { %v1789_v38 = vsel %vm1788_vm3, %v1786_v7, %v1787_v24 }
 0x1c0   :  { %1682 = vmatmul.mubr.bf16.gmra.mrb[60].mxu0 %v1401_v25  ;;  %v1829_v25 = vpack.c.bf16 %v1802_v40, %v1803_v9 }
 0x1c1   :  { %1966 = vmatprep.mubr.bf16.mxu0 %v5519_v0 }
 0x1c8   :  { %1967 = vmatmul.mubr.bf16.vlgmr.msra.gmra.mrb[0].mxu0 %v1821_v30  ;;  %v1778_v30 = vrot.slane %v5997_v31, 4 }
 0x1c9   :  { %1976 = vmatprep.mubr.bf16.mxu0 %v5519_v0 }
 0x1ca   :  { %v1798_v42 = vsel %vm1788_vm3, %v1777_v20, %v1778_v30  ;;  %v1797_v31 = vsel %vm1788_vm3, %v1778_v30, %v1779_v51  ;;  %v5120_v30 = vld [vmem:[#allocation2 + $0x20] ss:$16 sps:$4 sm:$0xff]  }
 0x1cb   :  { %v1831_v32 = vpack.c.bf16 %v1798_v42, %v1799_v23  ;;  %v1832_v44 = vpack.c.bf16 %v1796_v43, %v1797_v31  ;;  %v5122_v42 = vld [vmem:[#allocation2 + $0x24] ss:$16 sps:$4 sm:$0xff]  }
 0x1cc   :  { %v5125_v43 = vld [vmem:[#allocation2 + $0x44] ss:$16 sps:$4 sm:$0xff]  }
 0x1d0   :  { %1977 = vmatmul.mubr.bf16.gmra.mrb[4].mxu0 %v1822_v34 }
 0x1d1   :  { %1986 = vmatprep.mubr.bf16.mxu0 %v5519_v0 }
 0x1d8   :  { %1987 = vmatmul.mubr.bf16.gmra.mrb[8].mxu0 %v1823_v57  ;;  %v1794_v57 = vsel %vm1788_vm3, %v1781_v49, %v1782_v58 }
 0x1d9   :  { %1996 = vmatprep.mubr.bf16.mxu0 %v5519_v0  ;;  %v1833_v45 = vpack.c.bf16 %v1794_v57, %v1795_v39  ;;  %v5126_v57 = vld [vmem:[#allocation2 + $0x60] ss:$16 sps:$4 sm:$0xff]   ;;  %v5128_v39 = vld [vmem:[#allocation2 + $0x64] ss:$16 sps:$4 sm:$0xff]  }
 0x1e0   :  { %1997 = vmatmul.mubr.bf16.gmra.mrb[12].mxu0 %v1824_v61  ;;  %v1784_v61 = vrot.slane %v6042_v12, 4  ;;  %v1785_v12 = vrot.slane %v6058_v22, 4 }
 0x1e1   :  { %2006 = vmatprep.mubr.bf16.mxu0 %v5519_v0 }
 0x1e2   :  { %v1792_v53 = vsel %vm1788_vm3, %v1783_v62, %v1784_v61  ;;  %v1790_v27 = vsel %vm1788_vm3, %v1785_v12, %v1786_v7 }
 0x1e3   :  { %v1834_v11 = vpack.c.bf16 %v1792_v53, %v1793_v15  ;;  %v5129_v15 = vld [vmem:[#allocation2 + $0x80] ss:$16 sps:$4 sm:$0xff]  }
 0x1e8   :  { %2007 = vmatmul.mubr.bf16.gmra.mrb[16].mxu0 %v1825_v3 }
 0x1e9   :  { %2016 = vmatprep.mubr.bf16.mxu0 %v5519_v0 }
 0x1f0   :  { %2017 = vmatmul.mubr.bf16.gmra.mrb[20].mxu0 %v1826_v8  ;;  %v1791_v8 = vsel %vm1788_vm3, %v1784_v61, %v1785_v12 }
 0x1f1   :  { %2026 = vmatprep.mubr.bf16.mxu0 %v5519_v0  ;;  %v1835_v22 = vpack.c.bf16 %v1790_v27, %v1791_v8 }
 0x1f8   :  { %2027 = vmatmul.mubr.bf16.gmra.mrb[24].mxu0 %v1827_v14  ;;  %v1820_v14 = vsel %vm1788_vm3, %v1787_v24, %v1756_v28  ;;  %v5134_v24 = vld [vmem:[#allocation2 + $0xa4] ss:$16 sps:$4 sm:$0xff]  }
 0x1f9   :  { %2036 = vmatprep.mubr.bf16.mxu0 %v5519_v0  ;;  %v1836_v63 = vpack.c.bf16 %v1820_v14, %v1789_v38 }
 0x200   :  { %2037 = vmatmul.mubr.bf16.gmra.mrb[28].mxu0 %v1828_v19 }
 0x201   :  { %2046 = vmatprep.mubr.bf16.mxu0 %v5519_v0 }
 0x205   :  { %v6483_v33 = vpop.f32.mrb[0].mxu1 }
 0x206   :  { %v6490_v34 = vpop.f32.mrb[1].mxu1 }
 0x207   :  { %v6492_v35 = vpop.f32.mrb[2].mxu1 }
 0x208   :  { %2047 = vmatmul.mubr.bf16.gmra.mrb[32].mxu0 %v1829_v25  ;;  %v6494_v36 = vpop.f32.mrb[3].mxu1  ;;  %v5117_v25 = vld [vmem:[#allocation2] ss:$16 sps:$4 sm:$0xff]  }
 0x209   :  { %2056 = vmatprep.mubr.bf16.mxu0 %v5519_v0  ;;  %3129 = vmatpush1.bf16.msra.mxu1 %v5117_v25 }
 0x20a   :  { %3130 = vmatprep.subr.bf16.mxu1 %v5122_v42 }
 0x20d   :  { %v6498_v59 = vpop.f32.mrb[4].mxu1  ;;  %3131 = vmatpush1.bf16.msra.mxu1 %v5120_v30  ;;  %v5137_v30 = vld [vmem:[#allocation2 + $0xc4] ss:$16 sps:$4 sm:$0xff]  }
 0x20e   :  { %v6505_v60 = vpop.f32.mrb[5].mxu1  ;;  %3132 = vmatprep.subr.bf16.mxu1 %v5125_v43 }
 0x20f   :  { %v6507_v4 = vpop.f32.mrb[6].mxu1 }
 0x210   :  { %2057 = vmatmul.mubr.bf16.gmra.mrb[36].mxu0 %v1830_v13  ;;  %v6509_v5 = vpop.f32.mrb[7].mxu1 }
 0x211   :  { %2066 = vmatprep.mubr.bf16.mxu0 %v5519_v0  ;;  %3133 = vmatpush1.bf16.msra.mxu1 %v5123_v52 }
 0x212   :  { %3134 = vmatprep.subr.bf16.mxu1 %v5128_v39  ;;  %v5138_v39 = vld [vmem:[#allocation2 + $0xe0] ss:$16 sps:$4 sm:$0xff]  }
 0x215   :  { %v6513_v2 = vpop.f32.mrb[8].mxu1  ;;  %3135 = vmatpush1.bf16.msra.mxu1 %v5126_v57 }
 0x216   :  { %v6520_v16 = vpop.f32.mrb[9].mxu1 }
 0x217   :  { %v6522_v3 = vpop.f32.mrb[10].mxu1 }
 0x218   :  { %2067 = vmatmul.mubr.bf16.gmra.mrb[40].mxu0 %v1831_v32  ;;  %v6524_v6 = vpop.f32.mrb[11].mxu1 }
 0x219   :  { %2076 = vmatprep.mubr.bf16.mxu0 %v5519_v0 }
 0x21d   :  { %v6528_v26 = vpop.f32.mrb[12].mxu1 }
 0x21e   :  { %v6535_v46 = vpop.f32.mrb[13].mxu1 }
 0x21f   :  { %v6537_v10 = vpop.f32.mrb[14].mxu1 }
 0x220   :  { %2077 = vmatmul.mubr.bf16.gmra.mrb[44].mxu0 %v1832_v44  ;;  %v6539_v37 = vpop.f32.mrb[15].mxu1 }
 0x221   :  { %2086 = vmatprep.mubr.bf16.mxu0 %v5519_v0 }
 0x228   :  { %2087 = vmatmul.mubr.bf16.gmra.mrb[48].mxu0 %v1833_v45 }
 0x229   :  { %2096 = vmatprep.mubr.bf16.mxu0 %v5519_v0 }
 0x22d   :  { %v6549_v18 = vpop.f32.mrb[16].mxu1 }
 0x22e   :  { %v6551_v55 = vpop.f32.mrb[17].mxu1 }
 0x22f   :  { %v6553_v1 = vpop.f32.mrb[18].mxu1 }
 0x230   :  { %2097 = vmatmul.mubr.bf16.gmra.mrb[52].mxu0 %v1834_v11  ;;  %v6555_v19 = vpop.f32.mrb[19].mxu1  ;;  %v5131_v11 = vld [vmem:[#allocation2 + $0x84] ss:$16 sps:$4 sm:$0xff]  }
 0x231   :  { %2106 = vmatprep.mubr.bf16.mxu0 %v5519_v0  ;;  %3136 = vmatprep.subr.bf16.mxu1 %v5131_v11 }
 0x232   :  { %3137 = vmatpush1.bf16.msra.mxu1 %v5129_v15  ;;  %v5140_v15 = vld [vmem:[#allocation2 + $0xe4] ss:$16 sps:$4 sm:$0xff]  }
 0x233   :  { %3138 = vmatprep.subr.bf16.mxu1 %v5134_v24 }
 0x235   :  { %v6557_v56 = vpop.f32.mrb[20].mxu1 }
 0x238   :  { %2107 = vmatmul.mubr.bf16.gmra.mrb[56].mxu0 %v1835_v22  ;;  %v5132_v22 = vld [vmem:[#allocation2 + $0xa0] ss:$16 sps:$4 sm:$0xff]  }
 0x239   :  { %2116 = vmatprep.mubr.bf16.mxu0 %v5519_v0  ;;  %v6559_v0 = vpop.f32.mrb[21].mxu1  ;;  %3139 = vmatpush1.bf16.msra.mxu1 %v5132_v22 }
 0x23a   :  { %v6561_v47 = vpop.f32.mrb[22].mxu1  ;;  %3140 = vmatprep.subr.bf16.mxu1 %v5137_v30 }
 0x23b   :  { %v6563_v50 = vpop.f32.mrb[23].mxu1 }
 0x23d   :  { %v6565_v21 = vpop.f32.mrb[24].mxu1  ;;  %3141 = vmatpush1.bf16.msra.mxu1 %v5135_v29  ;;  %v5143_v29 = vld [vmem:[#allocation2 + $0x104] ss:$16 sps:$4 sm:$0xff]  }
 0x23e   :  { %v6567_v28 = vpop.f32.mrb[25].mxu1  ;;  %3142 = vmatprep.subr.bf16.mxu1 %v5140_v15 }
 0x23f   :  { %v6569_v40 = vpop.f32.mrb[26].mxu1 }
 0x240   :  { %2117 = vmatmul.mubr.bf16.gmra.mrb[60].mxu0 %v1836_v63  ;;  %v6571_v9 = vpop.f32.mrb[27].mxu1 }
 0x241   :  { %3143 = vmatpush1.bf16.msra.mxu1 %v5138_v39 }
 0x242   :  { %3144 = vmatprep.subr.bf16.mxu1 %v5143_v29 }
 0x245   :  { %v6573_v48 = vpop.f32.mrb[28].mxu1 }
 0x246   :  { %v6575_v41 = vpop.f32.mrb[29].mxu1 }
 0x247   :  { %v6577_v17 = vpop.f32.mrb[30].mxu1 }
 0x248   :  { %v6579_v13 = vpop.f32.mrb[31].mxu1 }
 0x24d   :  { %v6581_v20 = vpop.f32.mrb[32].mxu1 }
 0x24e   :  { %v6583_v23 = vpop.f32.mrb[33].mxu1 }
 0x24f   :  { %v6585_v32 = vpop.f32.mrb[34].mxu1 }
 0x250   :  { %v6587_v51 = vpop.f32.mrb[35].mxu1 }
 0x255   :  { %v6589_v31 = vpop.f32.mrb[36].mxu1 }
 0x256   :  { %v6591_v44 = vpop.f32.mrb[37].mxu1 }
 0x257   :  { %v6593_v49 = vpop.f32.mrb[38].mxu1 }
 0x258   :  { %v6595_v58 = vpop.f32.mrb[39].mxu1 }
 0x25d   :  { %v6597_v45 = vpop.f32.mrb[40].mxu1 }
 0x25e   :  { %v6599_v62 = vpop.f32.mrb[41].mxu1 }
 0x25f   :  { %7500 = vst [vmem:[#allocation9_spill] sm:$0xff] %v6599_v62  ;;  %v6601_v61 = vpop.f32.mrb[42].mxu1  ;;  %v5153_v62 = vld [vmem:[#allocation2 + $0x180] ss:$16 sps:$4 sm:$0xff]  }
 0x260   :  { %7501 = vst [vmem:[#allocation10_spill] sm:$0xff] %v6601_v61  ;;  %v6603_v53 = vpop.f32.mrb[43].mxu1 }
 0x261   :  { %7502 = vst [vmem:[#allocation11_spill] sm:$0xff] %v6603_v53 }
 0x265   :  { %v6605_v12 = vpop.f32.mrb[44].mxu1 }
 0x266   :  { %7503 = vst [vmem:[#allocation12_spill] sm:$0xff] %v6605_v12  ;;  %v6607_v7 = vpop.f32.mrb[45].mxu1 }
 0x267   :  { %7504 = vst [vmem:[#allocation13_spill] sm:$0xff] %v6607_v7  ;;  %v6609_v27 = vpop.f32.mrb[46].mxu1 }
 0x268   :  { %7505 = vst [vmem:[#allocation14_spill] sm:$0xff] %v6609_v27  ;;  %v6611_v8 = vpop.f32.mrb[47].mxu1 }
 0x269   :  { %7506 = vst [vmem:[#allocation15_spill] sm:$0xff] %v6611_v8  ;;  %v5149_v8 = vld [vmem:[#allocation2 + $0x144] ss:$16 sps:$4 sm:$0xff]  }
 0x26d   :  { %v6613_v38 = vpop.f32.mrb[48].mxu1 }
 0x26e   :  { %7507 = vst [vmem:[#allocation16_spill] sm:$0xff] %v6613_v38  ;;  %v6615_v14 = vpop.f32.mrb[49].mxu1 }
 0x26f   :  { %7508 = vst [vmem:[#allocation17_spill] sm:$0xff] %v6615_v14  ;;  %v6617_v63 = vpop.f32.mrb[50].mxu1 }
 0x270   :  { %7509 = vst [vmem:[#allocation18_spill] sm:$0xff] %v6617_v63  ;;  %v6619_v25 = vpop.f32.mrb[51].mxu1 }
 0x271   :  { %7510 = vst [vmem:[#allocation19_spill] sm:$0xff] %v6619_v25  ;;  %v5144_v25 = vld [vmem:[#allocation2 + $0x120] ss:$16 sps:$4 sm:$0xff]  }
 0x275   :  { %v6621_v42 = vpop.f32.mrb[52].mxu1 }
 0x276   :  { %7511 = vst [vmem:[#allocation20_spill] sm:$0xff] %v6621_v42  ;;  %v6623_v52 = vpop.f32.mrb[53].mxu1  ;;  %v5141_v42 = vld [vmem:[#allocation2 + $0x100] ss:$16 sps:$4 sm:$0xff]  }
 0x277   :  { %7512 = vst [vmem:[#allocation21_spill] sm:$0xff] %v6623_v52  ;;  %v6625_v43 = vpop.f32.mrb[54].mxu1  ;;  %3145 = vmatpush1.bf16.msra.mxu1 %v5141_v42  ;;  %v6655_v42 = vld [vmem:[%s7480_s2 + $0x10] sm:$0xff] }
 0x278   :  { %7513 = vst [vmem:[#allocation22_spill] sm:$0xff] %v6625_v43  ;;  %v6627_v57 = vpop.f32.mrb[55].mxu1 }
 0x279   :  { %7514 = vst [vmem:[#allocation23_spill] sm:$0xff] %v6627_v57 }
 0x27d   :  { %v6629_v11 = vpop.f32.mrb[56].mxu1 }
 0x27e   :  { %7515 = vst [vmem:[#allocation24_spill] sm:$0xff] %v6629_v11  ;;  %v6631_v22 = vpop.f32.mrb[57].mxu1 }
 0x27f   :  { %7516 = vst [vmem:[#allocation25_spill] sm:$0xff] %v6631_v22  ;;  %v6633_v24 = vpop.f32.mrb[58].mxu1 }
 0x280   :  { %7517 = vst [vmem:[#allocation26_spill] sm:$0xff] %v6633_v24  ;;  %v6635_v30 = vpop.f32.mrb[59].mxu1 }
 0x281   :  { %7518 = vst [vmem:[#allocation27_spill] sm:$0xff] %v6635_v30  ;;  %v6649_v30 = vld [vmem:[%s7480_s2] sm:$0xff] }
 0x285   :  { %v6637_v52 = vpop.f32.mrb[60].mxu1 }
 0x286   :  { %7519 = vst [vmem:[#allocation28_spill] sm:$0xff] %v6637_v52  ;;  %v6639_v43 = vpop.f32.mrb[61].mxu1 }
 0x287   :  { %7520 = vst [vmem:[#allocation29_spill] sm:$0xff] %v6639_v43  ;;  %v6641_v57 = vpop.f32.mrb[62].mxu1 }
 0x288   :  { %7521 = vst [vmem:[#allocation30_spill] sm:$0xff] %v6641_v57  ;;  %v6643_v15 = vpop.f32.mrb[63].mxu1  ;;  %v6666_v57 = vld [vmem:[%s7480_s2 + $0x18] sm:$0xff] }
 0x289   :  { %7522 = vst [vmem:[#allocation31_spill] sm:$0xff] %v6643_v15  ;;  %v6660_v15 = vld [vmem:[%s7480_s2 + $0x8] sm:$0xff] }
 0x29b   :  { %v1968_v39 = vpop.f32.mrb[0].mxu0 }
 0x29c   :  { %v4718_v11 = vadd.f32 %v1968_v39, %v6483_v33  ;;  %v1970_v22 = vpop.f32.mrb[1].mxu0 }
 0x29d   :  { %v4719_v29 = vadd.f32 %v1970_v22, %v6490_v34  ;;  %v1972_v24 = vpop.f32.mrb[2].mxu0  ;;  %v5146_v22 = vld [vmem:[#allocation2 + $0x124] ss:$16 sps:$4 sm:$0xff]  }
 0x29e   :  { %v4720_v33 = vadd.f32 %v1972_v24, %v6492_v35  ;;  %v1974_v39 = vpop.f32.mrb[3].mxu0  ;;  %v2195_v43 = vadd.f32 %v4718_v11, %v6649_v30  ;;  %3146 = vmatprep.subr.bf16.mxu1 %v5146_v22 }
 0x29f   :  { %v4721_v34 = vadd.f32 %v1974_v39, %v6494_v36  ;;  %v2196_v63 = vadd.f32 %v4719_v29, %v6660_v15  ;;  %3147 = vmatpush1.bf16.msra.mxu1 %v5144_v25  ;;  %v5147_v39 = vld [vmem:[#allocation2 + $0x140] ss:$16 sps:$4 sm:$0xff]  }
 0x2a0   :  { %v2197_v52 = vadd.f32 %v4720_v33, %v6655_v42  ;;  %3148 = vmatprep.subr.bf16.mxu1 %v5149_v8  ;;  %v6686_v8 = vsub.s32 1, %v5819_v54 }
 0x2a1   :  { %v2198_v14 = vadd.f32 %v4721_v34, %v6666_v57 }
 0x2a2   :  { %v2259_v35 = vmax.f32 %v2195_v43, %v2197_v52  ;;  %v6678_v43 = vsub.s32 0, %v5819_v54  ;;  %7524 = vst [vmem:[#allocation33_spill] sm:$0xff] %v6686_v8 }
 0x2a3   :  { %v2266_v24 = vmax.f32 %v2196_v63, %v2198_v14  ;;  %v1978_v38 = vpop.f32.mrb[4].mxu0  ;;  %3149 = vmatpush1.bf16.msra.mxu1 %v5147_v39  ;;  %v5152_v63 = vld [vmem:[#allocation2 + $0x164] ss:$16 sps:$4 sm:$0xff]  }
 0x2a4   :  { %v2260_v27 = vrot.slane %v2259_v35, 4  ;;  %v4722_v7 = vadd.f32 %v1978_v38, %v6498_v59  ;;  %v1980_v36 = vpop.f32.mrb[5].mxu0  ;;  %7523 = vst [vmem:[#allocation32_spill] sm:$0xff] %v6678_v43  ;;  %3150 = vmatprep.subr.bf16.mxu1 %v5152_v63  ;;  %v5155_v39 = vld [vmem:[#allocation2 + $0x184] ss:$16 sps:$4 sm:$0xff]  }
 0x2a5   :  { %v2267_v12 = vrot.slane %v2266_v24, 4  ;;  %v4723_v11 = vadd.f32 %v1980_v36, %v6505_v60  ;;  %v1982_v33 = vpop.f32.mrb[6].mxu0  ;;  %v5150_v60 = vld [vmem:[#allocation2 + $0x160] ss:$16 sps:$4 sm:$0xff]  }
 0x2a6   :  { %v2261_v53 = vmax.f32 %v2259_v35, %v2260_v27  ;;  %v4724_v29 = vadd.f32 %v1982_v33, %v6507_v4  ;;  %v1984_v34 = vpop.f32.mrb[7].mxu0  ;;  %v2199_v59 = vadd.f32 %v4722_v7, %v6649_v30  ;;  %v2483_v27 = vld [vmem:[%s7481_s3] sm:$0x3] }
 0x2a7   :  { %v2268_v52 = vmax.f32 %v2266_v24, %v2267_v12  ;;  %v4725_v14 = vadd.f32 %v1984_v34, %v6509_v5  ;;  %v2200_v5 = vadd.f32 %v4723_v11, %v6660_v15  ;;  %3151 = vmatpush1.bf16.msra.mxu1 %v5150_v60 }
 0x2a8   :  { %v2262_v25 = vrot.slane %v2261_v53, 2  ;;  %v2201_v38 = vadd.f32 %v4724_v29, %v6655_v42  ;;  %v6691_v29 = vrot.slane %v2483_v27, %v6678_v43  ;;  %3152 = vmatprep.subr.bf16.mxu1 %v5155_v39 }
 0x2a9   :  { %v2269_v4 = vrot.slane %v2268_v52, 2  ;;  %v2202_v12 = vadd.f32 %v4725_v14, %v6666_v57  ;;  %v6695_v14 = vrot.slane %v2483_v27, %v6686_v8 }
 0x2aa   :  { %v2263_v22 = vmax.f32 %v2261_v53, %v2262_v25  ;;  %v2273_v35 = vmax.f32 %v2199_v59, %v2201_v38 }
 0x2ab   :  { %v2270_v7 = vmax.f32 %v2268_v52, %v2269_v4  ;;  %v2280_v24 = vmax.f32 %v2200_v5, %v2202_v12  ;;  %v1988_v36 = vpop.f32.mrb[8].mxu0  ;;  %3153 = vmatpush1.bf16.msra.mxu1 %v5153_v62  ;;  %v5158_v12 = vld [vmem:[#allocation2 + $0x1a4] ss:$16 sps:$4 sm:$0xff]  }
 0x2ac   :  { %v2264_v33 = vrot.slane %v2263_v22, 1  ;;  %v2274_v34 = vrot.slane %v2273_v35, 4  ;;  %v4726_v54 = vadd.f32 %v1988_v36, %v6513_v2  ;;  %v1990_v61 = vpop.f32.mrb[9].mxu0  ;;  %3154 = vmatprep.subr.bf16.mxu1 %v5158_v12 }
 0x2ad   :  { %v2271_v11 = vrot.slane %v2270_v7, 1  ;;  %v2281_v53 = vrot.slane %v2280_v24, 4  ;;  %v4727_v63 = vadd.f32 %v1990_v61, %v6520_v16  ;;  %v1992_v52 = vpop.f32.mrb[10].mxu0  ;;  %v5156_v61 = vld [vmem:[#allocation2 + $0x1a0] ss:$16 sps:$4 sm:$0xff]  }
 0x2ae   :  { %v2265_v25 = vmax.f32 %v2263_v22, %v2264_v33  ;;  %v2275_v59 = vmax.f32 %v2273_v35, %v2274_v34  ;;  %v4728_v38 = vadd.f32 %v1992_v52, %v6522_v3  ;;  %v1994_v60 = vpop.f32.mrb[11].mxu0  ;;  %v2203_v8 = vadd.f32 %v4726_v54, %v6649_v30 }
 0x2af   :  { %v2272_v4 = vmax.f32 %v2270_v7, %v2271_v11  ;;  %v2282_v5 = vmax.f32 %v2280_v24, %v2281_v53  ;;  %v4729_v2 = vadd.f32 %v1994_v60, %v6524_v6  ;;  %v2204_v3 = vadd.f32 %v4727_v63, %v6660_v15  ;;  %3155 = vmatpush1.bf16.msra.mxu1 %v5156_v61  ;;  %v5161_v11 = vld [vmem:[#allocation2 + $0x1c4] ss:$16 sps:$4 sm:$0xff]  }
 0x2b0   :  { %v2495_v36 = vadd.f32 %v6691_v29, %v2265_v25  ;;  %v2276_v27 = vrot.slane %v2275_v59, 2  ;;  %v2205_v16 = vadd.f32 %v4728_v38, %v6655_v42  ;;  %v5159_v38 = vld [vmem:[#allocation2 + $0x1c0] ss:$16 sps:$4 sm:$0xff]   ;;  %3156 = vmatprep.subr.bf16.mxu1 %v5161_v11 }
 0x2b1   :  { %v2496_v22 = vadd.f32 %v6695_v14, %v2272_v4  ;;  %v2283_v35 = vrot.slane %v2282_v5, 2  ;;  %v2206_v62 = vadd.f32 %v4729_v2, %v6666_v57 }
 0x2b2   :  { %v2277_v7 = vmax.f32 %v2275_v59, %v2276_v27  ;;  %v2287_v24 = vmax.f32 %v2203_v8, %v2205_v16  ;;  %v2527_v6 = vmax.f32 %v2495_v36, 0.0  ;;  %v5164_v27 = vld [vmem:[#allocation2 + $0x1e4] ss:$16 sps:$4 sm:$0xff]  }
 0x2b3   :  { %v2284_v39 = vmax.f32 %v2282_v5, %v2283_v35  ;;  %v2294_v33 = vmax.f32 %v2204_v3, %v2206_v62  ;;  %v1998_v34 = vpop.f32.mrb[12].mxu0  ;;  %v2528_v60 = vmax.f32 %v2496_v22, 0.0  ;;  %3157 = vmatpush1.bf16.msra.mxu1 %v5159_v38  ;;  %v5162_v5 = vld [vmem:[#allocation2 + $0x1e0] ss:$16 sps:$4 sm:$0xff]  }
 0x2b4   :  { %v2278_v54 = vrot.slane %v2277_v7, 1  ;;  %v2288_v53 = vrot.slane %v2287_v24, 4  ;;  %v4730_v52 = vadd.f32 %v1998_v34, %v6528_v26  ;;  %v2000_v25 = vpop.f32.mrb[13].mxu0  ;;  %v2559_v16 = vpack.c.bf16 %v2527_v6, %v2527_v6  ;;  %3158 = vmatprep.subr.bf16.mxu1 %v5164_v27 }
 0x2b5   :  { %v2285_v4 = vrot.slane %v2284_v39, 1  ;;  %v2295_v63 = vrot.slane %v2294_v33, 4  ;;  %v4731_v2 = vadd.f32 %v2000_v25, %v6535_v46  ;;  %v2002_v12 = vpop.f32.mrb[14].mxu0  ;;  %v2560_v46 = vpack.c.bf16 %v2528_v60, %v2528_v60 }
 0x2b6   :  { %v2279_v8 = vmax.f32 %v2277_v7, %v2278_v54  ;;  %v2289_v59 = vmax.f32 %v2287_v24, %v2288_v53  ;;  %v2004_v36 = vpop.f32.mrb[15].mxu0  ;;  %v4732_v22 = vadd.f32 %v2002_v12, %v6537_v10  ;;  %v2207_v34 = vadd.f32 %v4730_v52, %v6649_v30 }
 0x2b7   :  { %v2286_v61 = vmax.f32 %v2284_v39, %v2285_v4  ;;  %v2296_v35 = vmax.f32 %v2294_v33, %v2295_v63  ;;  %v4733_v62 = vadd.f32 %v2004_v36, %v6539_v37  ;;  %3159 = vmatpush1.bf16.msra.mxu1 %v5162_v5  ;;  %v2709_v33 = vunpack.c.l.b16 %v2559_v16 }
 0x2b8   :  { %v2497_v26 = vadd.f32 %v6691_v29, %v2279_v8  ;;  %v2290_v3 = vrot.slane %v2289_v59, 2  ;;  %v2209_v53 = vadd.f32 %v4732_v22, %v6655_v42  ;;  %v2208_v10 = vadd.f32 %v4731_v2, %v6660_v15 }
 0x2b9   :  { %v2498_v7 = vadd.f32 %v6695_v14, %v2286_v61  ;;  %v2297_v24 = vrot.slane %v2296_v35, 2  ;;  %v2210_v39 = vadd.f32 %v4733_v62, %v6666_v57  ;;  %v5167_v62 = vld [vmem:[#allocation2 + $0xc] ss:$16 sps:$4 sm:$0xff]  }
 0x2ba   :  { %v2529_v11 = vmax.f32 %v2497_v26, 0.0  ;;  %v2291_v54 = vmax.f32 %v2289_v59, %v2290_v3  ;;  %v2301_v8 = vmax.f32 %v2207_v34, %v2209_v53  ;;  %3171 = vmatprep.subr.bf16.mxu1 %v5167_v62 }
 0x2bb   :  { %v2530_v25 = vmax.f32 %v2498_v7, 0.0  ;;  %v2298_v38 = vmax.f32 %v2296_v35, %v2297_v24  ;;  %v2008_v37 = vpop.f32.mrb[16].mxu0  ;;  %v2308_v59 = vmax.f32 %v2208_v10, %v2210_v39  ;;  %v2710_v10 = vunpack.c.l.b16 %v2560_v46 }
 0x2bc   :  { %v2561_v4 = vpack.c.bf16 %v2529_v11, %v2529_v11  ;;  %v3282_v63 = vrot.slane %v2529_v11, 7  ;;  %v2292_v12 = vrot.slane %v2291_v54, 1  ;;  %v2010_v36 = vpop.f32.mrb[17].mxu0  ;;  %v2302_v16 = vrot.slane %v2301_v8, 4 }
 0x2bd   :  { %v2562_v27 = vpack.c.bf16 %v2530_v25, %v2530_v25  ;;  %v3296_v52 = vrot.slane %v2530_v25, 7  ;;  %v2299_v61 = vrot.slane %v2298_v38, 1  ;;  %v2012_v26 = vpop.f32.mrb[18].mxu0  ;;  %v2309_v34 = vrot.slane %v2308_v59, 4 }
 0x2be   :  { %v2711_v3 = vunpack.c.l.b16 %v2561_v4  ;;  %v6717_v22 = vsel %vm2742_vm4, %v3282_v63, %v2527_v6  ;;  %v2293_v5 = vmax.f32 %v2291_v54, %v2292_v12  ;;  %v2014_v35 = vpop.f32.mrb[19].mxu0  ;;  %v2303_v25 = vmax.f32 %v2301_v8, %v2302_v16 }
 0x2bf   :  { %v2712_v2 = vunpack.c.l.b16 %v2562_v27  ;;  %v6720_v7 = vsel %vm2742_vm4, %v3296_v52, %v2528_v60  ;;  %v2300_v24 = vmax.f32 %v2298_v38, %v2299_v61  ;;  %v4734_v39 = vadd.f32 %v2008_v37, %v6549_v18 }
 0x2c0   :  { %v2741_v11 = vrot.slane %v2711_v3, 7  ;;  %v2499_v53 = vadd.f32 %v6691_v29, %v2293_v5  ;;  %v2310_v54 = vmax.f32 %v2308_v59, %v2309_v34  ;;  %v4735_v4 = vadd.f32 %v2010_v36, %v6551_v55 }
 0x2c1   :  { %v2500_v6 = vadd.f32 %v6695_v14, %v2300_v24  ;;  %v2762_v60 = vrot.slane %v2712_v2, 7  ;;  %v2304_v38 = vrot.slane %v2303_v25, 2  ;;  %v2211_v8 = vadd.f32 %v4734_v39, %v6649_v30 }
 0x2c2   :  { %v2743_v63 = vsel %vm2742_vm4, %v2741_v11, %v2709_v33  ;;  %v6727_v12 = vmax.f32 %v2499_v53, 0.0  ;;  %v2311_v52 = vrot.slane %v2310_v54, 2  ;;  %v4736_v18 = vadd.f32 %v2012_v26, %v6553_v1 }
 0x2c3   :  { %v6729_v27 = vmax.f32 %v2500_v6, 0.0  ;;  %v2018_v46 = vpop.f32.mrb[20].mxu0  ;;  %v2305_v61 = vmax.f32 %v2303_v25, %v2304_v38  ;;  %v2212_v55 = vadd.f32 %v4735_v4, %v6660_v15  ;;  %v4737_v33 = vadd.f32 %v2014_v35, %v6555_v19 }
 0x2c4   :  { %v2563_v37 = vpack.c.bf16 %v6727_v12, %v6727_v12  ;;  %v2020_v36 = vpop.f32.mrb[21].mxu0  ;;  %v2312_v5 = vmax.f32 %v2310_v54, %v2311_v52  ;;  %v2213_v16 = vadd.f32 %v4736_v18, %v6655_v42  ;;  %v4738_v24 = vadd.f32 %v2018_v46, %v6557_v56 }
 0x2c5   :  { %v2564_v3 = vpack.c.bf16 %v6729_v27, %v6729_v27  ;;  %v2022_v62 = vpop.f32.mrb[22].mxu0  ;;  %v2306_v26 = vrot.slane %v2305_v61, 1  ;;  %v2214_v2 = vadd.f32 %v4737_v33, %v6666_v57  ;;  %v4739_v53 = vadd.f32 %v2020_v36, %v6559_v0 }
 0x2c6   :  { %v2713_v1 = vunpack.c.l.b16 %v2563_v37  ;;  %v2024_v34 = vpop.f32.mrb[23].mxu0  ;;  %v2313_v19 = vrot.slane %v2312_v5, 1  ;;  %v2315_v35 = vmax.f32 %v2211_v8, %v2213_v16  ;;  %v2215_v52 = vadd.f32 %v4738_v24, %v6649_v30 }
 0x2c7   :  { %v6745_v39 = vunpack.c.l.b16 %v2564_v3  ;;  %v2307_v6 = vmax.f32 %v2305_v61, %v2306_v26  ;;  %v2322_v54 = vmax.f32 %v2212_v55, %v2214_v2  ;;  %v2216_v18 = vadd.f32 %v4739_v53, %v6660_v15 }
 0x2c8   :  { %v2744_v25 = vrot.slane %v2713_v1, 6  ;;  %v2314_v4 = vmax.f32 %v2312_v5, %v2313_v19  ;;  %v2316_v38 = vrot.slane %v2315_v35, 4  ;;  %v4740_v8 = vadd.f32 %v2022_v62, %v6561_v47 }
 0x2c9   :  { %v2501_v46 = vadd.f32 %v6691_v29, %v2307_v6  ;;  %v2323_v37 = vrot.slane %v2322_v54, 4  ;;  %v4741_v61 = vadd.f32 %v2024_v34, %v6563_v50  ;;  %v6755_v36 = vsel %vm2742_vm4, %v2762_v60, %v2710_v10 }
 0x2ca   :  { %v2746_v56 = vsel %vm2745_vm5, %v2744_v25, %v2743_v63  ;;  %v2502_v0 = vadd.f32 %v6695_v14, %v2314_v4  ;;  %v2317_v33 = vmax.f32 %v2315_v35, %v2316_v38  ;;  %v2217_v63 = vadd.f32 %v4740_v8, %v6655_v42  ;;  %v7528_v35 = vld [vmem:[#allocation12_spill] sm:$0xff] }
 0x2cb   :  { %v2028_v55 = vpop.f32.mrb[24].mxu0  ;;  %v6757_v3 = vmax.f32 %v2501_v46, 0.0  ;;  %v2324_v5 = vmax.f32 %v2322_v54, %v2323_v37  ;;  %v2218_v62 = vadd.f32 %v4741_v61, %v6666_v57 }
 0x2cc   :  { %v4742_v16 = vadd.f32 %v2028_v55, %v6565_v21  ;;  %v2030_v1 = vpop.f32.mrb[25].mxu0  ;;  %v6761_v26 = vmax.f32 %v2502_v0, 0.0  ;;  %v2318_v47 = vrot.slane %v2317_v33, 2  ;;  %v2329_v34 = vmax.f32 %v2215_v52, %v2217_v63 }
 0x2cd   :  { %v4743_v2 = vadd.f32 %v2030_v1, %v6567_v28  ;;  %v2032_v50 = vpop.f32.mrb[26].mxu0  ;;  %v2565_v10 = vpack.c.bf16 %v6757_v3, %v6757_v3  ;;  %v2325_v60 = vrot.slane %v2324_v5, 2  ;;  %v2336_v25 = vmax.f32 %v2216_v18, %v2218_v62 }
 0x2ce   :  { %v2034_v19 = vpop.f32.mrb[27].mxu0  ;;  %v2566_v21 = vpack.c.bf16 %v6761_v26, %v6761_v26  ;;  %v2319_v53 = vmax.f32 %v2317_v33, %v2318_v47  ;;  %v2330_v4 = vrot.slane %v2329_v34, 4  ;;  %v2219_v8 = vadd.f32 %v4742_v16, %v6649_v30 }
 0x2cf   :  { %v2715_v6 = vunpack.c.l.b16 %v2565_v10  ;;  %v2326_v28 = vmax.f32 %v2324_v5, %v2325_v60  ;;  %v2337_v37 = vrot.slane %v2336_v25, 4  ;;  %v4744_v55 = vadd.f32 %v2032_v50, %v6569_v40 }
 0x2d0   :  { %v6772_v38 = vunpack.c.l.b16 %v2566_v21  ;;  %v2320_v46 = vrot.slane %v2319_v53, 1  ;;  %v2331_v61 = vmax.f32 %v2329_v34, %v2330_v4  ;;  %v2220_v18 = vadd.f32 %v4743_v2, %v6660_v15 }
 0x2d1   :  { %v2747_v52 = vrot.slane %v2715_v6, 5  ;;  %v2327_v0 = vrot.slane %v2326_v28, 1  ;;  %v2338_v1 = vmax.f32 %v2336_v25, %v2337_v37  ;;  %v4745_v33 = vadd.f32 %v2034_v19, %v6571_v9 }
 0x2d2   :  { %v2321_v63 = vmax.f32 %v2319_v53, %v2320_v46  ;;  %v2332_v10 = vrot.slane %v2331_v61, 2  ;;  %v2221_v60 = vadd.f32 %v4744_v55, %v6655_v42 }
 0x2d3   :  { %v2038_v47 = vpop.f32.mrb[28].mxu0  ;;  %v6779_v5 = vsel %vm2748_vm6, %v2747_v52, %v2746_v56  ;;  %v2328_v62 = vmax.f32 %v2326_v28, %v2327_v0  ;;  %v2339_v34 = vrot.slane %v2338_v1, 2  ;;  %v2222_v40 = vadd.f32 %v4745_v33, %v6666_v57 }
 0x2d4   :  { %v2040_v16 = vpop.f32.mrb[29].mxu0  ;;  %v2503_v21 = vadd.f32 %v6691_v29, %v2321_v63  ;;  %v4746_v50 = vadd.f32 %v2038_v47, %v6573_v48  ;;  %v2333_v9 = vmax.f32 %v2331_v61, %v2332_v10  ;;  %v2343_v19 = vmax.f32 %v2219_v8, %v2221_v60 }
 0x2d5   :  { %v2042_v53 = vpop.f32.mrb[30].mxu0  ;;  %v2504_v2 = vadd.f32 %v6695_v14, %v2328_v62  ;;  %v4747_v56 = vadd.f32 %v2040_v16, %v6575_v41  ;;  %v2340_v4 = vmax.f32 %v2338_v1, %v2339_v34  ;;  %v2350_v46 = vmax.f32 %v2220_v18, %v2222_v40 }
 0x2d6   :  { %v2044_v25 = vpop.f32.mrb[31].mxu0  ;;  %v6788_v28 = vmax.f32 %v2503_v21, 0.0  ;;  %v2334_v52 = vrot.slane %v2333_v9, 1  ;;  %v2344_v0 = vrot.slane %v2343_v19, 4  ;;  %v2223_v48 = vadd.f32 %v4746_v50, %v6649_v30 }
 0x2d7   :  { %v6790_v37 = vmax.f32 %v2504_v2, 0.0  ;;  %v2341_v61 = vrot.slane %v2340_v4, 1  ;;  %v2351_v8 = vrot.slane %v2350_v46, 4  ;;  %v2224_v41 = vadd.f32 %v4747_v56, %v6660_v15 }
 0x2d8   :  { %v2567_v55 = vpack.c.bf16 %v6788_v28, %v6788_v28  ;;  %v2335_v1 = vmax.f32 %v2333_v9, %v2334_v52  ;;  %v2345_v18 = vmax.f32 %v2343_v19, %v2344_v0  ;;  %v4748_v60 = vadd.f32 %v2042_v53, %v6577_v17 }
 0x2d9   :  { %v2568_v33 = vpack.c.bf16 %v6790_v37, %v6790_v37  ;;  %v2342_v62 = vmax.f32 %v2340_v4, %v2341_v61  ;;  %v2352_v10 = vmax.f32 %v2350_v46, %v2351_v8  ;;  %v4749_v50 = vadd.f32 %v2044_v25, %v6579_v13 }
 0x2da   :  { %v6799_v47 = vunpack.c.l.b16 %v2567_v55  ;;  %v2505_v34 = vadd.f32 %v6691_v29, %v2335_v1  ;;  %v2346_v40 = vrot.slane %v2345_v18, 2  ;;  %v2225_v52 = vadd.f32 %v4748_v60, %v6655_v42 }
 0x2db   :  { %v2048_v16 = vpop.f32.mrb[32].mxu0  ;;  %v6802_v21 = vunpack.c.l.b16 %v2568_v33  ;;  %v2506_v9 = vadd.f32 %v6695_v14, %v2342_v62  ;;  %v2353_v19 = vrot.slane %v2352_v10, 2  ;;  %v2226_v0 = vadd.f32 %v4749_v50, %v6666_v57 }
 0x2dc   :  { %v2050_v2 = vpop.f32.mrb[33].mxu0  ;;  %v6810_v17 = vmax.f32 %v2505_v34, 0.0  ;;  %v2347_v53 = vmax.f32 %v2345_v18, %v2346_v40  ;;  %v2357_v25 = vmax.f32 %v2223_v48, %v2225_v52  ;;  %v4750_v8 = vadd.f32 %v2048_v16, %v6581_v20 }
 0x2dd   :  { %v2052_v4 = vpop.f32.mrb[34].mxu0  ;;  %v6813_v61 = vmax.f32 %v2506_v9, 0.0  ;;  %v2354_v13 = vmax.f32 %v2352_v10, %v2353_v19  ;;  %v2364_v60 = vmax.f32 %v2224_v41, %v2226_v0  ;;  %v4751_v48 = vadd.f32 %v2050_v2, %v6583_v23 }
 0x2de   :  { %v2054_v55 = vpop.f32.mrb[35].mxu0  ;;  %v2569_v1 = vpack.c.bf16 %v6810_v17, %v6810_v17  ;;  %v2348_v62 = vrot.slane %v2347_v53, 1  ;;  %v2358_v50 = vrot.slane %v2357_v25, 4  ;;  %v4752_v19 = vadd.f32 %v2052_v4, %v6585_v32 }
 0x2df   :  { %v2355_v40 = vrot.slane %v2354_v13, 1  ;;  %v2365_v10 = vrot.slane %v2364_v60, 4  ;;  %v4753_v52 = vadd.f32 %v2054_v55, %v6587_v51  ;;  %v2227_v18 = vadd.f32 %v4750_v8, %v6649_v30 }
 0x2e0   :  { %v6821_v56 = vunpack.c.l.b16 %v2569_v1  ;;  %v2349_v9 = vmax.f32 %v2347_v53, %v2348_v62  ;;  %v2359_v16 = vmax.f32 %v2357_v25, %v2358_v50  ;;  %v2228_v34 = vadd.f32 %v4751_v48, %v6660_v15 }
 0x2e1   :  { %v2356_v20 = vmax.f32 %v2354_v13, %v2355_v40  ;;  %v2366_v0 = vmax.f32 %v2364_v60, %v2365_v10  ;;  %v2229_v23 = vadd.f32 %v4752_v19, %v6655_v42  ;;  %v2230_v2 = vadd.f32 %v4753_v52, %v6666_v57 }
 0x2e2   :  { %v2507_v41 = vadd.f32 %v6691_v29, %v2349_v9  ;;  %v2360_v62 = vrot.slane %v2359_v16, 2 }
 0x2e3   :  { %v2058_v54 = vpop.f32.mrb[36].mxu0  ;;  %v2508_v53 = vadd.f32 %v6695_v14, %v2356_v20  ;;  %v2367_v51 = vrot.slane %v2366_v0, 2  ;;  %v2371_v40 = vmax.f32 %v2227_v18, %v2229_v23  ;;  %v2378_v50 = vmax.f32 %v2228_v34, %v2230_v2 }
 0x2e4   :  { %v2060_v1 = vpop.f32.mrb[37].mxu0  ;;  %v6832_v32 = vmax.f32 %v2507_v41, 0.0  ;;  %v4754_v4 = vadd.f32 %v2058_v54, %v6589_v31  ;;  %v2361_v60 = vmax.f32 %v2359_v16, %v2360_v62 }
 0x2e5   :  { %v2062_v13 = vpop.f32.mrb[38].mxu0  ;;  %v4755_v55 = vadd.f32 %v2060_v1, %v6591_v44  ;;  %v6839_v10 = vmax.f32 %v2508_v53, 0.0  ;;  %v2368_v48 = vmax.f32 %v2366_v0, %v2367_v51  ;;  %v2372_v52 = vrot.slane %v2371_v40, 4 }
 0x2e6   :  { %v2064_v25 = vpop.f32.mrb[39].mxu0  ;;  %v2571_v9 = vpack.c.bf16 %v6832_v32, %v6832_v32  ;;  %v2231_v20 = vadd.f32 %v4754_v4, %v6649_v30  ;;  %v2362_v19 = vrot.slane %v2361_v60, 1  ;;  %v2379_v41 = vrot.slane %v2378_v50, 4 }
 0x2e7   :  { %v4756_v31 = vadd.f32 %v2062_v13, %v6593_v49  ;;  %v2369_v54 = vrot.slane %v2368_v48, 1  ;;  %v2232_v16 = vadd.f32 %v4755_v55, %v6660_v15  ;;  %v4757_v34 = vadd.f32 %v2064_v25, %v6595_v58 }
 0x2e8   :  { %v6843_v44 = vunpack.c.l.b16 %v2571_v9  ;;  %v2363_v18 = vmax.f32 %v2361_v60, %v2362_v19  ;;  %v2373_v1 = vmax.f32 %v2371_v40, %v2372_v52  ;;  %v2380_v62 = vmax.f32 %v2378_v50, %v2379_v41 }
 0x2e9   :  { %v2233_v53 = vadd.f32 %v4756_v31, %v6655_v42  ;;  %v2370_v23 = vmax.f32 %v2368_v48, %v2369_v54  ;;  %v2234_v2 = vadd.f32 %v4757_v34, %v6666_v57  ;;  %v7525_v48 = vld [vmem:[#allocation9_spill] sm:$0xff] }
 0x2ea   :  { %v2509_v13 = vadd.f32 %v6691_v29, %v2363_v18  ;;  %v2374_v55 = vrot.slane %v2373_v1, 2  ;;  %v2381_v9 = vrot.slane %v2380_v62, 2 }
 0x2eb   :  { %v2068_v0 = vpop.f32.mrb[40].mxu0  ;;  %v2385_v58 = vmax.f32 %v2231_v20, %v2233_v53  ;;  %v2510_v40 = vadd.f32 %v6695_v14, %v2370_v23  ;;  %v2392_v50 = vmax.f32 %v2232_v16, %v2234_v2  ;;  %v7527_v20 = vld [vmem:[#allocation11_spill] sm:$0xff] }
 0x2ec   :  { %v4758_v51 = vadd.f32 %v2068_v0, %v6597_v45  ;;  %v2070_v4 = vpop.f32.mrb[41].mxu0  ;;  %v6856_v41 = vmax.f32 %v2509_v13, 0.0  ;;  %v2375_v45 = vmax.f32 %v2373_v1, %v2374_v55  ;;  %v2382_v31 = vmax.f32 %v2380_v62, %v2381_v9  ;;  %v7526_v0 = vld [vmem:[#allocation10_spill] sm:$0xff] }
 0x2ed   :  { %v2072_v25 = vpop.f32.mrb[42].mxu0  ;;  %v4759_v19 = vadd.f32 %v2070_v4, %v7525_v48  ;;  %v2386_v54 = vrot.slane %v2385_v58, 4  ;;  %v2393_v34 = vrot.slane %v2392_v50, 4 }
 0x2ee   :  { %v2074_v52 = vpop.f32.mrb[43].mxu0  ;;  %v2235_v18 = vadd.f32 %v4758_v51, %v6649_v30  ;;  %v4760_v11 = vadd.f32 %v2072_v25, %v7526_v0  ;;  %v2573_v63 = vpack.c.bf16 %v6856_v41, %v6856_v41  ;;  %v2376_v23 = vrot.slane %v2375_v45, 1 }
 0x2ef   :  { %v4761_v53 = vadd.f32 %v2074_v52, %v7527_v20  ;;  %v2383_v16 = vrot.slane %v2382_v31, 1  ;;  %v2387_v2 = vmax.f32 %v2385_v58, %v2386_v54  ;;  %v2394_v4 = vmax.f32 %v2392_v50, %v2393_v34 }
 0x2f0   :  { %v2236_v13 = vadd.f32 %v4759_v19, %v6660_v15  ;;  %v2237_v1 = vadd.f32 %v4760_v11, %v6655_v42  ;;  %v6866_v55 = vunpack.c.l.b16 %v2573_v63  ;;  %v2377_v51 = vmax.f32 %v2375_v45, %v2376_v23 }
 0x2f1   :  { %v2238_v62 = vadd.f32 %v4761_v53, %v6666_v57  ;;  %v2384_v9 = vmax.f32 %v2382_v31, %v2383_v16  ;;  %v2388_v25 = vrot.slane %v2387_v2, 2  ;;  %v2395_v52 = vrot.slane %v2394_v4, 2 }
 0x2f2   :  { %v2399_v0 = vmax.f32 %v2235_v18, %v2237_v1  ;;  %v2511_v58 = vadd.f32 %v6691_v29, %v2377_v51  ;;  %v6871_v54 = vmax.f32 %v2510_v40, 0.0 }
 0x2f3   :  { %v2078_v48 = vpop.f32.mrb[44].mxu0  ;;  %v2406_v20 = vmax.f32 %v2236_v13, %v2238_v62  ;;  %v2512_v50 = vadd.f32 %v6695_v14, %v2384_v9  ;;  %v2389_v19 = vmax.f32 %v2387_v2, %v2388_v25  ;;  %v2396_v45 = vmax.f32 %v2394_v4, %v2395_v52  ;;  %v7529_v13 = vld [vmem:[#allocation13_spill] sm:$0xff] }
 0x2f4   :  { %v4762_v59 = vadd.f32 %v2078_v48, %v7528_v35  ;;  %v2080_v60 = vpop.f32.mrb[45].mxu0  ;;  %v2400_v31 = vrot.slane %v2399_v0, 4  ;;  %v2543_v23 = vmax.f32 %v2511_v58, 0.0  ;;  %v7530_v48 = vld [vmem:[#allocation14_spill] sm:$0xff] }
 0x2f5   :  { %v2082_v11 = vpop.f32.mrb[46].mxu0  ;;  %v2407_v34 = vrot.slane %v2406_v20, 4  ;;  %v2544_v18 = vmax.f32 %v2512_v50, 0.0  ;;  %v2390_v16 = vrot.slane %v2389_v19, 1  ;;  %v4763_v35 = vadd.f32 %v2080_v60, %v7529_v13  ;;  %v7531_v13 = vld [vmem:[#allocation15_spill] sm:$0xff] }
 0x2f6   :  { %v2084_v53 = vpop.f32.mrb[47].mxu0  ;;  %v2397_v1 = vrot.slane %v2396_v45, 1  ;;  %v2401_v62 = vmax.f32 %v2399_v0, %v2400_v31  ;;  %v4764_v9 = vadd.f32 %v2082_v11, %v7530_v48  ;;  %v2575_v2 = vpack.c.bf16 %v2543_v23, %v2543_v23 }
 0x2f7   :  { %v2408_v51 = vmax.f32 %v2406_v20, %v2407_v34  ;;  %v2576_v25 = vpack.c.bf16 %v2544_v18, %v2544_v18  ;;  %v2391_v40 = vmax.f32 %v2389_v19, %v2390_v16  ;;  %v2239_v8 = vadd.f32 %v4762_v59, %v6649_v30 }
 0x2f8   :  { %v2398_v63 = vmax.f32 %v2396_v45, %v2397_v1  ;;  %v2402_v4 = vrot.slane %v2401_v62, 2  ;;  %v2241_v46 = vadd.f32 %v4764_v9, %v6655_v42  ;;  %v2725_v58 = vunpack.c.l.b16 %v2575_v2  ;;  %v7532_v1 = vld [vmem:[#allocation16_spill] sm:$0xff]  ;;  %v7533_v9 = vld [vmem:[#allocation17_spill] sm:$0xff] }
 0x2f9   :  { %v2409_v52 = vrot.slane %v2408_v51, 2  ;;  %v2513_v50 = vadd.f32 %v6691_v29, %v2391_v40  ;;  %v2240_v60 = vadd.f32 %v4763_v35, %v6660_v15  ;;  %v4765_v0 = vadd.f32 %v2084_v53, %v7531_v13 }
 0x2fa   :  { %v2514_v11 = vadd.f32 %v6695_v14, %v2398_v63  ;;  %v2403_v31 = vmax.f32 %v2401_v62, %v2402_v4  ;;  %v2413_v19 = vmax.f32 %v2239_v8, %v2241_v46  ;;  %v6885_v13 = vunpack.c.l.b16 %v2576_v25 }
 0x2fb   :  { %v2088_v20 = vpop.f32.mrb[48].mxu0  ;;  %v2410_v34 = vmax.f32 %v2408_v51, %v2409_v52  ;;  %v2545_v59 = vmax.f32 %v2513_v50, 0.0  ;;  %v2242_v45 = vadd.f32 %v4765_v0, %v6666_v57 }
 0x2fc   :  { %v2090_v16 = vpop.f32.mrb[49].mxu0  ;;  %v4766_v48 = vadd.f32 %v2088_v20, %v7532_v1  ;;  %v2546_v40 = vmax.f32 %v2514_v11, 0.0  ;;  %v2404_v6 = vrot.slane %v2403_v31, 1  ;;  %v2414_v24 = vrot.slane %v2413_v19, 4 }
 0x2fd   :  { %v4767_v2 = vadd.f32 %v2090_v16, %v7533_v9  ;;  %v2092_v33 = vpop.f32.mrb[50].mxu0  ;;  %v2411_v35 = vrot.slane %v2410_v34, 1  ;;  %v2577_v63 = vpack.c.bf16 %v2545_v59, %v2545_v59  ;;  %v3310_v62 = vrot.slane %v2545_v59, 7 }
 0x2fe   :  { %v2094_v53 = vpop.f32.mrb[51].mxu0  ;;  %v2420_v51 = vmax.f32 %v2240_v60, %v2242_v45  ;;  %v2578_v46 = vpack.c.bf16 %v2546_v40, %v2546_v40  ;;  %v3324_v8 = vrot.slane %v2546_v40, 7  ;;  %v2405_v4 = vmax.f32 %v2403_v31, %v2404_v6 }
 0x2ff   :  { %v2412_v52 = vmax.f32 %v2410_v34, %v2411_v35  ;;  %v2727_v50 = vunpack.c.l.b16 %v2577_v63  ;;  %v6888_v0 = vsel %vm2742_vm4, %v3310_v62, %v2543_v23  ;;  %v2415_v20 = vmax.f32 %v2413_v19, %v2414_v24  ;;  %v7537_v19 = vld [vmem:[#allocation18_spill] sm:$0xff] }
 0x300   :  { %v2421_v16 = vrot.slane %v2420_v51, 4  ;;  %v6890_v11 = vunpack.c.l.b16 %v2578_v46  ;;  %v6893_v1 = vsel %vm2742_vm4, %v3324_v8, %v2544_v18  ;;  %v2515_v25 = vadd.f32 %v6691_v29, %v2405_v4  ;;  %v7538_v46 = vld [vmem:[#allocation19_spill] sm:$0xff] }
 0x301   :  { %7534 = vst [vmem:[#allocation9_spill] sm:$0xff] %v6893_v1  ;;  %v2516_v59 = vadd.f32 %v6695_v14, %v2412_v52  ;;  %v2776_v60 = vrot.slane %v2727_v50, 7  ;;  %v2416_v45 = vrot.slane %v2415_v20, 2  ;;  %v2243_v6 = vadd.f32 %v4766_v48, %v6649_v30  ;;  %v7549_v1 = vld [vmem:[#allocation28_spill] sm:$0xff] }
 0x302   :  { %v2422_v9 = vmax.f32 %v2420_v51, %v2421_v16  ;;  %v6898_v34 = vmax.f32 %v2515_v25, 0.0  ;;  %v2244_v24 = vadd.f32 %v4767_v2, %v6660_v15  ;;  %v4768_v40 = vadd.f32 %v2092_v33, %v7537_v19 }
 0x303   :  { %v2098_v31 = vpop.f32.mrb[52].mxu0  ;;  %v6900_v23 = vmax.f32 %v2516_v59, 0.0  ;;  %v2777_v35 = vsel %vm2742_vm4, %v2776_v60, %v2725_v58  ;;  %v2417_v63 = vmax.f32 %v2415_v20, %v2416_v45  ;;  %v4769_v8 = vadd.f32 %v2094_v53, %v7538_v46  ;;  %v7539_v59 = vld [vmem:[#allocation20_spill] sm:$0xff]  ;;  %v7540_v45 = vld [vmem:[#allocation21_spill] sm:$0xff] }
 0x304   :  { %7535 = vst [vmem:[#allocation10_spill] sm:$0xff] %v6898_v34  ;;  %v2100_v18 = vpop.f32.mrb[53].mxu0  ;;  %v2423_v62 = vrot.slane %v2422_v9, 2  ;;  %v2579_v48 = vpack.c.bf16 %v6898_v34, %v6898_v34  ;;  %v2245_v58 = vadd.f32 %v4768_v40, %v6655_v42  ;;  %v4770_v60 = vadd.f32 %v2098_v31, %v7539_v59 }
 0x305   :  { %7536 = vst [vmem:[#allocation11_spill] sm:$0xff] %v6900_v23  ;;  %v2102_v4 = vpop.f32.mrb[54].mxu0  ;;  %v2580_v2 = vpack.c.bf16 %v6900_v23, %v6900_v23  ;;  %v2418_v33 = vrot.slane %v2417_v63, 1  ;;  %v2246_v20 = vadd.f32 %v4769_v8, %v6666_v57  ;;  %v4771_v19 = vadd.f32 %v2100_v18, %v7540_v45  ;;  %v7541_v18 = vld [vmem:[#allocation22_spill] sm:$0xff] }
 0x306   :  { %v2104_v50 = vpop.f32.mrb[55].mxu0  ;;  %v2424_v16 = vmax.f32 %v2422_v9, %v2423_v62  ;;  %v2729_v25 = vunpack.c.l.b16 %v2579_v48  ;;  %v2427_v52 = vmax.f32 %v2243_v6, %v2245_v58  ;;  %v2247_v40 = vadd.f32 %v4770_v60, %v6649_v30 }
 0x307   :  { %v6914_v53 = vunpack.c.l.b16 %v2580_v2  ;;  %v2419_v46 = vmax.f32 %v2417_v63, %v2418_v33  ;;  %v2434_v49 = vmax.f32 %v2244_v24, %v2246_v20  ;;  %v4772_v63 = vadd.f32 %v2102_v4, %v7541_v18  ;;  %v7542_v33 = vld [vmem:[#allocation23_spill] sm:$0xff]  ;;  %v7543_v24 = vld [vmem:[#allocation24_spill] sm:$0xff]  ;;  %v5462_v18 = vld [vmem:[%s7480_s2 + $0x8] sm:$0xff] }
 0x308   :  { %v2425_v51 = vrot.slane %v2424_v16, 1  ;;  %v2778_v43 = vrot.slane %v2729_v25, 6  ;;  %v2428_v48 = vrot.slane %v2427_v52, 4  ;;  %v4773_v6 = vadd.f32 %v2104_v50, %v7542_v33 }
 0x309   :  { %v2517_v62 = vadd.f32 %v6691_v29, %v2419_v46  ;;  %v2435_v2 = vrot.slane %v2434_v49, 4 }
 0x30a   :  { %v2426_v8 = vmax.f32 %v2424_v16, %v2425_v51  ;;  %v2779_v31 = vsel %vm2745_vm5, %v2778_v43, %v2777_v35  ;;  %v2429_v30 = vmax.f32 %v2427_v52, %v2428_v48  ;;  %v2248_v51 = vadd.f32 %v4771_v19, %v6660_v15  ;;  %v7545_v35 = vld [vmem:[#allocation25_spill] sm:$0xff] }
 0x30b   :  { %v2108_v34 = vpop.f32.mrb[56].mxu0  ;;  %v6926_v25 = vmax.f32 %v2517_v62, 0.0  ;;  %v2436_v60 = vmax.f32 %v2434_v49, %v2435_v2  ;;  %v2249_v16 = vadd.f32 %v4772_v63, %v6655_v42  ;;  %v2250_v43 = vadd.f32 %v4773_v6, %v6666_v57  ;;  %v5461_v49 = vld [vmem:[%s7480_s2] sm:$0xff] }
 0x30c   :  { %v4774_v58 = vadd.f32 %v2108_v34, %v7543_v24  ;;  %v2110_v20 = vpop.f32.mrb[57].mxu0  ;;  %v2518_v59 = vadd.f32 %v6695_v14, %v2426_v8  ;;  %v2430_v62 = vrot.slane %v2429_v30, 2 }
 0x30d   :  { %7544 = vst [vmem:[#allocation12_spill] sm:$0xff] %v6926_v25  ;;  %v2112_v45 = vpop.f32.mrb[58].mxu0  ;;  %v4775_v4 = vadd.f32 %v2110_v20, %v7545_v35  ;;  %v2581_v34 = vpack.c.bf16 %v6926_v25, %v6926_v25  ;;  %v2437_v19 = vrot.slane %v2436_v60, 2  ;;  %v2441_v42 = vmax.f32 %v2247_v40, %v2249_v16  ;;  %v7547_v20 = vld [vmem:[#allocation26_spill] sm:$0xff] }
 0x30e   :  { %v2114_v46 = vpop.f32.mrb[59].mxu0  ;;  %v6935_v50 = vmax.f32 %v2518_v59, 0.0  ;;  %v2251_v52 = vadd.f32 %v5461_v49, %v4774_v58  ;;  %v2448_v8 = vmax.f32 %v2248_v51, %v2250_v43  ;;  %v2431_v2 = vmax.f32 %v2429_v30, %v2430_v62  ;;  %v7548_v51 = vld [vmem:[#allocation27_spill] sm:$0xff]  ;;  %v5463_v62 = vld [vmem:[%s7480_s2 + $0x10] sm:$0xff] }
 0x30f   :  { %v2731_v57 = vunpack.c.l.b16 %v2581_v34  ;;  %v2252_v63 = vadd.f32 %v5462_v18, %v4775_v4  ;;  %v2438_v33 = vmax.f32 %v2436_v60, %v2437_v19  ;;  %v2442_v6 = vrot.slane %v2441_v42, 4 }
 0x310   :  { %7546 = vst [vmem:[#allocation13_spill] sm:$0xff] %v6935_v50  ;;  %v2582_v48 = vpack.c.bf16 %v6935_v50, %v6935_v50  ;;  %v2449_v24 = vrot.slane %v2448_v8, 4  ;;  %v4776_v58 = vadd.f32 %v2112_v45, %v7547_v20  ;;  %v2432_v40 = vrot.slane %v2431_v2, 1 }
 0x311   :  { %v2780_v59 = vrot.slane %v2731_v57, 5  ;;  %v4777_v16 = vadd.f32 %v2114_v46, %v7548_v51  ;;  %v2439_v34 = vrot.slane %v2438_v33, 1  ;;  %v2443_v9 = vmax.f32 %v2441_v42, %v2442_v6  ;;  %v5464_v46 = vld [vmem:[%s7480_s2 + $0x18] sm:$0xff] }
 0x312   :  { %v2450_v30 = vmax.f32 %v2448_v8, %v2449_v24  ;;  %v2253_v4 = vadd.f32 %v5463_v62, %v4776_v58  ;;  %v6955_v45 = vunpack.c.l.b16 %v2582_v48  ;;  %v2433_v57 = vmax.f32 %v2431_v2, %v2432_v40 }
 0x313   :  { %v2118_v43 = vpop.f32.mrb[60].mxu0  ;;  %v6953_v19 = vsel %vm2748_vm6, %v2780_v59, %v2779_v31  ;;  %v2254_v20 = vadd.f32 %v5464_v46, %v4777_v16  ;;  %v2440_v42 = vmax.f32 %v2438_v33, %v2439_v34  ;;  %v2444_v8 = vrot.slane %v2443_v9, 2  ;;  %v7550_v59 = vld [vmem:[#allocation29_spill] sm:$0xff] }
 0x314   :  { %v2120_v60 = vpop.f32.mrb[61].mxu0  ;;  %v2451_v6 = vrot.slane %v2450_v30, 2  ;;  %v2455_v24 = vmax.f32 %v2251_v52, %v2253_v4  ;;  %v2519_v58 = vadd.f32 %v6691_v29, %v2433_v57  ;;  %v4778_v31 = vadd.f32 %v2118_v43, %v7549_v1 }
 0x315   :  { %v2122_v51 = vpop.f32.mrb[62].mxu0  ;;  %v2462_v15 = vmax.f32 %v2252_v63, %v2254_v20  ;;  %v4779_v48 = vadd.f32 %v2120_v60, %v7550_v59  ;;  %v2520_v2 = vadd.f32 %v6695_v14, %v2440_v42  ;;  %v2445_v40 = vmax.f32 %v2443_v9, %v2444_v8  ;;  %v7551_v20 = vld [vmem:[#allocation30_spill] sm:$0xff] }
 0x316   :  { %v2124_v35 = vpop.f32.mrb[63].mxu0  ;;  %v2452_v50 = vmax.f32 %v2450_v30, %v2451_v6  ;;  %v2456_v23 = vrot.slane %v2455_v24, 4  ;;  %v2794_v16 = vrot.slane %v6955_v45, 5  ;;  %v6965_v25 = vmax.f32 %v2519_v58, 0.0 }
 0x317   :  { %v2463_v33 = vrot.slane %v2462_v15, 4  ;;  %v2255_v34 = vadd.f32 %v5461_v49, %v4778_v31  ;;  %v6967_v52 = vmax.f32 %v2520_v2, 0.0  ;;  %v2446_v4 = vrot.slane %v2445_v40, 1 }
 0x318   :  { %v2453_v57 = vrot.slane %v2452_v50, 1  ;;  %v2457_v63 = vmax.f32 %v2455_v24, %v2456_v23  ;;  %v2583_v1 = vpack.c.bf16 %v6965_v25, %v6965_v25  ;;  %v2256_v60 = vadd.f32 %v5462_v18, %v4779_v48  ;;  %v7552_v18 = vld [vmem:[#allocation31_spill] sm:$0xff] }
 0x319   :  { %v2464_v43 = vmax.f32 %v2462_v15, %v2463_v33  ;;  %v4780_v9 = vadd.f32 %v2122_v51, %v7551_v20  ;;  %v3316_v30 = vrot.slane %v6965_v25, 4  ;;  %v2584_v42 = vpack.c.bf16 %v6967_v52, %v6967_v52 }
 0x31a   :  { %v2447_v8 = vmax.f32 %v2445_v40, %v2446_v4  ;;  %v2454_v6 = vmax.f32 %v2452_v50, %v2453_v57  ;;  %v6975_v49 = vunpack.c.l.b16 %v2583_v1  ;;  %v2458_v58 = vrot.slane %v2457_v63, 2 }
 0x31b   :  { %v2465_v31 = vrot.slane %v2464_v43, 2  ;;  %v2257_v59 = vadd.f32 %v5463_v62, %v4780_v9  ;;  %v6977_v23 = vunpack.c.l.b16 %v2584_v42  ;;  %v4781_v51 = vadd.f32 %v2124_v35, %v7552_v18 }
 0x31c   :  { %v2521_v24 = vadd.f32 %v6691_v29, %v2447_v8  ;;  %v2522_v15 = vadd.f32 %v6695_v14, %v2454_v6  ;;  %v2459_v2 = vmax.f32 %v2457_v63, %v2458_v58  ;;  %v2782_v50 = vrot.slane %v6975_v49, 4 }
 0x31d   :  { %v2466_v33 = vmax.f32 %v2464_v43, %v2465_v31  ;;  %v2469_v20 = vmax.f32 %v2255_v34, %v2257_v59  ;;  %v2258_v62 = vadd.f32 %v5464_v46, %v4781_v51  ;;  %v2572_v42 = vpack.c.bf16 %v6839_v10, %v6839_v10 }
 0x31e   :  { %v6984_v40 = vmax.f32 %v2521_v24, 0.0  ;;  %v6986_v4 = vmax.f32 %v2522_v15, 0.0  ;;  %v2460_v57 = vrot.slane %v2459_v2, 1  ;;  %v2796_v35 = vrot.slane %v6977_v23, 4 }
 0x31f   :  { %v2467_v1 = vrot.slane %v2466_v33, 1  ;;  %v2470_v9 = vrot.slane %v2469_v20, 4  ;;  %v2476_v43 = vmax.f32 %v2256_v60, %v2258_v62  ;;  %v2574_v58 = vpack.c.bf16 %v6871_v54, %v6871_v54 }
 0x320   :  { %v2585_v34 = vpack.c.bf16 %v6984_v40, %v6984_v40  ;;  %v2461_v8 = vmax.f32 %v2459_v2, %v2460_v57  ;;  %v2586_v24 = vpack.c.bf16 %v6986_v4, %v6986_v4  ;;  %v7553_v23 = vpack.c.bf16 %v6813_v61, %v6813_v61 }
 0x321   :  { %v2468_v6 = vmax.f32 %v2466_v33, %v2467_v1  ;;  %v2471_v46 = vmax.f32 %v2469_v20, %v2470_v9  ;;  %v2477_v59 = vrot.slane %v2476_v43, 4  ;;  %v2722_v2 = vunpack.c.l.b16 %v2572_v42 }
 0x322   :  { %v2735_v31 = vunpack.c.l.b16 %v2585_v34  ;;  %v2720_v15 = vunpack.c.l.b16 %v7553_v23  ;;  %v2523_v18 = vadd.f32 %v6691_v29, %v2461_v8  ;;  %v2724_v62 = vunpack.c.l.b16 %v2574_v58 }
 0x323   :  { %v2524_v60 = vadd.f32 %v6695_v14, %v2468_v6  ;;  %v2472_v51 = vrot.slane %v2471_v46, 2  ;;  %v2478_v20 = vmax.f32 %v2476_v43, %v2477_v59  ;;  %v2736_v57 = vunpack.c.l.b16 %v2586_v24 }
 0x324   :  { %v2784_v33 = vrot.slane %v2735_v31, 3  ;;  %v7003_v1 = vmax.f32 %v2523_v18, 0.0  ;;  %v7554_v48 = vrot.slane %v6745_v39, 6  ;;  %v7555_v8 = vrot.slane %v6772_v38, 5 }
 0x325   :  { %v7005_v9 = vmax.f32 %v2524_v60, 0.0  ;;  %v2473_v34 = vmax.f32 %v2471_v46, %v2472_v51  ;;  %v2479_v63 = vrot.slane %v2478_v20, 2  ;;  %v2770_v42 = vrot.slane %v2720_v15, 3 }
 0x326   :  { %v2765_v23 = vsel %vm2745_vm5, %v7554_v48, %v6755_v36  ;;  %v2772_v31 = vrot.slane %v2722_v2, 2  ;;  %v2587_v43 = vpack.c.bf16 %v7003_v1, %v7003_v1  ;;  %v7556_v46 = vrot.slane %v6802_v21, 4 }
 0x327   :  { %v2767_v6 = vsel %vm2748_vm6, %v7555_v8, %v2765_v23  ;;  %v2474_v58 = vrot.slane %v2473_v34, 1  ;;  %v2588_v59 = vpack.c.bf16 %v7005_v9, %v7005_v9  ;;  %v2480_v24 = vmax.f32 %v2478_v20, %v2479_v63 }
 0x328   :  { %v2769_v39 = vsel %vm2751_vm7, %v7556_v46, %v2767_v6  ;;  %v2774_v48 = vrot.slane %v2724_v62, 1  ;;  %v7557_v38 = vrot.slane %v6890_v11, 7  ;;  %v2737_v18 = vunpack.c.l.b16 %v2587_v43 }
 0x329   :  { %v2771_v36 = vsel %vm2754_vm8, %v2770_v42, %v2769_v39  ;;  %v2475_v60 = vmax.f32 %v2473_v34, %v2474_v58  ;;  %v2738_v51 = vunpack.c.l.b16 %v2588_v59  ;;  %v2481_v23 = vrot.slane %v2480_v24, 1 }
 0x32a   :  { %v2791_v15 = vsel %vm2742_vm4, %v7557_v38, %v6885_v13  ;;  %v2773_v2 = vsel %vm2757_vm9, %v2772_v31, %v2771_v36  ;;  %v7558_v21 = vrot.slane %v6914_v53, 6  ;;  %v2798_v20 = vrot.slane %v2736_v57, 3 }
 0x32b   :  { %v2775_v8 = vsel %vm2760_vm10, %v2774_v48, %v2773_v2  ;;  %v2786_v6 = vrot.slane %v2737_v18, 2  ;;  %v2525_v62 = vadd.f32 %v6691_v29, %v2475_v60  ;;  %v2800_v11 = vrot.slane %v2738_v51, 2 }
 0x32c   :  { %v2793_v63 = vsel %vm2745_vm5, %v7558_v21, %v2791_v15  ;;  %v2482_v34 = vmax.f32 %v2480_v24, %v2481_v23  ;;  %v7559_v31 = vrot.slane %v6799_v47, 4  ;;  %v2783_v53 = vsel %vm2751_vm7, %v2782_v50, %v6953_v19 }
 0x32d   :  { %v2795_v13 = vsel %vm2748_vm6, %v2794_v16, %v2793_v63  ;;  %v2557_v57 = vmax.f32 %v2525_v62, 0.0  ;;  %v7560_v45 = vrot.slane %v6821_v56, 3  ;;  %v2785_v58 = vsel %vm2754_vm8, %v2784_v33, %v2783_v53 }
 0x32e   :  { %v2797_v42 = vsel %vm2751_vm7, %v2796_v35, %v2795_v13  ;;  %v2752_v43 = vsel %vm2751_vm7, %v7559_v31, %v6779_v5  ;;  %v2526_v35 = vadd.f32 %v6695_v14, %v2482_v34  ;;  %v7561_v5 = vrot.slane %v6843_v44, 2 }
 0x32f   :  { %v2799_v29 = vsel %vm2754_vm8, %v2798_v20, %v2797_v42  ;;  %v2755_v16 = vsel %vm2754_vm8, %v7560_v45, %v2752_v43  ;;  %v2787_v49 = vsel %vm2757_vm9, %v2786_v6, %v2785_v58  ;;  %v3332_v19 = vrot.slane %v6986_v4, 3  ;;  %v7573_v20 = vld [vmem:[#allocation12_spill] sm:$0xff]  ;;  %v7576_v45 = vld [vmem:[#allocation9_spill] sm:$0xff] }
 0x330   :  { %v2801_v47 = vsel %vm2757_vm9, %v2800_v11, %v2799_v29  ;;  %v2758_v59 = vsel %vm2757_vm9, %v7561_v5, %v2755_v16  ;;  %v2589_v50 = vpack.c.bf16 %v2557_v57, %v2557_v57  ;;  %v7562_v46 = vrot.slane %v6866_v55, 1  ;;  %v7577_v16 = vld [vmem:[#allocation11_spill] sm:$0xff] }
 0x331   :  { %v7563_v33 = vrot.slane %v6727_v12, 6  ;;  %v2558_v39 = vmax.f32 %v2526_v35, 0.0  ;;  %v7564_v24 = vrot.slane %v6757_v3, 5  ;;  %v3292_v36 = vrot.slane %v6832_v32, 2  ;;  %v7579_v35 = vld [vmem:[#allocation13_spill] sm:$0xff] }
 0x332   :  { %v2761_v56 = vsel %vm2760_vm10, %v7562_v46, %v2758_v59  ;;  %v3294_v48 = vrot.slane %v6856_v41, 1  ;;  %v2739_v4 = vunpack.c.l.b16 %v2589_v50  ;;  %v7565_v38 = vrot.slane %v6788_v28, 4  ;;  %v5165_v50 = vld [vmem:[#allocation2 + $0x8] ss:$16 sps:$4 sm:$0xff]  }
 0x333   :  { %v3285_v14 = vsel %vm2745_vm5, %v7563_v33, %v6717_v22  ;;  %v7566_v15 = vrot.slane %v6729_v27, 6  ;;  %v3306_v22 = vrot.slane %v6839_v10, 2  ;;  %v2590_v18 = vpack.c.bf16 %v2558_v39, %v2558_v39  ;;  %v7570_v10 = vld [vmem:[#allocation10_spill] sm:$0xff]  ;;  %v5170_v33 = vld [vmem:[#allocation2 + $0x2c] ss:$16 sps:$4 sm:$0xff]  }
 0x334   :  { %v3287_v44 = vsel %vm2748_vm6, %v7564_v24, %v3285_v14  ;;  %v7567_v3 = vrot.slane %v6810_v17, 3  ;;  %v7568_v32 = vrot.slane %v6761_v26, 5  ;;  %v3308_v28 = vrot.slane %v6871_v54, 1  ;;  %v5176_v24 = vld [vmem:[#allocation2 + $0x6c] ss:$16 sps:$4 sm:$0xff]  }
 0x335   :  { %v3289_v55 = vsel %vm2751_vm7, %v7565_v38, %v3287_v44  ;;  %v3299_v12 = vsel %vm2745_vm5, %v7566_v15, %v6720_v7  ;;  %v2788_v51 = vrot.slane %v2739_v4, 1  ;;  %v7569_v27 = vrot.slane %v6790_v37, 4  ;;  %v5174_v44 = vld [vmem:[#allocation2 + $0x68] ss:$16 sps:$4 sm:$0xff]   ;;  %v5185_v38 = vld [vmem:[#allocation2 + $0xcc] ss:$16 sps:$4 sm:$0xff]  }
 0x336   :  { %v3291_v60 = vsel %vm2754_vm8, %v7567_v3, %v3289_v55  ;;  %v3301_v41 = vsel %vm2748_vm6, %v7568_v32, %v3299_v12  ;;  %v7571_v23 = vrot.slane %v7570_v10, 6  ;;  %v2740_v21 = vunpack.c.l.b16 %v2590_v18  ;;  %v5180_v4 = vld [vmem:[#allocation2 + $0xa8] ss:$16 sps:$4 sm:$0xff]   ;;  %v5188_v15 = vld [vmem:[#allocation2 + $0xec] ss:$16 sps:$4 sm:$0xff]  }
 0x337   :  { %v3293_v2 = vsel %vm2757_vm9, %v3292_v36, %v3291_v60  ;;  %v3303_v7 = vsel %vm2751_vm7, %v7569_v27, %v3301_v41  ;;  %v7572_v26 = vrot.slane %v6813_v61, 3  ;;  %v7574_v6 = vrot.slane %v7573_v20, 5  ;;  %v5177_v36 = vld [vmem:[#allocation2 + $0x88] ss:$16 sps:$4 sm:$0xff]   ;;  %v5194_v3 = vld [vmem:[#allocation2 + $0x12c] ss:$16 sps:$4 sm:$0xff]  }
 0x338   :  { %v3313_v17 = vsel %vm2745_vm5, %v7571_v23, %v6888_v0  ;;  %v7092_v63 = vsel %vm2760_vm10, %v3294_v48, %v3293_v2  ;;  %v2789_v37 = vsel %vm2760_vm10, %v2788_v51, %v2787_v49  ;;  %v3320_v11 = vrot.slane %v7003_v1, 2  ;;  %v5182_v48 = vld [vmem:[#allocation2 + $0xac] ss:$16 sps:$4 sm:$0xff]   ;;  %v5183_v55 = vld [vmem:[#allocation2 + $0xc8] ss:$16 sps:$4 sm:$0xff]  }
 0x339   :  { %v3305_v54 = vsel %vm2754_vm8, %v7572_v26, %v3303_v7  ;;  %v3315_v62 = vsel %vm2748_vm6, %v7574_v6, %v3313_v17  ;;  %v2802_v34 = vrot.slane %v2740_v21, 1  ;;  %v7106_v42 = vpack.c.b16 %v2789_v37, %v2761_v56  ;;  %v5186_v12 = vld [vmem:[#allocation2 + $0xe8] ss:$16 sps:$4 sm:$0xff]   ;;  %v5197_v32 = vld [vmem:[#allocation2 + $0x14c] ss:$16 sps:$4 sm:$0xff]  }
 0x33a   :  { %v3307_v13 = vsel %vm2757_vm9, %v3306_v22, %v3305_v54  ;;  %v3317_v0 = vsel %vm2751_vm7, %v3316_v30, %v3315_v62  ;;  %v7575_v31 = vrot.slane %v6984_v40, 3  ;;  %v3322_v29 = vrot.slane %v2557_v57, 1  ;;  %v5191_v22 = vld [vmem:[#allocation2 + $0x10c] ss:$16 sps:$4 sm:$0xff]   ;;  %v5189_v18 = vld [vmem:[#allocation2 + $0x108] ss:$16 sps:$4 sm:$0xff]  }
 0x33b   :  { %v7109_v61 = vsel %vm2760_vm10, %v3308_v28, %v3307_v13  ;;  %v7578_v25 = vrot.slane %v7577_v16, 6  ;;  %v3334_v1 = vrot.slane %v7005_v9, 2  ;;  %v2803_v58 = vsel %vm2760_vm10, %v2802_v34, %v2801_v47  ;;  %v5192_v60 = vld [vmem:[#allocation2 + $0x128] ss:$16 sps:$4 sm:$0xff]   ;;  %v5200_v28 = vld [vmem:[#allocation2 + $0x16c] ss:$16 sps:$4 sm:$0xff]  }
 0x33c   :  { %v3319_v43 = vsel %vm2754_vm8, %v7575_v31, %v3317_v0  ;;  %v7580_v5 = vrot.slane %v7579_v35, 5  ;;  %v3336_v49 = vrot.slane %v2558_v39, 1  ;;  %v2805_v40 = vpack.c.b16 %v2803_v58, %v2775_v8  ;;  %v5168_v8 = vld [vmem:[#allocation2 + $0x28] ss:$16 sps:$4 sm:$0xff]   ;;  %v5173_v39 = vld [vmem:[#allocation2 + $0x4c] ss:$16 sps:$4 sm:$0xff]  }
 0x33d   :  { %v3321_v53 = vsel %vm2757_vm9, %v3320_v11, %v3319_v43  ;;  %v3327_v30 = vsel %vm2745_vm5, %v7578_v25, %v7576_v45  ;;  %v7581_v57 = vrot.slane %v6967_v52, 4  ;;  %v5171_v52 = vld [vmem:[#allocation2 + $0x48] ss:$16 sps:$4 sm:$0xff]   ;;  %v5203_v2 = vld [vmem:[#allocation2 + $0x18c] ss:$16 sps:$4 sm:$0xff]  }
 0x33e   :  { %v3329_v59 = vsel %vm2748_vm6, %v7580_v5, %v3327_v30  ;;  %v7125_v46 = vsel %vm2760_vm10, %v3322_v29, %v3321_v53  ;;  %3160 = vmatprep.mubr.bf16.mxu1 %v2805_v40  ;;  %v5195_v41 = vld [vmem:[#allocation2 + $0x148] ss:$16 sps:$4 sm:$0xff]   ;;  %v5206_v7 = vld [vmem:[#allocation2 + $0x1ac] ss:$16 sps:$4 sm:$0xff]  }
 0x33f   :  { %v3331_v56 = vsel %vm2751_vm7, %v7581_v57, %v3329_v59  ;;  %3161 = vmatmul.mubr.bf16.vlgmr.msra.gmra.mrb[64].mxu1 %v7106_v42  ;;  %v5198_v51 = vld [vmem:[#allocation2 + $0x168] ss:$16 sps:$4 sm:$0xff]   ;;  %v5209_v23 = vld [vmem:[#allocation2 + $0x1cc] ss:$16 sps:$4 sm:$0xff]  }
 0x340   :  { %v3333_v14 = vsel %vm2754_vm8, %v3332_v19, %v3331_v56  ;;  %3172 = vmatpush1.bf16.msra.mxu1 %v5165_v50  ;;  %3203 = vmatprep.mubr.bf16.mxu1 %v2805_v40  ;;  %v5179_v19 = vld [vmem:[#allocation2 + $0x8c] ss:$16 sps:$4 sm:$0xff]   ;;  %v5201_v27 = vld [vmem:[#allocation2 + $0x188] ss:$16 sps:$4 sm:$0xff]  }
 0x341   :  { %v3335_v9 = vsel %vm2757_vm9, %v3334_v1, %v3333_v14  ;;  %3173 = vmatprep.subr.bf16.mxu1 %v5170_v33  ;;  %v5204_v10 = vld [vmem:[#allocation2 + $0x1a8] ss:$16 sps:$4 sm:$0xff]   ;;  %v5212_v21 = vld [vmem:[#allocation2 + $0x1ec] ss:$16 sps:$4 sm:$0xff]  }
 0x342   :  { %v7134_v47 = vsel %vm2760_vm10, %v3336_v49, %v3335_v9  ;;  %v5207_v17 = vld [vmem:[#allocation2 + $0x1c8] ss:$16 sps:$4 sm:$0xff]   ;;  %v5215_v20 = vld [vmem:[%s7484_s6 + $0x4] ss:$24 sps:$4 sm:$0xff]   ;;  %v5218_v6 = vld [vmem:[%s7484_s6 + $0x34] ss:$24 sps:$4 sm:$0xff]  }
 0x343   :  { %v5210_v26 = vld [vmem:[#allocation2 + $0x1e8] ss:$16 sps:$4 sm:$0xff]   ;;  %v5221_v37 = vld [vmem:[%s7484_s6 + $0x64] ss:$24 sps:$4 sm:$0xff]   ;;  %v5224_v0 = vld [vmem:[%s7484_s6 + $0x94] ss:$24 sps:$4 sm:$0xff]  }
 0x344   :  { %3174 = vmatpush1.bf16.msra.mxu1 %v5168_v8  ;;  %v5213_v54 = vld [vmem:[%s7484_s6] ss:$24 sps:$4 sm:$0xff]   ;;  %v5216_v62 = vld [vmem:[%s7484_s6 + $0x30] ss:$24 sps:$4 sm:$0xff]   ;;  %v5227_v34 = vld [vmem:[%s7484_s6 + $0xc4] ss:$24 sps:$4 sm:$0xff]  }
 0x345   :  { %3175 = vmatprep.subr.bf16.mxu1 %v5173_v39  ;;  %v5219_v13 = vld [vmem:[%s7484_s6 + $0x60] ss:$24 sps:$4 sm:$0xff]   ;;  %v5222_v11 = vld [vmem:[%s7484_s6 + $0x90] ss:$24 sps:$4 sm:$0xff]   ;;  %v5230_v31 = vld [vmem:[%s7484_s6 + $0xf4] ss:$24 sps:$4 sm:$0xff]  }
 0x346   :  { %v5228_v43 = vld [vmem:[%s7484_s6 + $0xf0] ss:$24 sps:$4 sm:$0xff]   ;;  %v5233_v53 = vld [vmem:[%s7484_s6 + $0x124] ss:$24 sps:$4 sm:$0xff]   ;;  %v5231_v29 = vld [vmem:[%s7484_s6 + $0x120] ss:$24 sps:$4 sm:$0xff]  }
 0x347   :  { %v5236_v45 = vld [vmem:[%s7484_s6 + $0x154] ss:$24 sps:$4 sm:$0xff]   ;;  %v5234_v16 = vld [vmem:[%s7484_s6 + $0x150] ss:$24 sps:$4 sm:$0xff]   ;;  %v5239_v25 = vld [vmem:[%s7484_s6 + $0x184] ss:$24 sps:$4 sm:$0xff]  }
 0x348   :  { %3176 = vmatpush1.bf16.msra.mxu1 %v5171_v52  ;;  %v5237_v30 = vld [vmem:[%s7484_s6 + $0x180] ss:$24 sps:$4 sm:$0xff]   ;;  %v5242_v1 = vld [vmem:[%s7484_s6 + $0x1b4] ss:$24 sps:$4 sm:$0xff]   ;;  %v5240_v58 = vld [vmem:[%s7484_s6 + $0x1b0] ss:$24 sps:$4 sm:$0xff]  }
 0x349   :  { %3177 = vmatprep.subr.bf16.mxu1 %v5176_v24  ;;  %v5245_v35 = vld [vmem:[%s7484_s6 + $0x1e4] ss:$24 sps:$4 sm:$0xff]   ;;  %v5243_v5 = vld [vmem:[%s7484_s6 + $0x1e0] ss:$24 sps:$4 sm:$0xff]   ;;  %v5248_v59 = vld [vmem:[%s7484_s6 + $0x214] ss:$24 sps:$4 sm:$0xff]  }
 0x34a   :  { %v5246_v49 = vld [vmem:[%s7484_s6 + $0x210] ss:$24 sps:$4 sm:$0xff]   ;;  %v5251_v40 = vld [vmem:[%s7484_s6 + $0x244] ss:$24 sps:$4 sm:$0xff]   ;;  %v5249_v50 = vld [vmem:[%s7484_s6 + $0x240] ss:$24 sps:$4 sm:$0xff]  }
 0x34b   :  { %v5252_v57 = vld [vmem:[%s7484_s6 + $0x270] ss:$24 sps:$4 sm:$0xff]   ;;  %v5254_v56 = vld [vmem:[%s7484_s6 + $0x274] ss:$24 sps:$4 sm:$0xff]   ;;  %v5257_v33 = vld [vmem:[%s7484_s6 + $0x2a4] ss:$24 sps:$4 sm:$0xff]  }
 0x34c   :  { %3178 = vmatpush1.bf16.msra.mxu1 %v5174_v44  ;;  %v5255_v14 = vld [vmem:[%s7484_s6 + $0x2a0] ss:$24 sps:$4 sm:$0xff]   ;;  %v5260_v9 = vld [vmem:[%s7484_s6 + $0x2d4] ss:$24 sps:$4 sm:$0xff]   ;;  %v5258_v8 = vld [vmem:[%s7484_s6 + $0x2d0] ss:$24 sps:$4 sm:$0xff]  }
 0x34d   :  { %3179 = vmatprep.subr.bf16.mxu1 %v5179_v19  ;;  %v5263_v39 = vld [vmem:[%s7484_s6 + $0xc] ss:$24 sps:$4 sm:$0xff]   ;;  %v2655_v52 = vld [vmem:[%s7483_s5] sm:$0xf] }
 0x34e   :  { %v7582_v24 = vld [vmem:[#allocation32_spill] sm:$0xff]  ;;  %v7583_v19 = vld [vmem:[#allocation33_spill] sm:$0xff] }
 0x34f   :  { %v2660_v44 = vrot.slane %v2655_v52, %v7582_v24 }
 0x350   :  { %3180 = vmatpush1.bf16.msra.mxu1 %v5177_v36  ;;  %v2664_v36 = vrot.slane %v2655_v52, %v7583_v19 }
 0x351   :  { %3181 = vmatprep.subr.bf16.mxu1 %v5182_v48 }
 0x354   :  { %3182 = vmatpush1.bf16.msra.mxu1 %v5180_v4 }
 0x355   :  { %3183 = vmatprep.subr.bf16.mxu1 %v5185_v38 }
 0x358   :  { %3184 = vmatpush1.bf16.msra.mxu1 %v5183_v55 }
 0x359   :  { %3185 = vmatprep.subr.bf16.mxu1 %v5188_v15 }
 0x35c   :  { %3186 = vmatpush1.bf16.msra.mxu1 %v5186_v12 }
 0x35d   :  { %3187 = vmatprep.subr.bf16.mxu1 %v5191_v22 }
 0x360   :  { %3188 = vmatpush1.bf16.msra.mxu1 %v5189_v18 }
 0x361   :  { %3189 = vmatprep.subr.bf16.mxu1 %v5194_v3 }
 0x364   :  { %3190 = vmatpush1.bf16.msra.mxu1 %v5192_v60 }
 0x365   :  { %3191 = vmatprep.subr.bf16.mxu1 %v5197_v32 }
 0x368   :  { %3192 = vmatpush1.bf16.msra.mxu1 %v5195_v41 }
 0x369   :  { %3193 = vmatprep.subr.bf16.mxu1 %v5200_v28 }
 0x36c   :  { %3194 = vmatpush1.bf16.msra.mxu1 %v5198_v51 }
 0x36d   :  { %3195 = vmatprep.subr.bf16.mxu1 %v5203_v2 }
 0x370   :  { %3196 = vmatpush1.bf16.msra.mxu1 %v5201_v27 }
 0x371   :  { %3197 = vmatprep.subr.bf16.mxu1 %v5206_v7 }
 0x374   :  { %3198 = vmatpush1.bf16.msra.mxu1 %v5204_v10 }
 0x375   :  { %3199 = vmatprep.subr.bf16.mxu1 %v5209_v23 }
 0x378   :  { %3200 = vmatpush1.bf16.msra.mxu1 %v5207_v17 }
 0x379   :  { %3201 = vmatprep.subr.bf16.mxu1 %v5212_v21 }
 0x37c   :  { %3202 = vmatpush1.bf16.msra.mxu1 %v5210_v26 }
 0x37d   :  { %3960 = vmatprep.subr.bf16.mxu1 %v5215_v20 }
 0x37f   :  { %3204 = vmatmul.mubr.bf16.vlgmr.msra.gmra.mrb[68].mxu1 %v7106_v42  ;;  %v5225_v42 = vld [vmem:[%s7484_s6 + $0xc0] ss:$24 sps:$4 sm:$0xff]  }
 0x380   :  { %3961 = vmatpush1.bf16.msra.mxu1 %v5213_v54 }
 0x381   :  { %3962 = vmatprep.subr.bf16.mxu1 %v5218_v6 }
 0x384   :  { %3963 = vmatpush1.bf16.msra.mxu1 %v5216_v62 }
 0x385   :  { %3964 = vmatprep.subr.bf16.mxu1 %v5221_v37 }
 0x388   :  { %3965 = vmatpush1.bf16.msra.mxu1 %v5219_v13 }
 0x389   :  { %3966 = vmatprep.subr.bf16.mxu1 %v5224_v0 }
 0x38c   :  { %3967 = vmatpush1.bf16.msra.mxu1 %v5222_v11 }
 0x38d   :  { %3968 = vmatprep.subr.bf16.mxu1 %v5227_v34 }
 0x390   :  { %3969 = vmatpush1.bf16.msra.mxu1 %v5225_v42 }
 0x391   :  { %3970 = vmatprep.subr.bf16.mxu1 %v5230_v31 }
 0x394   :  { %3971 = vmatpush1.bf16.msra.mxu1 %v5228_v43 }
 0x395   :  { %3972 = vmatprep.subr.bf16.mxu1 %v5233_v53 }
 0x398   :  { %3973 = vmatpush1.bf16.msra.mxu1 %v5231_v29 }
 0x399   :  { %3974 = vmatprep.subr.bf16.mxu1 %v5236_v45  ;;  %v7584_v45 = vld [vmem:[#allocation8_spill] sm:$0xff] }
 0x39c   :  { %3975 = vmatpush1.bf16.msra.mxu1 %v5234_v16  ;;  %v2667_v16 = vsub.s32 2, %v7584_v45 }
 0x39d   :  { %3976 = vmatprep.subr.bf16.mxu1 %v5239_v25  ;;  %v2671_v25 = vsub.s32 3, %v7584_v45 }
 0x3a0   :  { %3977 = vmatpush1.bf16.msra.mxu1 %v5237_v30  ;;  %v2668_v30 = vrot.slane %v2655_v52, %v2667_v16 }
 0x3a1   :  { %3978 = vmatprep.subr.bf16.mxu1 %v5242_v1  ;;  %v2672_v1 = vrot.slane %v2655_v52, %v2671_v25 }
 0x3a4   :  { %3979 = vmatpush1.bf16.msra.mxu1 %v5240_v58 }
 0x3a5   :  { %3980 = vmatprep.subr.bf16.mxu1 %v5245_v35 }
 0x3a8   :  { %3981 = vmatpush1.bf16.msra.mxu1 %v5243_v5 }
 0x3a9   :  { %3982 = vmatprep.subr.bf16.mxu1 %v5248_v59 }
 0x3ac   :  { %3983 = vmatpush1.bf16.msra.mxu1 %v5246_v49 }
 0x3ad   :  { %3984 = vmatprep.subr.bf16.mxu1 %v5251_v40 }
 0x3b0   :  { %3985 = vmatpush1.bf16.msra.mxu1 %v5249_v50 }
 0x3b1   :  { %3986 = vmatprep.subr.bf16.mxu1 %v5254_v56 }
 0x3b4   :  { %3987 = vmatpush1.bf16.msra.mxu1 %v5252_v57 }
 0x3b5   :  { %3988 = vmatprep.subr.bf16.mxu1 %v5257_v33 }
 0x3b8   :  { %3989 = vmatpush1.bf16.msra.mxu1 %v5255_v14 }
 0x3b9   :  { %3990 = vmatprep.subr.bf16.mxu1 %v5260_v9 }
 0x3bc   :  { %3991 = vmatpush1.bf16.msra.mxu1 %v5258_v8 }
 0x3bd   :  { %4003 = vmatprep.subr.bf16.mxu1 %v5263_v39 }
 0x412   :  { %v3162_v48 = vpop.f32.mrb[64].mxu1 }
 0x413   :  { %v3163_v4 = vadd.f32 %v3162_v48, %v2660_v44  ;;  %v3164_v38 = vpop.f32.mrb[65].mxu1 }
 0x414   :  { %v3165_v55 = vadd.f32 %v3164_v38, %v2664_v36  ;;  %v3166_v15 = vpop.f32.mrb[66].mxu1  ;;  %v5266_v38 = vld [vmem:[%s7484_s6 + $0x3c] ss:$24 sps:$4 sm:$0xff]  }
 0x415   :  { %v3214_v12 = vsub.f32 0.0, %v3163_v4  ;;  %v3167_v22 = vadd.f32 %v3166_v15, %v2660_v44  ;;  %v3168_v18 = vpop.f32.mrb[67].mxu1  ;;  %v5261_v4 = vld [vmem:[%s7484_s6 + $0x8] ss:$24 sps:$4 sm:$0xff]   ;;  %v5269_v15 = vld [vmem:[%s7484_s6 + $0x6c] ss:$24 sps:$4 sm:$0xff]  }
 0x416   :  { %v3215_v3 = vsub.f32 0.0, %v3165_v55  ;;  %v3169_v60 = vadd.f32 %v3168_v18, %v2664_v36  ;;  %v5264_v55 = vld [vmem:[%s7484_s6 + $0x38] ss:$24 sps:$4 sm:$0xff]  }
 0x417   :  { %v3218_v32 = vmul.f32 1.442695, %v3214_v12  ;;  %v3216_v41 = vsub.f32 0.0, %v3167_v22  ;;  %v5267_v12 = vld [vmem:[%s7484_s6 + $0x68] ss:$24 sps:$4 sm:$0xff]  }
 0x418   :  { %v3220_v28 = vmul.f32 1.442695, %v3215_v3  ;;  %v3217_v51 = vsub.f32 0.0, %v3169_v60  ;;  %v5272_v22 = vld [vmem:[%s7484_s6 + $0x9c] ss:$24 sps:$4 sm:$0xff]  }
 0x419   :  { %5389 = vpow2.f32 %v3218_v32  ;;  %v3222_v2 = vmul.f32 1.442695, %v3216_v41  ;;  %v5270_v18 = vld [vmem:[%s7484_s6 + $0x98] ss:$24 sps:$4 sm:$0xff]   ;;  %v5275_v3 = vld [vmem:[%s7484_s6 + $0xcc] ss:$24 sps:$4 sm:$0xff]  }
 0x41a   :  { %5391 = vpow2.f32 %v3220_v28  ;;  %v3224_v27 = vmul.f32 1.442695, %v3217_v51  ;;  %v5273_v60 = vld [vmem:[%s7484_s6 + $0xc8] ss:$24 sps:$4 sm:$0xff]   ;;  %v5278_v32 = vld [vmem:[%s7484_s6 + $0xfc] ss:$24 sps:$4 sm:$0xff]  }
 0x41b   :  { %5393 = vpow2.f32 %v3222_v2  ;;  %v5276_v41 = vld [vmem:[%s7484_s6 + $0xf8] ss:$24 sps:$4 sm:$0xff]   ;;  %v5281_v28 = vld [vmem:[%s7484_s6 + $0x12c] ss:$24 sps:$4 sm:$0xff]   ;;  %v5279_v51 = vld [vmem:[%s7484_s6 + $0x128] ss:$24 sps:$4 sm:$0xff]  }
 0x41c   :  { %5395 = vpow2.f32 %v3224_v27  ;;  %v5284_v2 = vld [vmem:[%s7484_s6 + $0x15c] ss:$24 sps:$4 sm:$0xff]   ;;  %v5282_v27 = vld [vmem:[%s7484_s6 + $0x158] ss:$24 sps:$4 sm:$0xff]  }
 0x423   :  { %v5390_v7 = vpop.eup %5389 }
 0x424   :  { %v5392_v10 = vpop.eup %5391  ;;  %v3226_v23 = vadd.f32 1.0, %v5390_v7  ;;  %v5287_v7 = vld [vmem:[%s7484_s6 + $0x18c] ss:$24 sps:$4 sm:$0xff]  }
 0x425   :  { %v5394_v17 = vpop.eup %5393  ;;  %v3227_v21 = vadd.f32 1.0, %v5392_v10  ;;  %v5285_v10 = vld [vmem:[%s7484_s6 + $0x188] ss:$24 sps:$4 sm:$0xff]  }
 0x426   :  { %v5396_v26 = vpop.eup %5395  ;;  %5397 = vrcp.f32 %v3226_v23  ;;  %v3228_v54 = vadd.f32 1.0, %v5394_v17  ;;  %v5290_v23 = vld [vmem:[%s7484_s6 + $0x1bc] ss:$24 sps:$4 sm:$0xff]   ;;  %v5288_v17 = vld [vmem:[%s7484_s6 + $0x1b8] ss:$24 sps:$4 sm:$0xff]  }
 0x427   :  { %5399 = vrcp.f32 %v3227_v21  ;;  %v3229_v20 = vadd.f32 1.0, %v5396_v26  ;;  %v5293_v21 = vld [vmem:[%s7484_s6 + $0x1ec] ss:$24 sps:$4 sm:$0xff]   ;;  %v5291_v26 = vld [vmem:[%s7484_s6 + $0x1e8] ss:$24 sps:$4 sm:$0xff]  }
 0x428   :  { %5401 = vrcp.f32 %v3228_v54  ;;  %v5296_v54 = vld [vmem:[%s7484_s6 + $0x21c] ss:$24 sps:$4 sm:$0xff]  }
 0x429   :  { %5403 = vrcp.f32 %v3229_v20  ;;  %v5294_v20 = vld [vmem:[%s7484_s6 + $0x218] ss:$24 sps:$4 sm:$0xff]  }
 0x430   :  { %v5398_v6 = vpop.eup %5397 }
 0x431   :  { %v5400_v62 = vpop.eup %5399  ;;  %v3246_v37 = vsub.f32 1.0, %v5398_v6 }
 0x432   :  { %v5402_v13 = vpop.eup %5401  ;;  %v3247_v0 = vsub.f32 1.0, %v5400_v62 }
 0x433   :  { %v5404_v11 = vpop.eup %5403  ;;  %v3342_v34 = vmul.f32 %v7092_v63, %v3246_v37  ;;  %v3248_v42 = vsub.f32 1.0, %v5402_v13  ;;  %v5302_v37 = vld [vmem:[%s7484_s6 + $0x27c] ss:$24 sps:$4 sm:$0xff]  }
 0x434   :  { %v3343_v31 = vmul.f32 %v7109_v61, %v3247_v0  ;;  %v3249_v43 = vsub.f32 1.0, %v5404_v11  ;;  %v5305_v0 = vld [vmem:[%s7484_s6 + $0x2ac] ss:$24 sps:$4 sm:$0xff]  }
 0x435   :  { %v3344_v53 = vmul.f32 %v7125_v46, %v3248_v42  ;;  %v5306_v42 = vld [vmem:[%s7484_s6 + $0x2d8] ss:$24 sps:$4 sm:$0xff]  }
 0x436   :  { %v3345_v29 = vmul.f32 %v7134_v47, %v3249_v43  ;;  %v5309_v43 = vld [vmem:[%s7484_s6 + $0x10] ss:$24 sps:$4 sm:$0xff]  }
 0x452   :  { %v3205_v58 = vpop.f32.mrb[68].mxu1 }
 0x453   :  { %v3206_v63 = vadd.f32 %v3205_v58, %v2668_v30  ;;  %v3207_v35 = vpop.f32.mrb[69].mxu1  ;;  %v5320_v58 = vld [vmem:[%s7484_s6 + $0xa4] ss:$24 sps:$4 sm:$0xff]  }
 0x454   :  { %v3208_v5 = vadd.f32 %v3207_v35, %v2672_v1  ;;  %v3209_v61 = vpop.f32.mrb[70].mxu1  ;;  %v5323_v35 = vld [vmem:[%s7484_s6 + $0xd4] ss:$24 sps:$4 sm:$0xff]  }
 0x455   :  { %v3238_v59 = vmax.f32 %v3206_v63, 0.0  ;;  %v3210_v49 = vadd.f32 %v3209_v61, %v2668_v30  ;;  %v3211_v46 = vpop.f32.mrb[71].mxu1  ;;  %v5317_v30 = vld [vmem:[%s7484_s6 + $0x74] ss:$24 sps:$4 sm:$0xff]   ;;  %v5318_v63 = vld [vmem:[%s7484_s6 + $0xa0] ss:$24 sps:$4 sm:$0xff]  }
 0x456   :  { %v3239_v40 = vmax.f32 %v3208_v5, 0.0  ;;  %v3212_v47 = vadd.f32 %v3211_v46, %v2672_v1  ;;  %v5315_v1 = vld [vmem:[%s7484_s6 + $0x70] ss:$24 sps:$4 sm:$0xff]   ;;  %v5326_v61 = vld [vmem:[%s7484_s6 + $0x104] ss:$24 sps:$4 sm:$0xff]  }
 0x457   :  { %v3242_v50 = vmul.f32 %v5398_v6, %v3238_v59  ;;  %v3240_v57 = vmax.f32 %v3210_v49, 0.0  ;;  %v5299_v6 = vld [vmem:[%s7484_s6 + $0x24c] ss:$24 sps:$4 sm:$0xff]   ;;  %v5321_v5 = vld [vmem:[%s7484_s6 + $0xd0] ss:$24 sps:$4 sm:$0xff]  }
 0x458   :  { %v3243_v56 = vmul.f32 %v5400_v62, %v3239_v40  ;;  %v3241_v33 = vmax.f32 %v3212_v47, 0.0  ;;  %v5297_v62 = vld [vmem:[%s7484_s6 + $0x248] ss:$24 sps:$4 sm:$0xff]   ;;  %v5329_v49 = vld [vmem:[%s7484_s6 + $0x134] ss:$24 sps:$4 sm:$0xff]  }
 0x459   :  { %v3346_v14 = vadd.f32 %v3342_v34, %v3242_v50  ;;  %v3244_v9 = vmul.f32 %v5402_v13, %v3240_v57  ;;  %v5300_v13 = vld [vmem:[%s7484_s6 + $0x278] ss:$24 sps:$4 sm:$0xff]   ;;  %v5308_v34 = vld [vmem:[%s7484_s6 + $0x2dc] ss:$24 sps:$4 sm:$0xff]  }
 0x45a   :  { %v3347_v8 = vadd.f32 %v3343_v31, %v3243_v56  ;;  %v3245_v39 = vmul.f32 %v5404_v11, %v3241_v33  ;;  %v5303_v11 = vld [vmem:[%s7484_s6 + $0x2a8] ss:$24 sps:$4 sm:$0xff]   ;;  %v5311_v31 = vld [vmem:[%s7484_s6 + $0x14] ss:$24 sps:$4 sm:$0xff]   ;;  %v5332_v40 = vld [vmem:[%s7484_s6 + $0x164] ss:$24 sps:$4 sm:$0xff]  }
 0x45b   :  { %v3348_v44 = vadd.f32 %v3344_v53, %v3244_v9  ;;  %v5314_v53 = vld [vmem:[%s7484_s6 + $0x44] ss:$24 sps:$4 sm:$0xff]   ;;  %v5324_v59 = vld [vmem:[%s7484_s6 + $0x100] ss:$24 sps:$4 sm:$0xff]   ;;  %v5327_v46 = vld [vmem:[%s7484_s6 + $0x130] ss:$24 sps:$4 sm:$0xff]  }
 0x45c   :  { %v3349_v52 = vadd.f32 %v3345_v29, %v3245_v39  ;;  %v5312_v29 = vld [vmem:[%s7484_s6 + $0x40] ss:$24 sps:$4 sm:$0xff]   ;;  %v5335_v50 = vld [vmem:[%s7484_s6 + $0x194] ss:$24 sps:$4 sm:$0xff]   ;;  %v5333_v57 = vld [vmem:[%s7484_s6 + $0x190] ss:$24 sps:$4 sm:$0xff]  }
 0x45d   :  { %v7251_v36 = vpack.c.bf16 %v3348_v44, %v3346_v14  ;;  %v5330_v47 = vld [vmem:[%s7484_s6 + $0x160] ss:$24 sps:$4 sm:$0xff]   ;;  %v5338_v56 = vld [vmem:[%s7484_s6 + $0x1c4] ss:$24 sps:$4 sm:$0xff]   ;;  %v5341_v14 = vld [vmem:[%s7484_s6 + $0x1f4] ss:$24 sps:$4 sm:$0xff]  }
 0x45e   :  { %v7253_v48 = vpack.c.bf16 %v3349_v52, %v3347_v8  ;;  %v5336_v33 = vld [vmem:[%s7484_s6 + $0x1c0] ss:$24 sps:$4 sm:$0xff]   ;;  %v5339_v9 = vld [vmem:[%s7484_s6 + $0x1f0] ss:$24 sps:$4 sm:$0xff]   ;;  %v5344_v8 = vld [vmem:[%s7484_s6 + $0x224] ss:$24 sps:$4 sm:$0xff]  }
 0x45f   :  { %v5342_v39 = vld [vmem:[%s7484_s6 + $0x220] ss:$24 sps:$4 sm:$0xff]   ;;  %v5347_v44 = vld [vmem:[%s7484_s6 + $0x254] ss:$24 sps:$4 sm:$0xff]   ;;  %v5345_v52 = vld [vmem:[%s7484_s6 + $0x250] ss:$24 sps:$4 sm:$0xff]  }
 0x460   :  { %3992 = vmatprep.mubr.bf16.mxu1 %v7253_v48 }
 0x461   :  { %3993 = vmatmul.mubr.bf16.vlgmr.msra.gmra.mrb[72].mxu1 %v7251_v36 }
 0x462   :  { %4004 = vmatpush1.bf16.msra.mxu1 %v5261_v4  ;;  %4035 = vmatprep.mubr.bf16.mxu1 %v7253_v48  ;;  %v5348_v4 = vld [vmem:[%s7484_s6 + $0x280] ss:$24 sps:$4 sm:$0xff]  }
 0x463   :  { %4005 = vmatprep.subr.bf16.mxu1 %v5266_v38  ;;  %v5353_v38 = vld [vmem:[%s7484_s6 + $0x2b4] ss:$24 sps:$4 sm:$0xff]  }
 0x466   :  { %4006 = vmatpush1.bf16.msra.mxu1 %v5264_v55  ;;  %v5351_v55 = vld [vmem:[%s7484_s6 + $0x2b0] ss:$24 sps:$4 sm:$0xff]  }
 0x467   :  { %4007 = vmatprep.subr.bf16.mxu1 %v5269_v15  ;;  %v5356_v15 = vld [vmem:[%s7484_s6 + $0x2e4] ss:$24 sps:$4 sm:$0xff]  }
 0x46a   :  { %4008 = vmatpush1.bf16.msra.mxu1 %v5267_v12  ;;  %v5354_v12 = vld [vmem:[%s7484_s6 + $0x2e0] ss:$24 sps:$4 sm:$0xff]  }
 0x46b   :  { %4009 = vmatprep.subr.bf16.mxu1 %v5272_v22 }
 0x46e   :  { %4010 = vmatpush1.bf16.msra.mxu1 %v5270_v18 }
 0x46f   :  { %4011 = vmatprep.subr.bf16.mxu1 %v5275_v3 }
 0x472   :  { %4012 = vmatpush1.bf16.msra.mxu1 %v5273_v60 }
 0x473   :  { %4013 = vmatprep.subr.bf16.mxu1 %v5278_v32  ;;  %v5357_v32 = vld [vmem:[#allocation4 + $0x40] sm:$0xff]  }
 0x476   :  { %4014 = vmatpush1.bf16.msra.mxu1 %v5276_v41  ;;  %v5358_v41 = vld [vmem:[#allocation4] sm:$0xff]  }
 0x477   :  { %4015 = vmatprep.subr.bf16.mxu1 %v5281_v28  ;;  %v5359_v28 = vld [vmem:[#allocation4 + $0x48] sm:$0xff]  }
 0x47a   :  { %4016 = vmatpush1.bf16.msra.mxu1 %v5279_v51  ;;  %v5360_v51 = vld [vmem:[#allocation4 + $0x8] sm:$0xff]  }
 0x47b   :  { %4017 = vmatprep.subr.bf16.mxu1 %v5284_v2  ;;  %v7453_v2 = vld [vmem:[%s7485_s7] sm:$0x3f] }
 0x47e   :  { %4018 = vmatpush1.bf16.msra.mxu1 %v5282_v27  ;;  %v5361_v27 = vld [vmem:[#allocation4 + $0x50] sm:$0xff]  }
 0x47f   :  { %4019 = vmatprep.subr.bf16.mxu1 %v5287_v7  ;;  %v5362_v7 = vld [vmem:[#allocation4 + $0x10] sm:$0xff]  }
 0x482   :  { %4020 = vmatpush1.bf16.msra.mxu1 %v5285_v10  ;;  %v3457_v10 = vrot.slane %v7453_v2, %v7583_v19  ;;  %v5368_v19 = vld [vmem:[#allocation4 + $0x28] sm:$0xff]  }
 0x483   :  { %4021 = vmatprep.subr.bf16.mxu1 %v5290_v23  ;;  %v5363_v23 = vld [vmem:[#allocation4 + $0x58] sm:$0xff]  }
 0x486   :  { %4022 = vmatpush1.bf16.msra.mxu1 %v5288_v17 }
 0x487   :  { %4023 = vmatprep.subr.bf16.mxu1 %v5293_v21  ;;  %v5364_v21 = vld [vmem:[#allocation4 + $0x18] sm:$0xff]  }
 0x48a   :  { %4024 = vmatpush1.bf16.msra.mxu1 %v5291_v26 }
 0x48b   :  { %4025 = vmatprep.subr.bf16.mxu1 %v5296_v54  ;;  %v5365_v54 = vld [vmem:[#allocation4 + $0x60] sm:$0xff]  }
 0x48e   :  { %4026 = vmatpush1.bf16.msra.mxu1 %v5294_v20 }
 0x48f   :  { %4027 = vmatprep.subr.bf16.mxu1 %v5299_v6 }
 0x492   :  { %4028 = vmatpush1.bf16.msra.mxu1 %v5297_v62 }
 0x493   :  { %4029 = vmatprep.subr.bf16.mxu1 %v5302_v37  ;;  %v5366_v37 = vld [vmem:[#allocation4 + $0x20] sm:$0xff]  }
 0x496   :  { %4030 = vmatpush1.bf16.msra.mxu1 %v5300_v13 }
 0x497   :  { %4031 = vmatprep.subr.bf16.mxu1 %v5305_v0 }
 0x49a   :  { %4032 = vmatpush1.bf16.msra.mxu1 %v5303_v11 }
 0x49b   :  { %4033 = vmatprep.subr.bf16.mxu1 %v5308_v34 }
 0x49e   :  { %4034 = vmatpush1.bf16.msra.mxu1 %v5306_v42 }
 0x49f   :  { %4046 = vmatprep.subr.bf16.mxu1 %v5311_v31  ;;  %v5369_v31 = vld [vmem:[#allocation4 + $0x70] sm:$0xff]  }
 0x4a1   :  { %4036 = vmatmul.mubr.bf16.vlgmr.msra.gmra.mrb[76].mxu1 %v7251_v36 }
 0x4a2   :  { %4047 = vmatpush1.bf16.msra.mxu1 %v5309_v43  ;;  %4078 = vmatprep.mubr.bf16.mxu1 %v7253_v48  ;;  %v5350_v48 = vld [vmem:[%s7484_s6 + $0x284] ss:$24 sps:$4 sm:$0xff]  }
 0x4a3   :  { %4048 = vmatprep.subr.bf16.mxu1 %v5314_v53 }
 0x4a6   :  { %4049 = vmatpush1.bf16.msra.mxu1 %v5312_v29  ;;  %v5370_v29 = vld [vmem:[#allocation4 + $0x30] sm:$0xff]  }
 0x4a7   :  { %4050 = vmatprep.subr.bf16.mxu1 %v5317_v30  ;;  %v5371_v30 = vld [vmem:[#allocation4 + $0x78] sm:$0xff]  }
 0x4aa   :  { %4051 = vmatpush1.bf16.msra.mxu1 %v5315_v1  ;;  %v5372_v1 = vld [vmem:[#allocation4 + $0x38] sm:$0xff]  }
 0x4ab   :  { %4052 = vmatprep.subr.bf16.mxu1 %v5320_v58 }
 0x4ae   :  { %4053 = vmatpush1.bf16.msra.mxu1 %v5318_v63 }
 0x4af   :  { %4054 = vmatprep.subr.bf16.mxu1 %v5323_v35 }
 0x4b2   :  { %4055 = vmatpush1.bf16.msra.mxu1 %v5321_v5 }
 0x4b3   :  { %4056 = vmatprep.subr.bf16.mxu1 %v5326_v61 }
 0x4b6   :  { %4057 = vmatpush1.bf16.msra.mxu1 %v5324_v59 }
 0x4b7   :  { %4058 = vmatprep.subr.bf16.mxu1 %v5329_v49 }
 0x4ba   :  { %4059 = vmatpush1.bf16.msra.mxu1 %v5327_v46  ;;  %v3461_v46 = vrot.slane %v7453_v2, %v2667_v16 }
 0x4bb   :  { %4060 = vmatprep.subr.bf16.mxu1 %v5332_v40 }
 0x4be   :  { %4061 = vmatpush1.bf16.msra.mxu1 %v5330_v47  ;;  %v3465_v47 = vrot.slane %v7453_v2, %v2671_v25 }
 0x4bf   :  { %4062 = vmatprep.subr.bf16.mxu1 %v5335_v50 }
 0x4c2   :  { %4063 = vmatpush1.bf16.msra.mxu1 %v5333_v57 }
 0x4c3   :  { %4064 = vmatprep.subr.bf16.mxu1 %v5338_v56 }
 0x4c6   :  { %4065 = vmatpush1.bf16.msra.mxu1 %v5336_v33 }
 0x4c7   :  { %4066 = vmatprep.subr.bf16.mxu1 %v5341_v14 }
 0x4ca   :  { %4067 = vmatpush1.bf16.msra.mxu1 %v5339_v9 }
 0x4cb   :  { %4068 = vmatprep.subr.bf16.mxu1 %v5344_v8 }
 0x4ce   :  { %4069 = vmatpush1.bf16.msra.mxu1 %v5342_v39 }
 0x4cf   :  { %4070 = vmatprep.subr.bf16.mxu1 %v5347_v44 }
 0x4d2   :  { %4071 = vmatpush1.bf16.msra.mxu1 %v5345_v52 }
 0x4d3   :  { %4072 = vmatprep.subr.bf16.mxu1 %v5350_v48 }
 0x4d6   :  { %4073 = vmatpush1.bf16.msra.mxu1 %v5348_v4 }
 0x4d7   :  { %4074 = vmatprep.subr.bf16.mxu1 %v5353_v38 }
 0x4da   :  { %4075 = vmatpush1.bf16.msra.mxu1 %v5351_v55 }
 0x4db   :  { %4076 = vmatprep.subr.bf16.mxu1 %v5356_v15 }
 0x4de   :  { %4077 = vmatpush1.bf16.msra.mxu1 %v5354_v12 }
 0x4df   :  { %4696 = vmatprep.subr.bf16.mxu1 %v5357_v32 }
 0x4e1   :  { %4079 = vmatmul.mubr.bf16.vlgmr.msra.gmra.mrb[80].mxu1 %v7251_v36  ;;  %v3453_v36 = vrot.slane %v7453_v2, %v7582_v24  ;;  %v5367_v24 = vld [vmem:[#allocation4 + $0x68] sm:$0xff]  }
 0x4e2   :  { %4697 = vmatpush3.bf16.msra.mxu1 %v5358_v41 }
 0x4e3   :  { %4698 = vmatprep.subr.bf16.mxu1 %v5359_v28 }
 0x4e6   :  { %4699 = vmatpush3.bf16.msra.mxu1 %v5360_v51 }
 0x4e7   :  { %4700 = vmatprep.subr.bf16.mxu1 %v5361_v27 }
 0x4ea   :  { %4701 = vmatpush3.bf16.msra.mxu1 %v5362_v7 }
 0x4eb   :  { %4702 = vmatprep.subr.bf16.mxu1 %v5363_v23 }
 0x4ee   :  { %4703 = vmatpush3.bf16.msra.mxu1 %v5364_v21 }
 0x4ef   :  { %4704 = vmatprep.subr.bf16.mxu1 %v5365_v54 }
 0x4f2   :  { %4705 = vmatpush3.bf16.msra.mxu1 %v5366_v37 }
 0x4f3   :  { %4706 = vmatprep.subr.bf16.mxu1 %v5367_v24 }
 0x4f6   :  { %4707 = vmatpush3.bf16.msra.mxu1 %v5368_v19 }
 0x4f7   :  { %4708 = vmatprep.subr.bf16.mxu1 %v5369_v31 }
 0x4fa   :  { %4709 = vmatpush3.bf16.msra.mxu1 %v5370_v29 }
 0x4fb   :  { %4710 = vmatprep.subr.bf16.mxu1 %v5371_v30 }
 0x4fe   :  { %4711 = vmatpush3.bf16.msra.mxu1 %v5372_v1 }
 0x534   :  { %v3994_v22 = vpop.f32.mrb[72].mxu1 }
 0x535   :  { %v3996_v18 = vpop.f32.mrb[73].mxu1  ;;  %v3995_v17 = vadd.f32 %v3994_v22, %v3453_v36 }
 0x536   :  { %v3998_v3 = vpop.f32.mrb[74].mxu1  ;;  %v3997_v26 = vadd.f32 %v3996_v18, %v3457_v10 }
 0x537   :  { %v4000_v60 = vpop.f32.mrb[75].mxu1  ;;  %v3999_v20 = vadd.f32 %v3998_v3, %v3453_v36  ;;  %v4089_v62 = vsub.f32 0.0, %v3995_v17  ;;  %v3468_v3 = vsub.s32 4, %v7584_v45 }
 0x538   :  { %v4001_v6 = vadd.f32 %v4000_v60, %v3457_v10  ;;  %v4090_v13 = vsub.f32 0.0, %v3997_v26  ;;  %v3472_v60 = vsub.s32 5, %v7584_v45 }
 0x539   :  { %v4091_v0 = vsub.f32 0.0, %v3999_v20  ;;  %v4093_v34 = vmul.f32 1.442695, %v4089_v62  ;;  %v3469_v32 = vrot.slane %v7453_v2, %v3468_v3 }
 0x53a   :  { %v4092_v11 = vsub.f32 0.0, %v4001_v6  ;;  %v4095_v42 = vmul.f32 1.442695, %v4090_v13  ;;  %v3473_v41 = vrot.slane %v7453_v2, %v3472_v60 }
 0x53b   :  { %v4097_v43 = vmul.f32 1.442695, %v4091_v0  ;;  %5405 = vpow2.f32 %v4093_v34 }
 0x53c   :  { %v4099_v53 = vmul.f32 1.442695, %v4092_v11  ;;  %5407 = vpow2.f32 %v4095_v42 }
 0x53d   :  { %5409 = vpow2.f32 %v4097_v43 }
 0x53e   :  { %5411 = vpow2.f32 %v4099_v53 }
 0x545   :  { %v5406_v58 = vpop.eup %5405 }
 0x546   :  { %v5408_v63 = vpop.eup %5407  ;;  %v4101_v61 = vadd.f32 1.0, %v5406_v58 }
 0x547   :  { %v5410_v35 = vpop.eup %5409  ;;  %v4102_v59 = vadd.f32 1.0, %v5408_v63 }
 0x548   :  { %v5412_v5 = vpop.eup %5411  ;;  %v4103_v49 = vadd.f32 1.0, %v5410_v35  ;;  %5413 = vrcp.f32 %v4101_v61 }
 0x549   :  { %v4104_v40 = vadd.f32 1.0, %v5412_v5  ;;  %5415 = vrcp.f32 %v4102_v59 }
 0x54a   :  { %5417 = vrcp.f32 %v4103_v49 }
 0x54b   :  { %5419 = vrcp.f32 %v4104_v40 }
 0x552   :  { %v5414_v16 = vpop.eup %5413 }
 0x553   :  { %v5416_v44 = vpop.eup %5415 }
 0x554   :  { %v5418_v52 = vpop.eup %5417 }
 0x555   :  { %v5420_v25 = vpop.eup %5419 }
 0x574   :  { %v4037_v50 = vpop.f32.mrb[76].mxu1 }
 0x575   :  { %v4038_v57 = vadd.f32 %v4037_v50, %v3461_v46  ;;  %v4039_v56 = vpop.f32.mrb[77].mxu1  ;;  %v4679_v50 = vld [vmem:[%s7487_s9] ss:$0 sm:$0xff] }
 0x576   :  { %v4040_v33 = vadd.f32 %v4039_v56, %v3465_v47  ;;  %v4041_v14 = vpop.f32.mrb[78].mxu1 }
 0x577   :  { %5421 = vtanh.f32 %v4038_v57  ;;  %v4042_v9 = vadd.f32 %v4041_v14, %v3461_v46  ;;  %v4043_v8 = vpop.f32.mrb[79].mxu1 }
 0x578   :  { %5423 = vtanh.f32 %v4040_v33  ;;  %v4044_v39 = vadd.f32 %v4043_v8, %v3465_v47 }
 0x579   :  { %5425 = vtanh.f32 %v4042_v9 }
 0x57a   :  { %5427 = vtanh.f32 %v4044_v39 }
 0x581   :  { %v5422_v48 = vpop.eup %5421 }
 0x582   :  { %v5424_v4 = vpop.eup %5423  ;;  %v4141_v38 = vmul.f32 %v5422_v48, %v5414_v16 }
 0x583   :  { %v5426_v55 = vpop.eup %5425  ;;  %v4142_v15 = vmul.f32 %v5424_v4, %v5416_v44 }
 0x584   :  { %v5428_v12 = vpop.eup %5427  ;;  %v4143_v22 = vmul.f32 %v5426_v55, %v5418_v52 }
 0x585   :  { %v4144_v18 = vmul.f32 %v5428_v12, %v5420_v25 }
 0x5b4   :  { %v4080_v28 = vpop.f32.mrb[80].mxu1 }
 0x5b5   :  { %v4081_v51 = vadd.f32 %v4080_v28, %v3469_v32  ;;  %v4082_v27 = vpop.f32.mrb[81].mxu1 }
 0x5b6   :  { %v4083_v36 = vadd.f32 %v4082_v27, %v3473_v41  ;;  %v4084_v7 = vpop.f32.mrb[82].mxu1 }
 0x5b7   :  { %v4117_v10 = vsub.f32 0.0, %v4081_v51  ;;  %v4085_v23 = vadd.f32 %v4084_v7, %v3469_v32  ;;  %v4086_v17 = vpop.f32.mrb[83].mxu1 }
 0x5b8   :  { %v4118_v21 = vsub.f32 0.0, %v4083_v36  ;;  %v4087_v26 = vadd.f32 %v4086_v17, %v3473_v41 }
 0x5b9   :  { %v4121_v54 = vmul.f32 1.442695, %v4117_v10  ;;  %v4119_v20 = vsub.f32 0.0, %v4085_v23 }
 0x5ba   :  { %v4123_v6 = vmul.f32 1.442695, %v4118_v21  ;;  %v4120_v62 = vsub.f32 0.0, %v4087_v26 }
 0x5bb   :  { %5429 = vpow2.f32 %v4121_v54  ;;  %v4125_v45 = vmul.f32 1.442695, %v4119_v20 }
 0x5bc   :  { %5431 = vpow2.f32 %v4123_v6  ;;  %v4127_v37 = vmul.f32 1.442695, %v4120_v62 }
 0x5bd   :  { %5433 = vpow2.f32 %v4125_v45 }
 0x5be   :  { %5435 = vpow2.f32 %v4127_v37 }
 0x5bf   :  { %5437 = vtanh.f32 %v4141_v38 }
 0x5c0   :  { %5439 = vtanh.f32 %v4142_v15 }
 0x5c1   :  { %5441 = vtanh.f32 %v4143_v22 }
 0x5c2   :  { %5443 = vtanh.f32 %v4144_v18 }
 0x5c5   :  { %v5430_v2 = vpop.eup %5429 }
 0x5c6   :  { %v5432_v13 = vpop.eup %5431  ;;  %v4129_v24 = vadd.f32 1.0, %v5430_v2 }
 0x5c7   :  { %v5434_v0 = vpop.eup %5433  ;;  %v4130_v11 = vadd.f32 1.0, %v5432_v13 }
 0x5c8   :  { %v5436_v34 = vpop.eup %5435  ;;  %5445 = vrcp.f32 %v4129_v24  ;;  %v4131_v19 = vadd.f32 1.0, %v5434_v0 }
 0x5c9   :  { %5447 = vrcp.f32 %v4130_v11  ;;  %v4132_v42 = vadd.f32 1.0, %v5436_v34  ;;  %v5438_v31 = vpop.eup %5437 }
 0x5ca   :  { %5449 = vrcp.f32 %v4131_v19  ;;  %v5440_v43 = vpop.eup %5439 }
 0x5cb   :  { %5451 = vrcp.f32 %v4132_v42  ;;  %v5442_v53 = vpop.eup %5441 }
 0x5cc   :  { %v5444_v29 = vpop.eup %5443 }
 0x5d2   :  { %v5446_v30 = vpop.eup %5445 }
 0x5d3   :  { %v5448_v1 = vpop.eup %5447  ;;  %v4149_v58 = vmul.f32 %v5446_v30, %v5438_v31 }
 0x5d4   :  { %v5450_v63 = vpop.eup %5449  ;;  %v4150_v35 = vmul.f32 %v5448_v1, %v5440_v43 }
 0x5d5   :  { %v5452_v5 = vpop.eup %5451  ;;  %v4151_v61 = vmul.f32 %v5450_v63, %v5442_v53 }
 0x5d6   :  { %v4152_v59 = vmul.f32 %v5452_v5, %v5444_v29 }
 0x5d7   :  { %v4153_v49 = vpack.c.bf16 %v4151_v61, %v4149_v58 }
 0x5d8   :  { %v4154_v46 = vpack.c.bf16 %v4152_v59, %v4150_v35 }
 0x5da   :  { %4322 = vmatprep.mubr.bf16.mxu1 %v4154_v46 }
 0x5db   :  { %4323 = vmatmul.mubr.bf16.vlgmr.msra.gmra.mrb[84].mxu1 %v4153_v49 }
 0x6ae   :  { %v4712_v40 = vpop.f32.mrb[84].mxu1 }
 0x6af   :  { %v4713_v47 = vpop.f32.mrb[85].mxu1 }
 0x6b0   :  { %v4714_v57 = vadd.f32 %v4713_v47, %v4712_v40  ;;  %v4715_v56 = vpop.f32.mrb[86].mxu1 }
 0x6b1   :  { %v4716_v33 = vpop.f32.mrb[87].mxu1 }
 0x6b2   :  { %v4717_v14 = vadd.f32 %v4716_v33, %v4715_v56  ;;  %v4325_v9 = vadd.f32 %v4714_v57, %v4679_v50 }
 0x6b4   :  { %4331 = vmax.xlane.f32.xlu0 %v4325_v9  ;;  %v4328_v8 = vadd.f32 %v4717_v14, %v4679_v50 }
 0x6b8   :  { %4333 = vmax.xlane.f32.xlu0 %v4328_v8 }
 0x741   :  { %v4332_v39 = vpop.xlane.xlu0 %4331 }
 0x742   :  { %v4335_v16 = vsub.f32 %v4325_v9, %v4332_v39 }
 0x744   :  { %v4337_v44 = vmul.f32 1.442695, %v4335_v16 }
 0x745   :  { %v4334_v52 = vpop.xlane.xlu0 %4333 }
 0x746   :  { %v4336_v25 = vsub.f32 %v4328_v8, %v4334_v52  ;;  %5453 = vpow2.f32 %v4337_v44 }
 0x748   :  { %v4339_v48 = vmul.f32 1.442695, %v4336_v25 }
 0x74a   :  { %5455 = vpow2.f32 %v4339_v48 }
 0x750   :  { %v5454_v4 = vpop.eup %5453 }
 0x751   :  { %4341 = vadd.xlane.f32.xlu1 %v5454_v4 }
 0x754   :  { %v5456_v38 = vpop.eup %5455 }
 0x755   :  { %4343 = vadd.xlane.f32.xlu1 %v5456_v38 }
 0x7de   :  { %v4342_v55 = vpop.xlane.xlu1 %4341 }
 0x7df   :  { %5457 = vlog2.f32 %v4342_v55 }
 0x7e2   :  { %v4344_v15 = vpop.xlane.xlu1 %4343 }
 0x7e3   :  { %5459 = vlog2.f32 %v4344_v15 }
 0x7e9   :  { %v5458_v12 = vpop.eup %5457 }
 0x7ea   :  { %v4346_v22 = vmul.f32 0.6931472, %v5458_v12 }
 0x7ec   :  { %v4349_v18 = vsub.f32 %v4335_v16, %v4346_v22 }
 0x7ed   :  { %v5460_v3 = vpop.eup %5459 }
 0x7ee   :  { %4351 = vst [vmem:[%s7488_s10] sm:$0xff] %v4349_v18  ;;  %v4348_v60 = vmul.f32 0.6931472, %v5460_v3 }
 0x7f0   :  { %v4350_v32 = vsub.f32 %v4336_v25, %v4348_v60 }
 0x7f2   :  { %4352 = vst [vmem:[%s7488_s10 + $0x8] sm:$0xff] %v4350_v32 }
 0x7f3   :  { %4357 = vsyncpa [#allocation3], 1 }
 0x7f4   :  { %4358 = vsyncpa [#allocation5], 1 }

</bundles_post_ra>
